<compile_context>
chip_gen: v6e
topology: v6e:2x2x1
jax: 0.10.0
libtpu: 0.0.40
codegen_flags: <defaults>
</compile_context>

<pallas_src>
import functools

import jax
import jax.numpy as jnp
from jax.experimental import pallas as pl
from jax.experimental.pallas import tpu as pltpu


_LANE = 128
_PADL = 8          # left column pad inside the VMEM halo scratch (sublane aligned)


def _round_up(v, m):
    return ((v + m - 1) // m) * m


def _vmem_limit():
    """Per-generation scoped-VMEM limit (<= ~3/4 of physical, capped at 48 MiB)."""
    try:
        cap = pltpu.get_tpu_info().vmem_capacity_bytes
    except Exception:  # pragma: no cover - conservative fallback
        cap = 128 * 1024 * 1024
    return int(min(48 * 1024 * 1024, max(32 * 1024 * 1024, (3 * cap) // 4)))


def _pick_hw_tile(hw, row_bytes, budget):
    """Largest multiple-of-8 divisor of hw (<=1024) whose working set fits."""
    t = min(hw, 1024)
    t -= t % 8
    while t >= 8:
        if hw % t == 0 and t * row_bytes <= budget:
            return t
        t -= 8
    return hw


def _pick_row_tile(ho, wo, m_target=256):
    """Largest divisor of Ho with row_tile*Wo <= ~256 (MXU M target)."""
    best = 1
    for d in range(1, ho + 1):
        if ho % d == 0 and d * wo <= max(m_target, wo):
            best = d
    return best


# ----------------------------------------------------------------------------
# Kernel 1: 1x1 CondConv expand + folded BN + ReLU6  (+ router-2 partial sums)
# ----------------------------------------------------------------------------
def _make_expand_kernel(num_experts):
    def kernel(r_ref, x_ref, w_ref, b_ref, h_ref, psum_ref, wb_ref):
        b = pl.program_id(0)

        # Per-sample expert combine, once per sample (first HW tile only).
        # BN scale already folded into the (bf16) expert weights.
        @pl.when(pl.program_id(1) == 0)
        def _():
            wb = r_ref[b, 0] * w_ref[0].astype(jnp.float32)
            for e in range(1, num_experts):
                wb = wb + r_ref[b, e] * w_ref[e].astype(jnp.float32)
            wb_ref[...] = wb.astype(jnp.bfloat16)

        x = x_ref[0]                                            # (tm, cin_p) bf16
        y = jnp.dot(x, wb_ref[...], preferred_element_type=jnp.float32)
        y = y + b_ref[...]                                      # folded-BN bias
        y = jnp.clip(y, 0.0, 6.0)                               # ReLU6
        psum_ref[0] = jnp.sum(y, axis=0, keepdims=True)         # router-2 pool
        h_ref[0] = y.astype(jnp.bfloat16)

    return kernel


def expand_condconv(x_flat, routing, w_folded, bias):
    # x_flat: (B, HW, cin_p) bf16   routing: (B, E) f32
    # w_folded: (E, cin_p, hid_p) bf16 (BN scale folded)   bias: (1, hid_p) f32
    B, HW, cin_p = x_flat.shape
    E, _, hid_p = w_folded.shape
    limit = _vmem_limit()
    fixed = 2 * E * cin_p * hid_p * 2 + cin_p * hid_p * 2       # expert w + combined
    row_bytes = 4 * cin_p + 8 * hid_p + 4 * hid_p               # x/h dbl-buf + f32 y
    budget = max(limit - fixed - (4 << 20), 8 * row_bytes)
    tm = _pick_hw_tile(HW, row_bytes, budget)
    n_t = HW // tm
    return pl.pallas_call(
        _make_expand_kernel(E),
        grid=(B, n_t),
        out_shape=(jax.ShapeDtypeStruct((B, HW, hid_p), jnp.bfloat16),
                   jax.ShapeDtypeStruct((B, n_t, hid_p), jnp.float32)),
        in_specs=[
            pl.BlockSpec(memory_space=pltpu.MemorySpace.SMEM),      # routing
            pl.BlockSpec((1, tm, cin_p), lambda b, t: (b, t, 0)),
            pl.BlockSpec((E, cin_p, hid_p), lambda b, t: (0, 0, 0)),
            pl.BlockSpec((1, hid_p), lambda b, t: (0, 0)),
        ],
        out_specs=(
            pl.BlockSpec((1, tm, hid_p), lambda b, t: (b, t, 0)),
            pl.BlockSpec((1, 1, hid_p), lambda b, t: (b, t, 0)),
        ),
        scratch_shapes=[pltpu.VMEM((cin_p, hid_p), jnp.bfloat16)],
        compiler_params=pltpu.CompilerParams(
            dimension_semantics=("parallel", "arbitrary"),
            vmem_limit_bytes=limit),
    )(routing, x_flat, w_folded, bias)


# ----------------------------------------------------------------------------
# Kernel 2: fused 3x3 depthwise CondConv + BN + ReLU6 + 1x1 project + BN (+res)
#           grid = (B, row_tiles)
# ----------------------------------------------------------------------------
def _make_fused_dw_project_kernel(num_experts, stride, has_residual,
                                  row_tile, n_rt, rows_in, bottom_oob):
    def kernel(*refs):
        if has_residual:
            (r2_ref, r3_ref, h_ref, res_ref, w2_ref, b2_ref, w3_ref, b3_ref,
             out_ref, hpad_ref, wb2_ref, wb3_ref) = refs
        else:
            (r2_ref, r3_ref, h_ref, w2_ref, b2_ref, w3_ref, b3_ref,
             out_ref, hpad_ref, wb2_ref, wb3_ref) = refs
            res_ref = None

        b = pl.program_id(0)
        rt = pl.program_id(1)
        H, W, hid_p = h_ref.shape[1], h_ref.shape[2], h_ref.shape[3]
        Wo, oup_p = out_ref.shape[2], out_ref.shape[3]

        # ---- per-sample expert combine (BN scales folded), once per sample --
        @pl.when(rt == 0)
        def _():
            wb2 = r2_ref[b, 0] * w2_ref[0].astype(jnp.float32)   # (3,3,hid_p)
            wb3 = r3_ref[b, 0] * w3_ref[0].astype(jnp.float32)   # (hid_p,oup_p)
            for e in range(1, num_experts):
                wb2 = wb2 + r2_ref[b, e] * w2_ref[e].astype(jnp.float32)
                wb3 = wb3 + r3_ref[b, e] * w3_ref[e].astype(jnp.float32)
            wb2_ref[...] = wb2
            wb3_ref[...] = wb3.astype(jnp.bfloat16)              # MXU operand

        # ---- stage the padded halo row window for this tile ------------------
        # scratch row s  <->  input row (stride*rt*row_tile - 1 + s)
        if n_rt == 1:
            hpad_ref[...] = jnp.zeros_like(hpad_ref)
            hpad_ref[pl.ds(1, H), pl.ds(_PADL, W), :] = h_ref[0]
        else:
            @pl.when(rt == 0)
            def _():
                # Fresh (small) memset establishes all zero borders once per
                # sample; later tiles only overwrite the interior columns.
                hpad_ref[...] = jnp.zeros_like(hpad_ref)
                hpad_ref[pl.ds(1, rows_in - 1), pl.ds(_PADL, W), :] = \
                    h_ref[0, pl.ds(0, rows_in - 1), :, :]

            @pl.when(jnp.logical_and(rt > 0, rt < n_rt - 1))
            def _():
                src = stride * rt * row_tile - 1
                hpad_ref[pl.ds(0, rows_in), pl.ds(_PADL, W), :] = \
                    h_ref[0, pl.ds(src, rows_in), :, :]

            @pl.when(rt == n_rt - 1)
            def _():
                src = stride * rt * row_tile - 1
                nvalid = rows_in - bottom_oob
                hpad_ref[pl.ds(0, nvalid), pl.ds(_PADL, W), :] = \
                    h_ref[0, pl.ds(src, nvalid), :, :]
                if bottom_oob > 0:
                    hpad_ref[pl.ds(nvalid, bottom_oob), pl.ds(_PADL, W), :] = \
                        jnp.zeros((bottom_oob, W, hid_p), hpad_ref.dtype)

        # ---- 3x3 depthwise (9 shifted taps) + folded BN + ReLU6 --------------
        acc = jnp.zeros((row_tile, Wo, hid_p), jnp.float32)
        for kh in range(3):
            for kw in range(3):
                if stride == 1:
                    patch = hpad_ref[pl.ds(kh, row_tile),
                                     pl.ds(_PADL + kw - 1, Wo), :]
                else:
                    patch = hpad_ref[pl.ds(kh, row_tile, stride),
                                     pl.ds(_PADL + kw - 1, Wo, stride), :]
                acc = acc + patch.astype(jnp.float32) * wb2_ref[kh, kw]
        z = jnp.clip(acc + b2_ref[...], 0.0, 6.0)

        # ---- 1x1 projection (MXU, M ~= row_tile*Wo) + folded BN (+residual) --
        z = z.astype(jnp.bfloat16).reshape(row_tile * Wo, hid_p)
        y = jnp.dot(z, wb3_ref[...], preferred_element_type=jnp.float32)
        y = (y + b3_ref[...]).reshape(row_tile, Wo, oup_p)
        if has_residual:
            y = y + res_ref[0].astype(jnp.float32)
        out_ref[0] = y.astype(jnp.bfloat16)

    return kernel


def fused_dwconv_project(h_nhwc, routing2, routing3, w2f, bias2, w3f, bias3,
                         *, stride, residual=None):
    B, H, W, hid_p = h_nhwc.shape
    E = w2f.shape[0]
    oup_p = w3f.shape[2]
    Ho = (H - 1) // stride + 1
    Wo = (W - 1) // stride + 1
    row_tile = _pick_row_tile(Ho, Wo)
    n_rt = Ho // row_tile
    rows_in = stride * (row_tile - 1) + 3
    bottom_oob = stride * (Ho - 1) + 2 - H          # 0 or 1
    cols_pad = _round_up(_PADL + W + 1, 8)
    limit = _vmem_limit()

    kernel = _make_fused_dw_project_kernel(E, stride, residual is not None,
                                           row_tile, n_rt, rows_in, bottom_oob)

    in_specs = [
        pl.BlockSpec(memory_space=pltpu.MemorySpace.SMEM),      # routing2
        pl.BlockSpec(memory_space=pltpu.MemorySpace.SMEM),      # routing3
        pl.BlockSpec((1, H, W, hid_p), lambda b, rt: (b, 0, 0, 0)),
    ]
    args = [routing2, routing3, h_nhwc]
    if residual is not None:
        in_specs.append(
            pl.BlockSpec((1, row_tile, Wo, oup_p), lambda b, rt: (b, rt, 0, 0)))
        args.append(residual)
    in_specs += [
        pl.BlockSpec((E, 3, 3, hid_p), lambda b, rt: (0, 0, 0, 0)),
        pl.BlockSpec((1, hid_p), lambda b, rt: (0, 0)),
        pl.BlockSpec((E, hid_p, oup_p), lambda b, rt: (0, 0, 0)),
        pl.BlockSpec((1, oup_p), lambda b, rt: (0, 0)),
    ]
    args += [w2f, bias2, w3f, bias3]

    return pl.pallas_call(
        kernel,
        grid=(B, n_rt),
        out_shape=jax.ShapeDtypeStruct((B, Ho, Wo, oup_p), jnp.bfloat16),
        in_specs=in_specs,
        out_specs=pl.BlockSpec((1, row_tile, Wo, oup_p),
                               lambda b, rt: (b, rt, 0, 0)),
        scratch_shapes=[
            pltpu.VMEM((rows_in, cols_pad, hid_p), jnp.bfloat16),   # halo window
            pltpu.VMEM((3, 3, hid_p), jnp.float32),                 # combined dw w
            pltpu.VMEM((hid_p, oup_p), jnp.bfloat16),               # combined proj w
        ],
        compiler_params=pltpu.CompilerParams(
            dimension_semantics=("parallel", "arbitrary"),
            vmem_limit_bytes=limit),
    )(*args)


# ----------------------------------------------------------------------------
# Full CondConvInvertedResidual forward (glue: routers, BN folding, layouts)
# ----------------------------------------------------------------------------
def cond_conv_inverted_residual(x_nchw, params, *, stride, expand_ratio):
    B, inp, H, W = x_nchw.shape
    oup = params["bn3_scale"].shape[0]
    hidden = params["w2"].shape[-1]
    use_res = (stride == 1) and (inp == oup)

    cin_p = _round_up(inp, _LANE)
    hid_p = _round_up(hidden, _LANE)
    oup_p = _round_up(oup, _LANE)

    # ---- NHWC, lane-padded, bf16 activations; one pass over x ---------------
    x_nhwc = jnp.transpose(x_nchw, (0, 2, 3, 1)).astype(jnp.float32)
    x_pad = jnp.pad(x_nhwc, ((0, 0), (0, 0), (0, 0), (0, cin_p - inp)))
    x_pad = x_pad.astype(jnp.bfloat16)                          # (B, H, W, cin_p)

    # Routers 1 & 3 pool the (bf16) layout tensor -> no extra f32 read of x.
    pooled_x = jnp.mean(x_pad[..., :inp], axis=(1, 2), dtype=jnp.float32)
    r3 = jax.nn.sigmoid(pooled_x @ params["router3_w"]
                        + params["router3_b"]).astype(jnp.float32)

    # ---- fold BN scales into per-expert conv weights; big weights in bf16 ---
    w2f = params["w2"] * params["bn2_scale"][None, None, None, :]
    w2f_p = jnp.pad(w2f, ((0, 0), (0, 0), (0, 0),
                          (0, hid_p - hidden))).astype(jnp.float32)
    b2_p = jnp.pad(params["bn2_bias"], (0, hid_p - hidden)).reshape(1, hid_p)
    w3f = params["w3"] * params["bn3_scale"][None, None, :]
    w3f_p = jnp.pad(w3f, ((0, 0), (0, hid_p - hidden),
                          (0, oup_p - oup))).astype(jnp.bfloat16)
    b3_p = jnp.pad(params["bn3_bias"], (0, oup_p - oup)).reshape(1, oup_p)

    if expand_ratio != 1:
        r1 = jax.nn.sigmoid(pooled_x @ params["router1_w"]
                            + params["router1_b"]).astype(jnp.float32)
        w1f = params["w1"] * params["bn1_scale"][None, None, :]
        w1f_p = jnp.pad(w1f, ((0, 0), (0, cin_p - inp),
                              (0, hid_p - hidden))).astype(jnp.bfloat16)
        b1_p = jnp.pad(params["bn1_bias"], (0, hid_p - hidden)).reshape(1, hid_p)

        x_flat = x_pad.reshape(B, H * W, cin_p)
        h_flat, psum = expand_condconv(x_flat, r1, w1f_p, b1_p)
        h_nhwc = h_flat.reshape(B, H, W, hid_p)
        pooled_h = (jnp.sum(psum, axis=1) / float(H * W))[:, :hidden]
    else:
        h_nhwc = x_pad                                          # hidden == inp
        pooled_h = pooled_x

    r2 = jax.nn.sigmoid(pooled_h @ params["router2_w"]
                        + params["router2_b"]).astype(jnp.float32)

    residual = x_pad if use_res else None                       # cin_p == oup_p
    out_p = fused_dwconv_project(h_nhwc, r2, r3, w2f_p, b2_p, w3f_p, b3_p,
                                 stride=stride, residual=residual)
    out = out_p[..., :oup].astype(jnp.float32)                  # drop lane pad
    return jnp.transpose(out, (0, 3, 1, 2))                     # back to NCHW


# ----------------------------------------------------------------------------
# Pure-JAX reference (same math, XLA ops, f32) for a sanity check
# ----------------------------------------------------------------------------
def reference(x_nchw, params, *, stride, expand_ratio):
    B, inp, H, W = x_nchw.shape
    oup = params["bn3_scale"].shape[0]
    use_res = (stride == 1) and (inp == oup)
    x = jnp.transpose(x_nchw, (0, 2, 3, 1)).astype(jnp.float32)

    def route(h, w, b):
        return jax.nn.sigmoid(jnp.mean(h, axis=(1, 2)) @ w + b)

    def cc1x1(h, r, w, scale, bias, relu6):
        wb = jnp.einsum("be,eio->bio", r, w)
        y = jnp.einsum("bhwi,bio->bhwo", h, wb) * scale + bias
        return jnp.clip(y, 0.0, 6.0) if relu6 else y

    def dw3x3(h, r, w, scale, bias, s):
        wb = jnp.einsum("be,ekjc->bkjc", r, w)
        hp = jnp.pad(h, ((0, 0), (1, 1), (1, 1), (0, 0)))
        Ho = (h.shape[1] - 1) // s + 1
        Wo = (h.shape[2] - 1) // s + 1
        acc = jnp.zeros((h.shape[0], Ho, Wo, h.shape[3]), jnp.float32)
        for kh in range(3):
            for kw in range(3):
                patch = hp[:, kh:kh + s * (Ho - 1) + 1:s,
                           kw:kw + s * (Wo - 1) + 1:s, :]
                acc = acc + patch * wb[:, kh:kh + 1, kw:kw + 1, :]
        return jnp.clip(acc * scale + bias, 0.0, 6.0)

    rw_proj = route(x, params["router3_w"], params["router3_b"])
    h = x
    if expand_ratio != 1:
        rw1 = route(h, params["router1_w"], params["router1_b"])
        h = cc1x1(h, rw1, params["w1"], params["bn1_scale"],
                  params["bn1_bias"], True)
    rw2 = route(h, params["router2_w"], params["router2_b"])
    h = dw3x3(h, rw2, params["w2"], params["bn2_scale"], params["bn2_bias"],
              stride)
    out = cc1x1(h, rw_proj, params["w3"], params["bn3_scale"],
                params["bn3_bias"], False)
    if use_res:
        out = out + x
    return jnp.transpose(out, (0, 3, 1, 2))


# ----------------------------------------------------------------------------
def _make_params(key, inp, oup, hidden, num_experts):
    ks = jax.random.split(key, 16)

    def nrm(k, shape, s=0.25):
        return (jax.random.normal(k, shape) * s).astype(jnp.float32)

    def bn_fold(k, c, eps=1e-5):
        k1, k2, k3, k4 = jax.random.split(k, 4)
        gamma = 1.0 + 0.1 * jax.random.normal(k1, (c,))
        beta = 0.1 * jax.random.normal(k2, (c,))
        mean = 0.1 * jax.random.normal(k3, (c,))
        var = jax.random.uniform(k4, (c,), minval=0.5, maxval=1.5)
        scale = gamma * jax.lax.rsqrt(var + eps)
        bias = beta - mean * scale
        return scale.astype(jnp.float32), bias.astype(jnp.float32)

    bn1_s, bn1_b = bn_fold(ks[0], hidden)
    bn2_s, bn2_b = bn_fold(ks[1], hidden)
    bn3_s, bn3_b = bn_fold(ks[2], oup)

    return dict(
        router1_w=nrm(ks[3], (inp, num_experts)),
        router1_b=nrm(ks[4], (num_experts,)),
        w1=nrm(ks[5], (num_experts, inp, hidden)),              # 1x1 expand
        bn1_scale=bn1_s, bn1_bias=bn1_b,
        router2_w=nrm(ks[6], (hidden, num_experts)),
        router2_b=nrm(ks[7], (num_experts,)),
        w2=nrm(ks[8], (num_experts, 3, 3, hidden)),             # 3x3 depthwise
        bn2_scale=bn2_s, bn2_bias=bn2_b,
        router3_w=nrm(ks[9], (inp, num_experts)),
        router3_b=nrm(ks[10], (num_experts,)),
        w3=nrm(ks[11], (num_experts, hidden, oup)),             # 1x1 project
        bn3_scale=bn3_s, bn3_bias=bn3_b,
    ), ks[12]


def _run_case(name, key, B, inp, oup, H, W, stride, expand_ratio, num_experts):
    hidden = int(round(inp * expand_ratio))
    params, kx = _make_params(key, inp, oup, hidden, num_experts)
    x = jax.random.normal(kx, (B, inp, H, W), dtype=jnp.float32)

    fwd = jax.jit(functools.partial(cond_conv_inverted_residual,
                                    stride=stride, expand_ratio=expand_ratio))
    out = jax.block_until_ready(fwd(x, params))

    ref = reference(x, params, stride=stride, expand_ratio=expand_ratio)
    assert out.shape == ref.shape, (name, out.shape, ref.shape)
    max_err = float(jnp.max(jnp.abs(out - ref)))
    # bf16 activations / matmul operands / stored weights / output
    # (f32 accumulation) -> relaxed tolerance.
    if not bool(jnp.allclose(out, ref, atol=8e-2, rtol=5e-2)):
        raise AssertionError(f"{name}: mismatch, max abs err = {max_err}")


if __name__ == "__main__":
    key = jax.random.PRNGKey(0)
    k1, k2 = jax.random.split(key)
    # Case 1: single row tile per sample (n_rt == 1 path).
    _run_case("16x16", k1, 2, 8, 8, 16, 16, 1, 4, 4)
    # Case 2: row-tiled grid (n_rt = 4) exercising halo staging / first /
    # interior / last row-tile branches.
    _run_case("32x32", k2, 2, 8, 8, 32, 32, 1, 4, 4)
    print("KERNEL_OK")
</pallas_src>

<mosaic_0001>
module attributes {stable_mosaic.version = 11 : i64} {
  func.func @kernel(%arg0: i32, %arg1: i32, %arg2: memref<2x4xf32, #tpu.memory_space<smem>>, %arg3: memref<1x256x128xbf16, #tpu.memory_space<vmem>>, %arg4: memref<4x128x128xbf16, #tpu.memory_space<vmem>>, %arg5: memref<1x128xf32, #tpu.memory_space<vmem>>, %arg6: memref<1x256x128xbf16, #tpu.memory_space<vmem>>, %arg7: memref<1x1x128xf32, #tpu.memory_space<vmem>>, %arg8: memref<128x128xbf16, #tpu.memory_space<vmem>>) attributes {dimension_semantics = [#tpu.dimension_semantics<parallel>, #tpu.dimension_semantics<arbitrary>], iteration_bounds = array<i64: 2, 1>, scalar_prefetch = 0 : i64, scratch_operands = 1 : i64, tpu.core_type = #tpu.core_type<tc>, window_params = [{transform_indices = @transform_0, window_bounds = array<i64: 2, 4>}, {transform_indices = @transform_1, window_bounds = array<i64: 1, 256, 128>}, {pipeline_mode = #tpu.pipeline_mode<synchronous>, transform_indices = @transform_2, window_bounds = array<i64: 4, 128, 128>}, {pipeline_mode = #tpu.pipeline_mode<synchronous>, transform_indices = @transform_3, window_bounds = array<i64: 1, 128>}, {transform_indices = @transform_4, window_bounds = array<i64: 1, 256, 128>}, {transform_indices = @transform_5, window_bounds = array<i64: 1, 1, 128>}]} {
    %c0_i32 = arith.constant 0 : i32
    %0 = arith.cmpi eq, %arg1, %c0_i32 : i32
    %1 = arith.extui %0 : i1 to i32
    %c0_i32_0 = arith.constant 0 : i32
    %2 = arith.cmpi ne, %1, %c0_i32_0 : i32
    scf.if %2 {
      %23 = arith.index_cast %arg0 : i32 to index
      %c0_16 = arith.constant 0 : index
      %24 = memref.load %arg2[%23, %c0_16] : memref<2x4xf32, #tpu.memory_space<smem>>
      %c0_17 = arith.constant 0 : index
      %c0_18 = arith.constant 0 : index
      %c0_19 = arith.constant 0 : index
      %25 = vector.load %arg4[%c0_17, %c0_18, %c0_19] : memref<4x128x128xbf16, #tpu.memory_space<vmem>>, vector<1x128x128xbf16>
      %26 = vector.shape_cast %25 : vector<1x128x128xbf16> to vector<128x128xbf16>
      %27 = arith.extf %26 : vector<128x128xbf16> to vector<128x128xf32>
      %28 = vector.broadcast %24 : f32 to vector<128x128xf32>
      %29 = arith.mulf %28, %27 : vector<128x128xf32>
      %30 = arith.index_cast %arg0 : i32 to index
      %c1 = arith.constant 1 : index
      %31 = memref.load %arg2[%30, %c1] : memref<2x4xf32, #tpu.memory_space<smem>>
      %c1_20 = arith.constant 1 : index
      %c0_21 = arith.constant 0 : index
      %c0_22 = arith.constant 0 : index
      %32 = vector.load %arg4[%c1_20, %c0_21, %c0_22] : memref<4x128x128xbf16, #tpu.memory_space<vmem>>, vector<1x128x128xbf16>
      %33 = vector.shape_cast %32 : vector<1x128x128xbf16> to vector<128x128xbf16>
      %34 = arith.extf %33 : vector<128x128xbf16> to vector<128x128xf32>
      %35 = vector.broadcast %31 : f32 to vector<128x128xf32>
      %36 = arith.mulf %35, %34 : vector<128x128xf32>
      %37 = arith.addf %29, %36 : vector<128x128xf32>
      %38 = arith.index_cast %arg0 : i32 to index
      %c2 = arith.constant 2 : index
      %39 = memref.load %arg2[%38, %c2] : memref<2x4xf32, #tpu.memory_space<smem>>
      %c2_23 = arith.constant 2 : index
      %c0_24 = arith.constant 0 : index
      %c0_25 = arith.constant 0 : index
      %40 = vector.load %arg4[%c2_23, %c0_24, %c0_25] : memref<4x128x128xbf16, #tpu.memory_space<vmem>>, vector<1x128x128xbf16>
      %41 = vector.shape_cast %40 : vector<1x128x128xbf16> to vector<128x128xbf16>
      %42 = arith.extf %41 : vector<128x128xbf16> to vector<128x128xf32>
      %43 = vector.broadcast %39 : f32 to vector<128x128xf32>
      %44 = arith.mulf %43, %42 : vector<128x128xf32>
      %45 = arith.addf %37, %44 : vector<128x128xf32>
      %46 = arith.index_cast %arg0 : i32 to index
      %c3 = arith.constant 3 : index
      %47 = memref.load %arg2[%46, %c3] : memref<2x4xf32, #tpu.memory_space<smem>>
      %c3_26 = arith.constant 3 : index
      %c0_27 = arith.constant 0 : index
      %c0_28 = arith.constant 0 : index
      %48 = vector.load %arg4[%c3_26, %c0_27, %c0_28] : memref<4x128x128xbf16, #tpu.memory_space<vmem>>, vector<1x128x128xbf16>
      %49 = vector.shape_cast %48 : vector<1x128x128xbf16> to vector<128x128xbf16>
      %50 = arith.extf %49 : vector<128x128xbf16> to vector<128x128xf32>
      %51 = vector.broadcast %47 : f32 to vector<128x128xf32>
      %52 = arith.mulf %51, %50 : vector<128x128xf32>
      %53 = arith.addf %45, %52 : vector<128x128xf32>
      %54 = arith.truncf %53 : vector<128x128xf32> to vector<128x128xbf16>
      %c0_29 = arith.constant 0 : index
      %c0_30 = arith.constant 0 : index
      %55 = vector.load %arg8[%c0_29, %c0_30] : memref<128x128xbf16, #tpu.memory_space<vmem>>, vector<128x128xbf16>
      tpu.vector_store %arg8[%c0_29, %c0_30], %54 {strides = array<i32>} : memref<128x128xbf16, #tpu.memory_space<vmem>>, vector<128x128xbf16>,
    } else {
    }
    %c0 = arith.constant 0 : index
    %c0_1 = arith.constant 0 : index
    %c0_2 = arith.constant 0 : index
    %3 = vector.load %arg3[%c0, %c0_1, %c0_2] : memref<1x256x128xbf16, #tpu.memory_space<vmem>>, vector<1x256x128xbf16>
    %4 = vector.shape_cast %3 : vector<1x256x128xbf16> to vector<256x128xbf16>
    %c0_3 = arith.constant 0 : index
    %c0_4 = arith.constant 0 : index
    %5 = vector.load %arg8[%c0_3, %c0_4] : memref<128x128xbf16, #tpu.memory_space<vmem>>, vector<128x128xbf16>
    %cst = arith.constant dense<0.000000e+00> : vector<256x128xf32>
    %6 = tpu.matmul %4, %5, %cst {dimension_numbers = #tpu.dot_dimension_numbers<[1], [0], [0], [1], [0, 0, 1, 1], [], []>} : vector<256x128xbf16>, vector<128x128xbf16>, vector<256x128xf32> -> vector<256x128xf32>
    %c0_5 = arith.constant 0 : index
    %c0_6 = arith.constant 0 : index
    %7 = vector.load %arg5[%c0_5, %c0_6] : memref<1x128xf32, #tpu.memory_space<vmem>>, vector<1x128xf32>
    %8 = vector.broadcast %7 : vector<1x128xf32> to vector<256x128xf32>
    %9 = arith.addf %6, %8 : vector<256x128xf32>
    %cst_7 = arith.constant 0.000000e+00 : f32
    %cst_8 = arith.constant 6.000000e+00 : f32
    %10 = vector.broadcast %cst_7 : f32 to vector<256x128xf32>
    %11 = arith.maximumf %10, %9 : vector<256x128xf32>
    %12 = vector.broadcast %cst_8 : f32 to vector<256x128xf32>
    %13 = arith.minimumf %12, %11 : vector<256x128xf32>
    %cst_9 = arith.constant dense<0.000000e+00> : vector<128xf32>
    %14 = vector.multi_reduction <add>, %13, %cst_9 [0] : vector<256x128xf32> to vector<128xf32>
    %15 = vector.shape_cast %14 : vector<128xf32> to vector<1x128xf32>
    %c0_10 = arith.constant 0 : index
    %c0_11 = arith.constant 0 : index
    %c0_12 = arith.constant 0 : index
    %16 = vector.load %arg7[%c0_10, %c0_11, %c0_12] : memref<1x1x128xf32, #tpu.memory_space<vmem>>, vector<1x1x128xf32>
    %17 = vector.shape_cast %16 : vector<1x1x128xf32> to vector<1x128xf32>
    %18 = vector.shape_cast %15 : vector<1x128xf32> to vector<1x1x128xf32>
    tpu.vector_store %arg7[%c0_10, %c0_11, %c0_12], %18 {strides = array<i32>} : memref<1x1x128xf32, #tpu.memory_space<vmem>>, vector<1x1x128xf32>,
    %19 = arith.truncf %13 : vector<256x128xf32> to vector<256x128xbf16>
    %c0_13 = arith.constant 0 : index
    %c0_14 = arith.constant 0 : index
    %c0_15 = arith.constant 0 : index
    %20 = vector.load %arg6[%c0_13, %c0_14, %c0_15] : memref<1x256x128xbf16, #tpu.memory_space<vmem>>, vector<1x256x128xbf16>
    %21 = vector.shape_cast %20 : vector<1x256x128xbf16> to vector<256x128xbf16>
    %22 = vector.shape_cast %19 : vector<256x128xbf16> to vector<1x256x128xbf16>
    tpu.vector_store %arg6[%c0_13, %c0_14, %c0_15], %22 {strides = array<i32>} : memref<1x256x128xbf16, #tpu.memory_space<vmem>>, vector<1x256x128xbf16>,
    return
  }
  func.func @transform_0(%arg0: i32, %arg1: i32) -> (i32, i32) {
    %c0_i32 = arith.constant 0 : i32
    %c0_i32_0 = arith.constant 0 : i32
    %c0_i32_1 = arith.constant 0 : i32
    return %c0_i32, %c0_i32_0 : i32, i32
  }
  func.func @transform_1(%arg0: i32, %arg1: i32) -> (i32, i32, i32) {
    %c0_i32 = arith.constant 0 : i32
    %c0_i32_0 = arith.constant 0 : i32
    return %arg0, %arg1, %c0_i32 : i32, i32, i32
  }
  func.func @transform_2(%arg0: i32, %arg1: i32) -> (i32, i32, i32) {
    %c0_i32 = arith.constant 0 : i32
    %c0_i32_0 = arith.constant 0 : i32
    %c0_i32_1 = arith.constant 0 : i32
    %c0_i32_2 = arith.constant 0 : i32
    return %c0_i32, %c0_i32_0, %c0_i32_1 : i32, i32, i32
  }
  func.func @transform_3(%arg0: i32, %arg1: i32) -> (i32, i32) {
    %c0_i32 = arith.constant 0 : i32
    %c0_i32_0 = arith.constant 0 : i32
    %c0_i32_1 = arith.constant 0 : i32
    return %c0_i32, %c0_i32_0 : i32, i32
  }
  func.func @transform_4(%arg0: i32, %arg1: i32) -> (i32, i32, i32) {
    %c0_i32 = arith.constant 0 : i32
    %c0_i32_0 = arith.constant 0 : i32
    return %arg0, %arg1, %c0_i32 : i32, i32, i32
  }
  func.func @transform_5(%arg0: i32, %arg1: i32) -> (i32, i32, i32) {
    %c0_i32 = arith.constant 0 : i32
    %c0_i32_0 = arith.constant 0 : i32
    return %arg0, %arg1, %c0_i32 : i32, i32, i32
  }
}

module attributes {stable_mosaic.version = 11 : i64} {
  func.func @kernel(%arg0: i32, %arg1: i32, %arg2: memref<2x4xf32, #tpu.memory_space<smem>>, %arg3: memref<2x4xf32, #tpu.memory_space<smem>>, %arg4: memref<1x16x16x128xbf16, #tpu.memory_space<vmem>>, %arg5: memref<1x16x16x128xbf16, #tpu.memory_space<vmem>>, %arg6: memref<4x3x3x128xf32, #tpu.memory_space<vmem>>, %arg7: memref<1x128xf32, #tpu.memory_space<vmem>>, %arg8: memref<4x128x128xbf16, #tpu.memory_space<vmem>>, %arg9: memref<1x128xf32, #tpu.memory_space<vmem>>, %arg10: memref<1x16x16x128xbf16, #tpu.memory_space<vmem>>, %arg11: memref<18x32x128xbf16, #tpu.memory_space<vmem>>, %arg12: memref<3x3x128xf32, #tpu.memory_space<vmem>>, %arg13: memref<128x128xbf16, #tpu.memory_space<vmem>>) attributes {dimension_semantics = [#tpu.dimension_semantics<parallel>, #tpu.dimension_semantics<arbitrary>], iteration_bounds = array<i64: 2, 1>, scalar_prefetch = 0 : i64, scratch_operands = 3 : i64, tpu.core_type = #tpu.core_type<tc>, window_params = [{transform_indices = @transform_0, window_bounds = array<i64: 2, 4>}, {transform_indices = @transform_1, window_bounds = array<i64: 2, 4>}, {transform_indices = @transform_2, window_bounds = array<i64: 1, 16, 16, 128>}, {transform_indices = @transform_3, window_bounds = array<i64: 1, 16, 16, 128>}, {pipeline_mode = #tpu.pipeline_mode<synchronous>, transform_indices = @transform_4, window_bounds = array<i64: 4, 3, 3, 128>}, {pipeline_mode = #tpu.pipeline_mode<synchronous>, transform_indices = @transform_5, window_bounds = array<i64: 1, 128>}, {pipeline_mode = #tpu.pipeline_mode<synchronous>, transform_indices = @transform_6, window_bounds = array<i64: 4, 128, 128>}, {pipeline_mode = #tpu.pipeline_mode<synchronous>, transform_indices = @transform_7, window_bounds = array<i64: 1, 128>}, {transform_indices = @transform_8, window_bounds = array<i64: 1, 16, 16, 128>}]} {
    %c0_i32 = arith.constant 0 : i32
    %0 = arith.cmpi eq, %arg1, %c0_i32 : i32
    %1 = arith.extui %0 : i1 to i32
    %c0_i32_0 = arith.constant 0 : i32
    %2 = arith.cmpi ne, %1, %c0_i32_0 : i32
    scf.if %2 {
      %105 = arith.index_cast %arg0 : i32 to index
      %c0_77 = arith.constant 0 : index
      %106 = memref.load %arg2[%105, %c0_77] : memref<2x4xf32, #tpu.memory_space<smem>>
      %c0_78 = arith.constant 0 : index
      %c0_79 = arith.constant 0 : index
      %c0_80 = arith.constant 0 : index
      %c0_81 = arith.constant 0 : index
      %107 = vector.load %arg6[%c0_78, %c0_79, %c0_80, %c0_81] : memref<4x3x3x128xf32, #tpu.memory_space<vmem>>, vector<1x3x3x128xf32>
      %108 = vector.shape_cast %107 : vector<1x3x3x128xf32> to vector<3x3x128xf32>
      %109 = vector.broadcast %106 : f32 to vector<3x3x128xf32>
      %110 = arith.mulf %109, %108 : vector<3x3x128xf32>
      %111 = arith.index_cast %arg0 : i32 to index
      %c0_82 = arith.constant 0 : index
      %112 = memref.load %arg3[%111, %c0_82] : memref<2x4xf32, #tpu.memory_space<smem>>
      %c0_83 = arith.constant 0 : index
      %c0_84 = arith.constant 0 : index
      %c0_85 = arith.constant 0 : index
      %113 = vector.load %arg8[%c0_83, %c0_84, %c0_85] : memref<4x128x128xbf16, #tpu.memory_space<vmem>>, vector<1x128x128xbf16>
      %114 = vector.shape_cast %113 : vector<1x128x128xbf16> to vector<128x128xbf16>
      %115 = arith.extf %114 : vector<128x128xbf16> to vector<128x128xf32>
      %116 = vector.broadcast %112 : f32 to vector<128x128xf32>
      %117 = arith.mulf %116, %115 : vector<128x128xf32>
      %118 = arith.index_cast %arg0 : i32 to index
      %c1_86 = arith.constant 1 : index
      %119 = memref.load %arg2[%118, %c1_86] : memref<2x4xf32, #tpu.memory_space<smem>>
      %c1_87 = arith.constant 1 : index
      %c0_88 = arith.constant 0 : index
      %c0_89 = arith.constant 0 : index
      %c0_90 = arith.constant 0 : index
      %120 = vector.load %arg6[%c1_87, %c0_88, %c0_89, %c0_90] : memref<4x3x3x128xf32, #tpu.memory_space<vmem>>, vector<1x3x3x128xf32>
      %121 = vector.shape_cast %120 : vector<1x3x3x128xf32> to vector<3x3x128xf32>
      %122 = vector.broadcast %119 : f32 to vector<3x3x128xf32>
      %123 = arith.mulf %122, %121 : vector<3x3x128xf32>
      %124 = arith.addf %110, %123 : vector<3x3x128xf32>
      %125 = arith.index_cast %arg0 : i32 to index
      %c1_91 = arith.constant 1 : index
      %126 = memref.load %arg3[%125, %c1_91] : memref<2x4xf32, #tpu.memory_space<smem>>
      %c1_92 = arith.constant 1 : index
      %c0_93 = arith.constant 0 : index
      %c0_94 = arith.constant 0 : index
      %127 = vector.load %arg8[%c1_92, %c0_93, %c0_94] : memref<4x128x128xbf16, #tpu.memory_space<vmem>>, vector<1x128x128xbf16>
      %128 = vector.shape_cast %127 : vector<1x128x128xbf16> to vector<128x128xbf16>
      %129 = arith.extf %128 : vector<128x128xbf16> to vector<128x128xf32>
      %130 = vector.broadcast %126 : f32 to vector<128x128xf32>
      %131 = arith.mulf %130, %129 : vector<128x128xf32>
      %132 = arith.addf %117, %131 : vector<128x128xf32>
      %133 = arith.index_cast %arg0 : i32 to index
      %c2_95 = arith.constant 2 : index
      %134 = memref.load %arg2[%133, %c2_95] : memref<2x4xf32, #tpu.memory_space<smem>>
      %c2_96 = arith.constant 2 : index
      %c0_97 = arith.constant 0 : index
      %c0_98 = arith.constant 0 : index
      %c0_99 = arith.constant 0 : index
      %135 = vector.load %arg6[%c2_96, %c0_97, %c0_98, %c0_99] : memref<4x3x3x128xf32, #tpu.memory_space<vmem>>, vector<1x3x3x128xf32>
      %136 = vector.shape_cast %135 : vector<1x3x3x128xf32> to vector<3x3x128xf32>
      %137 = vector.broadcast %134 : f32 to vector<3x3x128xf32>
      %138 = arith.mulf %137, %136 : vector<3x3x128xf32>
      %139 = arith.addf %124, %138 : vector<3x3x128xf32>
      %140 = arith.index_cast %arg0 : i32 to index
      %c2_100 = arith.constant 2 : index
      %141 = memref.load %arg3[%140, %c2_100] : memref<2x4xf32, #tpu.memory_space<smem>>
      %c2_101 = arith.constant 2 : index
      %c0_102 = arith.constant 0 : index
      %c0_103 = arith.constant 0 : index
      %142 = vector.load %arg8[%c2_101, %c0_102, %c0_103] : memref<4x128x128xbf16, #tpu.memory_space<vmem>>, vector<1x128x128xbf16>
      %143 = vector.shape_cast %142 : vector<1x128x128xbf16> to vector<128x128xbf16>
      %144 = arith.extf %143 : vector<128x128xbf16> to vector<128x128xf32>
      %145 = vector.broadcast %141 : f32 to vector<128x128xf32>
      %146 = arith.mulf %145, %144 : vector<128x128xf32>
      %147 = arith.addf %132, %146 : vector<128x128xf32>
      %148 = arith.index_cast %arg0 : i32 to index
      %c3 = arith.constant 3 : index
      %149 = memref.load %arg2[%148, %c3] : memref<2x4xf32, #tpu.memory_space<smem>>
      %c3_104 = arith.constant 3 : index
      %c0_105 = arith.constant 0 : index
      %c0_106 = arith.constant 0 : index
      %c0_107 = arith.constant 0 : index
      %150 = vector.load %arg6[%c3_104, %c0_105, %c0_106, %c0_107] : memref<4x3x3x128xf32, #tpu.memory_space<vmem>>, vector<1x3x3x128xf32>
      %151 = vector.shape_cast %150 : vector<1x3x3x128xf32> to vector<3x3x128xf32>
      %152 = vector.broadcast %149 : f32 to vector<3x3x128xf32>
      %153 = arith.mulf %152, %151 : vector<3x3x128xf32>
      %154 = arith.addf %139, %153 : vector<3x3x128xf32>
      %155 = arith.index_cast %arg0 : i32 to index
      %c3_108 = arith.constant 3 : index
      %156 = memref.load %arg3[%155, %c3_108] : memref<2x4xf32, #tpu.memory_space<smem>>
      %c3_109 = arith.constant 3 : index
      %c0_110 = arith.constant 0 : index
      %c0_111 = arith.constant 0 : index
      %157 = vector.load %arg8[%c3_109, %c0_110, %c0_111] : memref<4x128x128xbf16, #tpu.memory_space<vmem>>, vector<1x128x128xbf16>
      %158 = vector.shape_cast %157 : vector<1x128x128xbf16> to vector<128x128xbf16>
      %159 = arith.extf %158 : vector<128x128xbf16> to vector<128x128xf32>
      %160 = vector.broadcast %156 : f32 to vector<128x128xf32>
      %161 = arith.mulf %160, %159 : vector<128x128xf32>
      %162 = arith.addf %147, %161 : vector<128x128xf32>
      %c0_112 = arith.constant 0 : index
      %c0_113 = arith.constant 0 : index
      %c0_114 = arith.constant 0 : index
      %163 = vector.load %arg12[%c0_112, %c0_113, %c0_114] : memref<3x3x128xf32, #tpu.memory_space<vmem>>, vector<3x3x128xf32>
      tpu.vector_store %arg12[%c0_112, %c0_113, %c0_114], %154 {strides = array<i32>} : memref<3x3x128xf32, #tpu.memory_space<vmem>>, vector<3x3x128xf32>,
      %164 = arith.truncf %162 : vector<128x128xf32> to vector<128x128xbf16>
      %c0_115 = arith.constant 0 : index
      %c0_116 = arith.constant 0 : index
      %165 = vector.load %arg13[%c0_115, %c0_116] : memref<128x128xbf16, #tpu.memory_space<vmem>>, vector<128x128xbf16>
      tpu.vector_store %arg13[%c0_115, %c0_116], %164 {strides = array<i32>} : memref<128x128xbf16, #tpu.memory_space<vmem>>, vector<128x128xbf16>,
    } else {
    }
    %cst = arith.constant 0.000000e+00 : bf16
    %3 = vector.broadcast %cst : bf16 to vector<18x32x128xbf16>
    %c0 = arith.constant 0 : index
    %c0_1 = arith.constant 0 : index
    %c0_2 = arith.constant 0 : index
    %4 = vector.load %arg11[%c0, %c0_1, %c0_2] : memref<18x32x128xbf16, #tpu.memory_space<vmem>>, vector<18x32x128xbf16>
    tpu.vector_store %arg11[%c0, %c0_1, %c0_2], %3 {strides = array<i32>} : memref<18x32x128xbf16, #tpu.memory_space<vmem>>, vector<18x32x128xbf16>,
    %c0_3 = arith.constant 0 : index
    %c0_4 = arith.constant 0 : index
    %c0_5 = arith.constant 0 : index
    %c0_6 = arith.constant 0 : index
    %5 = vector.load %arg4[%c0_3, %c0_4, %c0_5, %c0_6] : memref<1x16x16x128xbf16, #tpu.memory_space<vmem>>, vector<1x16x16x128xbf16>
    %6 = vector.shape_cast %5 : vector<1x16x16x128xbf16> to vector<16x16x128xbf16>
    %c1 = arith.constant 1 : index
    %c8 = arith.constant 8 : index
    %c0_7 = arith.constant 0 : index
    %7 = vector.load %arg11[%c1, %c8, %c0_7] : memref<18x32x128xbf16, #tpu.memory_space<vmem>>, vector<16x16x128xbf16>
    tpu.vector_store %arg11[%c1, %c8, %c0_7], %6 {strides = array<i32>} : memref<18x32x128xbf16, #tpu.memory_space<vmem>>, vector<16x16x128xbf16>,
    %cst_8 = arith.constant 0.000000e+00 : f32
    %8 = vector.broadcast %cst_8 : f32 to vector<16x16x128xf32>
    %c0_9 = arith.constant 0 : index
    %c7 = arith.constant 7 : index
    %c0_10 = arith.constant 0 : index
    %9 = vector.load %arg11[%c0_9, %c7, %c0_10] : memref<18x32x128xbf16, #tpu.memory_space<vmem>>, vector<16x16x128xbf16>
    %10 = arith.extf %9 : vector<16x16x128xbf16> to vector<16x16x128xf32>
    %c0_11 = arith.constant 0 : index
    %c0_12 = arith.constant 0 : index
    %c0_13 = arith.constant 0 : index
    %11 = vector.load %arg12[%c0_11, %c0_12, %c0_13] : memref<3x3x128xf32, #tpu.memory_space<vmem>>, vector<1x1x128xf32>
    %12 = vector.shape_cast %11 : vector<1x1x128xf32> to vector<128xf32>
    %13 = vector.shape_cast %12 : vector<128xf32> to vector<1x1x128xf32>
    %14 = vector.broadcast %13 : vector<1x1x128xf32> to vector<16x16x128xf32>
    %15 = arith.mulf %10, %14 : vector<16x16x128xf32>
    %16 = arith.addf %8, %15 : vector<16x16x128xf32>
    %c0_14 = arith.constant 0 : index
    %c8_15 = arith.constant 8 : index
    %c0_16 = arith.constant 0 : index
    %17 = vector.load %arg11[%c0_14, %c8_15, %c0_16] : memref<18x32x128xbf16, #tpu.memory_space<vmem>>, vector<16x16x128xbf16>
    %18 = arith.extf %17 : vector<16x16x128xbf16> to vector<16x16x128xf32>
    %c0_17 = arith.constant 0 : index
    %c1_18 = arith.constant 1 : index
    %c0_19 = arith.constant 0 : index
    %19 = vector.load %arg12[%c0_17, %c1_18, %c0_19] : memref<3x3x128xf32, #tpu.memory_space<vmem>>, vector<1x1x128xf32>
    %20 = vector.shape_cast %19 : vector<1x1x128xf32> to vector<128xf32>
    %21 = vector.shape_cast %20 : vector<128xf32> to vector<1x1x128xf32>
    %22 = vector.broadcast %21 : vector<1x1x128xf32> to vector<16x16x128xf32>
    %23 = arith.mulf %18, %22 : vector<16x16x128xf32>
    %24 = arith.addf %16, %23 : vector<16x16x128xf32>
    %c0_20 = arith.constant 0 : index
    %c9 = arith.constant 9 : index
    %c0_21 = arith.constant 0 : index
    %25 = vector.load %arg11[%c0_20, %c9, %c0_21] : memref<18x32x128xbf16, #tpu.memory_space<vmem>>, vector<16x16x128xbf16>
    %26 = arith.extf %25 : vector<16x16x128xbf16> to vector<16x16x128xf32>
    %c0_22 = arith.constant 0 : index
    %c2 = arith.constant 2 : index
    %c0_23 = arith.constant 0 : index
    %27 = vector.load %arg12[%c0_22, %c2, %c0_23] : memref<3x3x128xf32, #tpu.memory_space<vmem>>, vector<1x1x128xf32>
    %28 = vector.shape_cast %27 : vector<1x1x128xf32> to vector<128xf32>
    %29 = vector.shape_cast %28 : vector<128xf32> to vector<1x1x128xf32>
    %30 = vector.broadcast %29 : vector<1x1x128xf32> to vector<16x16x128xf32>
    %31 = arith.mulf %26, %30 : vector<16x16x128xf32>
    %32 = arith.addf %24, %31 : vector<16x16x128xf32>
    %c1_24 = arith.constant 1 : index
    %c7_25 = arith.constant 7 : index
    %c0_26 = arith.constant 0 : index
    %33 = vector.load %arg11[%c1_24, %c7_25, %c0_26] : memref<18x32x128xbf16, #tpu.memory_space<vmem>>, vector<16x16x128xbf16>
    %34 = arith.extf %33 : vector<16x16x128xbf16> to vector<16x16x128xf32>
    %c1_27 = arith.constant 1 : index
    %c0_28 = arith.constant 0 : index
    %c0_29 = arith.constant 0 : index
    %35 = vector.load %arg12[%c1_27, %c0_28, %c0_29] : memref<3x3x128xf32, #tpu.memory_space<vmem>>, vector<1x1x128xf32>
    %36 = vector.shape_cast %35 : vector<1x1x128xf32> to vector<128xf32>
    %37 = vector.shape_cast %36 : vector<128xf32> to vector<1x1x128xf32>
    %38 = vector.broadcast %37 : vector<1x1x128xf32> to vector<16x16x128xf32>
    %39 = arith.mulf %34, %38 : vector<16x16x128xf32>
    %40 = arith.addf %32, %39 : vector<16x16x128xf32>
    %c1_30 = arith.constant 1 : index
    %c8_31 = arith.constant 8 : index
    %c0_32 = arith.constant 0 : index
    %41 = vector.load %arg11[%c1_30, %c8_31, %c0_32] : memref<18x32x128xbf16, #tpu.memory_space<vmem>>, vector<16x16x128xbf16>
    %42 = arith.extf %41 : vector<16x16x128xbf16> to vector<16x16x128xf32>
    %c1_33 = arith.constant 1 : index
    %c1_34 = arith.constant 1 : index
    %c0_35 = arith.constant 0 : index
    %43 = vector.load %arg12[%c1_33, %c1_34, %c0_35] : memref<3x3x128xf32, #tpu.memory_space<vmem>>, vector<1x1x128xf32>
    %44 = vector.shape_cast %43 : vector<1x1x128xf32> to vector<128xf32>
    %45 = vector.shape_cast %44 : vector<128xf32> to vector<1x1x128xf32>
    %46 = vector.broadcast %45 : vector<1x1x128xf32> to vector<16x16x128xf32>
    %47 = arith.mulf %42, %46 : vector<16x16x128xf32>
    %48 = arith.addf %40, %47 : vector<16x16x128xf32>
    %c1_36 = arith.constant 1 : index
    %c9_37 = arith.constant 9 : index
    %c0_38 = arith.constant 0 : index
    %49 = vector.load %arg11[%c1_36, %c9_37, %c0_38] : memref<18x32x128xbf16, #tpu.memory_space<vmem>>, vector<16x16x128xbf16>
    %50 = arith.extf %49 : vector<16x16x128xbf16> to vector<16x16x128xf32>
    %c1_39 = arith.constant 1 : index
    %c2_40 = arith.constant 2 : index
    %c0_41 = arith.constant 0 : index
    %51 = vector.load %arg12[%c1_39, %c2_40, %c0_41] : memref<3x3x128xf32, #tpu.memory_space<vmem>>, vector<1x1x128xf32>
    %52 = vector.shape_cast %51 : vector<1x1x128xf32> to vector<128xf32>
    %53 = vector.shape_cast %52 : vector<128xf32> to vector<1x1x128xf32>
    %54 = vector.broadcast %53 : vector<1x1x128xf32> to vector<16x16x128xf32>
    %55 = arith.mulf %50, %54 : vector<16x16x128xf32>
    %56 = arith.addf %48, %55 : vector<16x16x128xf32>
    %c2_42 = arith.constant 2 : index
    %c7_43 = arith.constant 7 : index
    %c0_44 = arith.constant 0 : index
    %57 = vector.load %arg11[%c2_42, %c7_43, %c0_44] : memref<18x32x128xbf16, #tpu.memory_space<vmem>>, vector<16x16x128xbf16>
    %58 = arith.extf %57 : vector<16x16x128xbf16> to vector<16x16x128xf32>
    %c2_45 = arith.constant 2 : index
    %c0_46 = arith.constant 0 : index
    %c0_47 = arith.constant 0 : index
    %59 = vector.load %arg12[%c2_45, %c0_46, %c0_47] : memref<3x3x128xf32, #tpu.memory_space<vmem>>, vector<1x1x128xf32>
    %60 = vector.shape_cast %59 : vector<1x1x128xf32> to vector<128xf32>
    %61 = vector.shape_cast %60 : vector<128xf32> to vector<1x1x128xf32>
    %62 = vector.broadcast %61 : vector<1x1x128xf32> to vector<16x16x128xf32>
    %63 = arith.mulf %58, %62 : vector<16x16x128xf32>
    %64 = arith.addf %56, %63 : vector<16x16x128xf32>
    %c2_48 = arith.constant 2 : index
    %c8_49 = arith.constant 8 : index
    %c0_50 = arith.constant 0 : index
    %65 = vector.load %arg11[%c2_48, %c8_49, %c0_50] : memref<18x32x128xbf16, #tpu.memory_space<vmem>>, vector<16x16x128xbf16>
    %66 = arith.extf %65 : vector<16x16x128xbf16> to vector<16x16x128xf32>
    %c2_51 = arith.constant 2 : index
    %c1_52 = arith.constant 1 : index
    %c0_53 = arith.constant 0 : index
    %67 = vector.load %arg12[%c2_51, %c1_52, %c0_53] : memref<3x3x128xf32, #tpu.memory_space<vmem>>, vector<1x1x128xf32>
    %68 = vector.shape_cast %67 : vector<1x1x128xf32> to vector<128xf32>
    %69 = vector.shape_cast %68 : vector<128xf32> to vector<1x1x128xf32>
    %70 = vector.broadcast %69 : vector<1x1x128xf32> to vector<16x16x128xf32>
    %71 = arith.mulf %66, %70 : vector<16x16x128xf32>
    %72 = arith.addf %64, %71 : vector<16x16x128xf32>
    %c2_54 = arith.constant 2 : index
    %c9_55 = arith.constant 9 : index
    %c0_56 = arith.constant 0 : index
    %73 = vector.load %arg11[%c2_54, %c9_55, %c0_56] : memref<18x32x128xbf16, #tpu.memory_space<vmem>>, vector<16x16x128xbf16>
    %74 = arith.extf %73 : vector<16x16x128xbf16> to vector<16x16x128xf32>
    %c2_57 = arith.constant 2 : index
    %c2_58 = arith.constant 2 : index
    %c0_59 = arith.constant 0 : index
    %75 = vector.load %arg12[%c2_57, %c2_58, %c0_59] : memref<3x3x128xf32, #tpu.memory_space<vmem>>, vector<1x1x128xf32>
    %76 = vector.shape_cast %75 : vector<1x1x128xf32> to vector<128xf32>
    %77 = vector.shape_cast %76 : vector<128xf32> to vector<1x1x128xf32>
    %78 = vector.broadcast %77 : vector<1x1x128xf32> to vector<16x16x128xf32>
    %79 = arith.mulf %74, %78 : vector<16x16x128xf32>
    %80 = arith.addf %72, %79 : vector<16x16x128xf32>
    %c0_60 = arith.constant 0 : index
    %c0_61 = arith.constant 0 : index
    %81 = vector.load %arg7[%c0_60, %c0_61] : memref<1x128xf32, #tpu.memory_space<vmem>>, vector<1x128xf32>
    %82 = vector.shape_cast %81 : vector<1x128xf32> to vector<1x1x128xf32>
    %83 = vector.broadcast %82 : vector<1x1x128xf32> to vector<16x16x128xf32>
    %84 = arith.addf %80, %83 : vector<16x16x128xf32>
    %cst_62 = arith.constant 0.000000e+00 : f32
    %cst_63 = arith.constant 6.000000e+00 : f32
    %85 = vector.broadcast %cst_62 : f32 to vector<16x16x128xf32>
    %86 = arith.maximumf %85, %84 : vector<16x16x128xf32>
    %87 = vector.broadcast %cst_63 : f32 to vector<16x16x128xf32>
    %88 = arith.minimumf %87, %86 : vector<16x16x128xf32>
    %89 = arith.truncf %88 : vector<16x16x128xf32> to vector<16x16x128xbf16>
    %90 = vector.shape_cast %89 : vector<16x16x128xbf16> to vector<256x128xbf16>
    %c0_64 = arith.constant 0 : index
    %c0_65 = arith.constant 0 : index
    %91 = vector.load %arg13[%c0_64, %c0_65] : memref<128x128xbf16, #tpu.memory_space<vmem>>, vector<128x128xbf16>
    %cst_66 = arith.constant dense<0.000000e+00> : vector<256x128xf32>
    %92 = tpu.matmul %90, %91, %cst_66 {dimension_numbers = #tpu.dot_dimension_numbers<[1], [0], [0], [1], [0, 0, 1, 1], [], []>} : vector<256x128xbf16>, vector<128x128xbf16>, vector<256x128xf32> -> vector<256x128xf32>
    %c0_67 = arith.constant 0 : index
    %c0_68 = arith.constant 0 : index
    %93 = vector.load %arg9[%c0_67, %c0_68] : memref<1x128xf32, #tpu.memory_space<vmem>>, vector<1x128xf32>
    %94 = vector.broadcast %93 : vector<1x128xf32> to vector<256x128xf32>
    %95 = arith.addf %92, %94 : vector<256x128xf32>
    %96 = vector.shape_cast %95 : vector<256x128xf32> to vector<16x16x128xf32>
    %c0_69 = arith.constant 0 : index
    %c0_70 = arith.constant 0 : index
    %c0_71 = arith.constant 0 : index
    %c0_72 = arith.constant 0 : index
    %97 = vector.load %arg5[%c0_69, %c0_70, %c0_71, %c0_72] : memref<1x16x16x128xbf16, #tpu.memory_space<vmem>>, vector<1x16x16x128xbf16>
    %98 = vector.shape_cast %97 : vector<1x16x16x128xbf16> to vector<16x16x128xbf16>
    %99 = arith.extf %98 : vector<16x16x128xbf16> to vector<16x16x128xf32>
    %100 = arith.addf %96, %99 : vector<16x16x128xf32>
    %101 = arith.truncf %100 : vector<16x16x128xf32> to vector<16x16x128xbf16>
    %c0_73 = arith.constant 0 : index
    %c0_74 = arith.constant 0 : index
    %c0_75 = arith.constant 0 : index
    %c0_76 = arith.constant 0 : index
    %102 = vector.load %arg10[%c0_73, %c0_74, %c0_75, %c0_76] : memref<1x16x16x128xbf16, #tpu.memory_space<vmem>>, vector<1x16x16x128xbf16>
    %103 = vector.shape_cast %102 : vector<1x16x16x128xbf16> to vector<16x16x128xbf16>
    %104 = vector.shape_cast %101 : vector<16x16x128xbf16> to vector<1x16x16x128xbf16>
    tpu.vector_store %arg10[%c0_73, %c0_74, %c0_75, %c0_76], %104 {strides = array<i32>} : memref<1x16x16x128xbf16, #tpu.memory_space<vmem>>, vector<1x16x16x128xbf16>,
    return
  }
  func.func @transform_0(%arg0: i32, %arg1: i32) -> (i32, i32) {
    %c0_i32 = arith.constant 0 : i32
    %c0_i32_0 = arith.constant 0 : i32
    %c0_i32_1 = arith.constant 0 : i32
    return %c0_i32, %c0_i32_0 : i32, i32
  }
  func.func @transform_1(%arg0: i32, %arg1: i32) -> (i32, i32) {
    %c0_i32 = arith.constant 0 : i32
    %c0_i32_0 = arith.constant 0 : i32
    %c0_i32_1 = arith.constant 0 : i32
    return %c0_i32, %c0_i32_0 : i32, i32
  }
  func.func @transform_2(%arg0: i32, %arg1: i32) -> (i32, i32, i32, i32) {
    %c0_i32 = arith.constant 0 : i32
    %c0_i32_0 = arith.constant 0 : i32
    %c0_i32_1 = arith.constant 0 : i32
    %c0_i32_2 = arith.constant 0 : i32
    return %arg0, %c0_i32, %c0_i32_0, %c0_i32_1 : i32, i32, i32, i32
  }
  func.func @transform_3(%arg0: i32, %arg1: i32) -> (i32, i32, i32, i32) {
    %c0_i32 = arith.constant 0 : i32
    %c0_i32_0 = arith.constant 0 : i32
    %c0_i32_1 = arith.constant 0 : i32
    return %arg0, %arg1, %c0_i32, %c0_i32_0 : i32, i32, i32, i32
  }
  func.func @transform_4(%arg0: i32, %arg1: i32) -> (i32, i32, i32, i32) {
    %c0_i32 = arith.constant 0 : i32
    %c0_i32_0 = arith.constant 0 : i32
    %c0_i32_1 = arith.constant 0 : i32
    %c0_i32_2 = arith.constant 0 : i32
    %c0_i32_3 = arith.constant 0 : i32
    return %c0_i32, %c0_i32_0, %c0_i32_1, %c0_i32_2 : i32, i32, i32, i32
  }
  func.func @transform_5(%arg0: i32, %arg1: i32) -> (i32, i32) {
    %c0_i32 = arith.constant 0 : i32
    %c0_i32_0 = arith.constant 0 : i32
    %c0_i32_1 = arith.constant 0 : i32
    return %c0_i32, %c0_i32_0 : i32, i32
  }
  func.func @transform_6(%arg0: i32, %arg1: i32) -> (i32, i32, i32) {
    %c0_i32 = arith.constant 0 : i32
    %c0_i32_0 = arith.constant 0 : i32
    %c0_i32_1 = arith.constant 0 : i32
    %c0_i32_2 = arith.constant 0 : i32
    return %c0_i32, %c0_i32_0, %c0_i32_1 : i32, i32, i32
  }
  func.func @transform_7(%arg0: i32, %arg1: i32) -> (i32, i32) {
    %c0_i32 = arith.constant 0 : i32
    %c0_i32_0 = arith.constant 0 : i32
    %c0_i32_1 = arith.constant 0 : i32
    return %c0_i32, %c0_i32_0 : i32, i32
  }
  func.func @transform_8(%arg0: i32, %arg1: i32) -> (i32, i32, i32, i32) {
    %c0_i32 = arith.constant 0 : i32
    %c0_i32_0 = arith.constant 0 : i32
    %c0_i32_1 = arith.constant 0 : i32
    return %arg0, %arg1, %c0_i32, %c0_i32_0 : i32, i32, i32, i32
  }
}

</mosaic_0001>

<bundles_post_ra>
// kernel: cond_conv_inverted_residual.2
= control target key start
LH: loop header
LB: loop body
LE: loop exit
PB: predicated region body
PF: predicated region fallthrough
CT: control target
= control target key end

     0   :  { %11 = vsyncpa [#allocation4], 0  ;;  %s2098_s18 = smov 0   ;;  %s2100_s19 = smov 0   ;;  %s2478_s0 = inlined_call_operand.vmem [shape: f32[2,4], index: 0, kind: input, shape index: {}]   ;;  %s2479_s1 = inlined_call_operand.vmem [shape: bf16[2,256,128], index: 1, kind: input, shape index: {}]   ;;  %s2480_s2 = inlined_call_operand.vmem [shape: bf16[4,128,128], index: 2, kind: input, shape index: {}]   ;;  %s2481_s3 = inlined_call_operand.vmem [shape: f32[1,128], index: 3, kind: input, shape index: {}]   ;;  %s2482_s4 = inlined_call_operand.vmem [shape: bf16[2,256,128], index: 4, kind: output, shape index: {0}]   ;;  %s2483_s5 = inlined_call_operand.vmem [shape: f32[2,1,128], index: 5, kind: output, shape index: {1}]  }
   0x1   :  { %s2102_s20 = smov 0  }
   0x2 LB: > { %s1391_s21 = sadd.s32 4294967295, %s2065_s20   ;;  %s29_s22 = sadd.s32 1, %s2061_s19  ;;  %s2065_s20 = sphi %s2102_s20, %s17_s20   ;;  %s2061_s19 = sphi %s2100_s19, %s2487_s19   ;;  %s2057_s18 = sphi %s2098_s18, %s2486_s18  }
   0x3   : > { %p31_p0 = scmp.ge.s32.totalorder %s29_s22, 2  ;;  %p1393_p1 = scmp.ge.s32.totalorder %s2065_s20, 1 }
   0x4   : > { %p181_p2 = scmp.lt.s32.totalorder %s2065_s20, 3  ;;  %p2123_p4 = scmp.eq.s32.totalorder %s1391_s21, 0 }
   0x5   : > { %s2489_s22 = smov (%p31_p0, %s29_s22), 0  ;;  %s194_s27 = sshll.u32 %s2478_s0, 4  ;;  %s195_s27 = int_to_ptr.vmem [resolvable:$true] %s194_s27 }
   0x6   : > { %p2119_p3 = pnand %p1393_p1, %p181_p2  ;;  %s2024_s28 = scalar_lea.vmem %s195_s27, 32 }
   0x7   : > { %p2025_p7 = scmp.ne.s32.totalorder %s195_s27, %s2024_s28  ;;  %p2032_p11 = scmp.lt.s32.totalorder %s195_s27, %s195_s27 }
   0x8   : > { %p1969_p5 = pneg %p2119_p3  ;;  %p2033_p12 = scmp.lt.s32.totalorder %s2024_s28, %s2024_s28 }
   0xa   : > { %p1970_p6 = pnand %p2123_p4, %p1969_p5  ;;  %p2034_p13 = por %p2033_p12, %p2032_p11 }
   0xc   : > { %p2026_p8 = pneg %p1970_p6 }
   0xe   : > { %p2027_p9 = pnand %p2026_p8, %p2025_p7 }
  0x10   : > { %p2028_p10 = pneg %p2027_p9 }
  0x12   : > { %p2035_p0 = pnand %p2034_p13, %p2028_p10 }
  0x14   : > { %2038 = shalt.err (!%p2035_p0)
}
  0x15   : > { %s2067_s29 = smov [#allocation3]   ;;  %226 = sbr.rel (%p2119_p3) target bundleno = 375 (0x177), region = 36 }
  0x16   : > { %1972 = dma.vmem_to_smem (!%p1970_p6), %s195_s27, 32, %s2067_s29, [#allocation4]  }
  0x1a   : > { %2052 = dma.done.wait (%p2123_p4), [#allocation4], 32  }
  0x1b   : > { %2054 = vsyncadd (%p2123_p4), [#allocation4], 4294967264 }
  0x1c   : > { %232 = sfence }
  0x1d   : > { %s2141_s30 = sshll.u32 %s2057_s18, 7  ;;  %v1830_v0 = vld [vmem:[%s2480_s2 + $0x38] sm:$0xff]   ;;  %p270_p1 = scmp.lt.s32.totalorder %s2057_s18, 1  ;;  %v1829_v8 = vld [vmem:[%s2480_s2 + $0x30] sm:$0xff]   ;;  %v1828_v16 = vld [vmem:[%s2480_s2 + $0x28] sm:$0xff]  }
  0x1e   : > { %v1838_v1 = vld [vmem:[%s2480_s2 + $0x78] sm:$0xff]   ;;  %s2154_s12 = sld [smem:[#allocation3 + %s2141_s30]]  ;;  %v1606_v3 = vunpack.c.l.bf16 %v1830_v0  ;;  %v1607_v4 = vunpack.c.h.bf16 %v1830_v0  ;;  %s351_s13 = sadd.s32 1, %s2141_s30  ;;  %v1837_v9 = vld [vmem:[%s2480_s2 + $0x70] sm:$0xff]   ;;  %v1602_v17 = vunpack.c.l.bf16 %v1829_v8  ;;  %v1603_v18 = vunpack.c.h.bf16 %v1829_v8  ;;  %v1836_v21 = vld [vmem:[%s2480_s2 + $0x68] sm:$0xff]  }
  0x1f   : > { %v1846_v2 = vld [vmem:[%s2480_s2 + $0xb8] sm:$0xff]   ;;  %v1638_v5 = vunpack.c.l.bf16 %v1838_v1  ;;  %v1639_v6 = vunpack.c.h.bf16 %v1838_v1  ;;  %s2166_s24 = sld [smem:[#allocation3 + %s351_s13]]  ;;  %s419_s25 = sadd.s32 2, %s2141_s30  ;;  %v1845_v14 = vld [vmem:[%s2480_s2 + $0xb0] sm:$0xff]   ;;  %v1634_v19 = vunpack.c.l.bf16 %v1837_v9  ;;  %v1635_v20 = vunpack.c.h.bf16 %v1837_v9  ;;  %v1844_v22 = vld [vmem:[%s2480_s2 + $0xa8] sm:$0xff]  }
  0x20   : > { %v1854_v7 = vld [vmem:[%s2480_s2 + $0xf8] sm:$0xff]   ;;  %v1670_v10 = vunpack.c.l.bf16 %v1846_v2  ;;  %v1671_v11 = vunpack.c.h.bf16 %v1846_v2  ;;  %v1853_v15 = vld [vmem:[%s2480_s2 + $0xf0] sm:$0xff]   ;;  %s2178_s8 = sld [smem:[#allocation3 + %s419_s25]]  ;;  %s487_s9 = sadd.s32 3, %s2141_s30  ;;  %v2190_v23 = vld [vmem:[%s2480_s2 + $0xe8] sm:$0xff]   ;;  %v1666_v24 = vunpack.c.l.bf16 %v1845_v14  ;;  %v1667_v25 = vunpack.c.h.bf16 %v1845_v14 }
  0x21   : > { %v1702_v12 = vunpack.c.l.bf16 %v1854_v7  ;;  %v1703_v13 = vunpack.c.h.bf16 %v1854_v7  ;;  %s2192_s30 = sld [smem:[#allocation3 + %s487_s9]]  ;;  %v1698_v26 = vunpack.c.l.bf16 %v1853_v15  ;;  %v1699_v27 = vunpack.c.h.bf16 %v1853_v15  ;;  %v2197_v28 = vld [vmem:[%s2480_s2 + $0x20] sm:$0xff]   ;;  %s2491_s18 = smov (!%p270_p1, %s2057_s18), 1 }
  0x22   : > { %v2202_v29 = vld [vmem:[%s2480_s2 + $0x60] sm:$0xff]   ;;  %v1598_v30 = vunpack.c.l.bf16 %v1828_v16  ;;  %v1599_v31 = vunpack.c.h.bf16 %v1828_v16  ;;  %v1630_v32 = vunpack.c.l.bf16 %v1836_v21  ;;  %v1631_v33 = vunpack.c.h.bf16 %v1836_v21  ;;  %s1526_s26 = sshll.u32 %s2491_s18, 7  ;;  %s294_s7 = scalar_lea.vmem %s2483_s5, %s2491_s18 }
  0x23   : > { %v1662_v34 = vunpack.c.l.bf16 %v1844_v22  ;;  %v1663_v35 = vunpack.c.h.bf16 %v1844_v22  ;;  %v1694_v36 = vunpack.c.l.bf16 %v2190_v23  ;;  %v1695_v37 = vunpack.c.h.bf16 %v2190_v23  ;;  %s2229_s28 = scalar_lea.vmem %s2479_s1, %s1526_s26  ;;  %v1843_v15 = vld [vmem:[%s2480_s2 + $0xa0] sm:$0xff]   ;;  %s2390_s29 = scalar_lea.vmem %s2482_s4, %s1526_s26 }
  0x24   : > { %v2212_v38 = vstv %s2154_s12  ;;  %v1594_v39 = vunpack.c.l.bf16 %v2197_v28  ;;  %v1595_v40 = vunpack.c.h.bf16 %v2197_v28  ;;  %v1626_v41 = vunpack.c.l.bf16 %v2202_v29  ;;  %v2008_v58 = vld [vmem:[%s2229_s28] sm:$0xff]  }
  0x25   : > { %v349_v42 = vmul.f32 %v1606_v3, %v2212_v38  ;;  %v350_v43 = vmul.f32 %v1607_v4, %v2212_v38  ;;  %v2221_v44 = vstv %s2166_s24  ;;  %v347_v45 = vmul.f32 %v1602_v17, %v2212_v38  ;;  %1917 = vmatprep.mubr.bf16.mxu0 %v2008_v58 }
  0x26   : > { %v401_v46 = vmul.f32 %v1638_v5, %v2221_v44  ;;  %v402_v47 = vmul.f32 %v1639_v6, %v2221_v44  ;;  %v2234_v48 = vstv %s2178_s8  ;;  %v348_v49 = vmul.f32 %v1603_v18, %v2212_v38 }
  0x27   : > { %v469_v50 = vmul.f32 %v1670_v10, %v2234_v48  ;;  %v470_v51 = vmul.f32 %v1671_v11, %v2234_v48  ;;  %v2240_v52 = vstv %s2192_s30  ;;  %v399_v53 = vmul.f32 %v1634_v19, %v2221_v44 }
  0x28   : > { %v417_v54 = vadd.f32 %v401_v46, %v349_v42  ;;  %v418_v55 = vadd.f32 %v402_v47, %v350_v43  ;;  %v537_v56 = vmul.f32 %v1702_v12, %v2240_v52  ;;  %v538_v57 = vmul.f32 %v1703_v13, %v2240_v52  ;;  %v1842_v46 = vld [vmem:[%s2480_s2 + $0x98] sm:$0xff]  }
  0x29   : > { %v400_v59 = vmul.f32 %v1635_v20, %v2221_v44  ;;  %v415_v60 = vadd.f32 %v399_v53, %v347_v45  ;;  %v467_v61 = vmul.f32 %v1666_v24, %v2234_v48  ;;  %v468_v62 = vmul.f32 %v1667_v25, %v2234_v48  ;;  %v1851_v20 = vld [vmem:[%s2480_s2 + $0xe0] sm:$0xff]  }
  0x2a   : > { %v485_v63 = vadd.f32 %v469_v50, %v417_v54  ;;  %v486_v0 = vadd.f32 %v470_v51, %v418_v55  ;;  %v535_v1 = vmul.f32 %v1698_v26, %v2240_v52  ;;  %v536_v2 = vmul.f32 %v1699_v27, %v2240_v52 }
  0x2b   : > { %v416_v3 = vadd.f32 %v400_v59, %v348_v49  ;;  %v483_v4 = vadd.f32 %v467_v61, %v415_v60  ;;  %v345_v5 = vmul.f32 %v1598_v30, %v2212_v38  ;;  %v346_v6 = vmul.f32 %v1599_v31, %v2212_v38  ;;  %v2016_v30 = vld [vmem:[%s2229_s28 + $0x40] sm:$0xff]  }
  0x2c   : > { %v553_v7 = vadd.f32 %v537_v56, %v485_v63  ;;  %v554_v8 = vadd.f32 %v538_v57, %v486_v0  ;;  %v397_v9 = vmul.f32 %v1630_v32, %v2221_v44  ;;  %v398_v10 = vmul.f32 %v1631_v33, %v2221_v44  ;;  %1933 = vmatprep.mubr.bf16.mxu1 %v2016_v30  ;;  %v1850_v57 = vld [vmem:[%s2480_s2 + $0xd8] sm:$0xff]   ;;  %v1832_v30 = vld [vmem:[%s2480_s2 + $0x48] sm:$0xff]  }
  0x2d   : > { %v484_v11 = vadd.f32 %v468_v62, %v416_v3  ;;  %v551_v12 = vadd.f32 %v535_v1, %v483_v4  ;;  %v465_v13 = vmul.f32 %v1662_v34, %v2234_v48  ;;  %v466_v14 = vmul.f32 %v1663_v35, %v2234_v48  ;;  %v1826_v35 = vld [vmem:[%s2480_s2 + $0x18] sm:$0xff]   ;;  %v1825_v62 = vld [vmem:[%s2480_s2 + $0x10] sm:$0xff]  }
  0x2e   : > { %v1742_v16 = vpack.c.bf16 %v554_v8, %v553_v7  ;;  %v413_v17 = vadd.f32 %v397_v9, %v345_v5  ;;  %v414_v18 = vadd.f32 %v398_v10, %v346_v6  ;;  %v533_v19 = vmul.f32 %v1694_v36, %v2240_v52  ;;  %v1833_v8 = vld [vmem:[%s2480_s2 + $0x50] sm:$0xff]  }
  0x2f   : > { %v552_v21 = vadd.f32 %v536_v2, %v484_v11  ;;  %v534_v22 = vmul.f32 %v1695_v37, %v2240_v52  ;;  %v343_v23 = vmul.f32 %v1594_v39, %v2212_v38  ;;  %v344_v24 = vmul.f32 %v1595_v40, %v2212_v38 }
  0x30   : > { %1861 = vst [vmem:[#allocation2 + $0x38] sm:$0xff] %v1742_v16   ;;  %v481_v25 = vadd.f32 %v465_v13, %v413_v17  ;;  %v482_v26 = vadd.f32 %v466_v14, %v414_v18  ;;  %v1627_v27 = vunpack.c.h.bf16 %v2202_v29  ;;  %v395_v28 = vmul.f32 %v1626_v41, %v2221_v44  ;;  %v1834_v29 = vld [vmem:[%s2480_s2 + $0x58] sm:$0xff]   ;;  %v1841_v13 = vld [vmem:[%s2480_s2 + $0x90] sm:$0xff]  }
  0x31   : > { %v1737_v31 = vpack.c.bf16 %v552_v21, %v551_v12  ;;  %v1658_v32 = vunpack.c.l.bf16 %v1843_v15  ;;  %v1659_v33 = vunpack.c.h.bf16 %v1843_v15  ;;  %v1690_v34 = vunpack.c.l.bf16 %v1851_v20  ;;  %v1849_v14 = vld [vmem:[%s2480_s2 + $0xd0] sm:$0xff]  }
  0x32   : > { %v549_v36 = vadd.f32 %v533_v19, %v481_v25  ;;  %v550_v37 = vadd.f32 %v534_v22, %v482_v26  ;;  %v396_v39 = vmul.f32 %v1627_v27, %v2221_v44  ;;  %v411_v40 = vadd.f32 %v395_v28, %v343_v23  ;;  %v1824_v28 = vld [vmem:[%s2480_s2 + $0x8] sm:$0xff]  }
  0x33   : > { %1860 = vst [vmem:[#allocation2 + $0x30] sm:$0xff] %v1737_v31   ;;  %v463_v41 = vmul.f32 %v1658_v32, %v2234_v48  ;;  %v464_v42 = vmul.f32 %v1659_v33, %v2234_v48  ;;  %v1691_v43 = vunpack.c.h.bf16 %v1851_v20  ;;  %v531_v45 = vmul.f32 %v1690_v34, %v2240_v52 }
  0x34   : > { %v1732_v47 = vpack.c.bf16 %v550_v37, %v549_v36  ;;  %v412_v49 = vadd.f32 %v396_v39, %v344_v24  ;;  %v1590_v50 = vunpack.c.l.bf16 %v1826_v35  ;;  %v1591_v51 = vunpack.c.h.bf16 %v1826_v35 }
  0x35   : > { %v479_v53 = vadd.f32 %v463_v41, %v411_v40  ;;  %v532_v54 = vmul.f32 %v1691_v43, %v2240_v52  ;;  %v1622_v55 = vunpack.c.l.bf16 %v1834_v29  ;;  %v1623_v56 = vunpack.c.h.bf16 %v1834_v29  ;;  %v1840_v29 = vld [vmem:[%s2480_s2 + $0x88] sm:$0xff]  }
  0x36   : > { %1859 = vst [vmem:[#allocation2 + $0x28] sm:$0xff] %v1732_v47   ;;  %v480_v58 = vadd.f32 %v464_v42, %v412_v49  ;;  %v341_v59 = vmul.f32 %v1590_v50, %v2212_v38  ;;  %v342_v60 = vmul.f32 %v1591_v51, %v2212_v38  ;;  %v1654_v61 = vunpack.c.l.bf16 %v1842_v46  ;;  %v1848_v51 = vld [vmem:[%s2480_s2 + $0xc8] sm:$0xff]  }
  0x37   : > { %v2000_v63 = vld [vmem:[#allocation2 + $0x38] sm:$0xff]   ;;  %v547_v0 = vadd.f32 %v531_v45, %v479_v53  ;;  %v393_v1 = vmul.f32 %v1622_v55, %v2221_v44  ;;  %v394_v2 = vmul.f32 %v1623_v56, %v2221_v44  ;;  %v1655_v3 = vunpack.c.h.bf16 %v1842_v46 }
  0x38   : > { %v548_v4 = vadd.f32 %v532_v54, %v480_v58  ;;  %v461_v5 = vmul.f32 %v1654_v61, %v2234_v48  ;;  %v1686_v6 = vunpack.c.l.bf16 %v1850_v57  ;;  %v1687_v7 = vunpack.c.h.bf16 %v1850_v57  ;;  %1901 = vmatprep.subr.bf16.mxu0 %v2000_v63  ;;  %1949 = vmatprep.subr.bf16.mxu1 %v2000_v63  ;;  %v1577_v61 = vld [vmem:[%s2480_s2] sm:$0xff]  }
  0x39   : > { %v409_v9 = vadd.f32 %v393_v1, %v341_v59  ;;  %v410_v10 = vadd.f32 %v394_v2, %v342_v60  ;;  %v462_v11 = vmul.f32 %v1655_v3, %v2234_v48  ;;  %v1586_v12 = vunpack.c.l.bf16 %v1825_v62  ;;  %1902 = vmatpush3.bf16.msra.mxu0 %v2000_v63  ;;  %1957 = vmatpush3.bf16.msra.mxu1 %v2000_v63 }
  0x3a   : > { %v2001_v15 = vld [vmem:[#allocation2 + $0x30] sm:$0xff]   ;;  %v1727_v16 = vpack.c.bf16 %v548_v4, %v547_v0  ;;  %v529_v17 = vmul.f32 %v1686_v6, %v2240_v52  ;;  %v530_v18 = vmul.f32 %v1687_v7, %v2240_v52  ;;  %v1587_v19 = vunpack.c.h.bf16 %v1825_v62  ;;  %v1831_v62 = vld [vmem:[%s2480_s2 + $0x40] sm:$0xff]  }
  0x3b   : > { %v477_v20 = vadd.f32 %v461_v5, %v409_v9  ;;  %v478_v21 = vadd.f32 %v462_v11, %v410_v10  ;;  %v339_v22 = vmul.f32 %v1586_v12, %v2212_v38  ;;  %v1618_v23 = vunpack.c.l.bf16 %v1833_v8  ;;  %1903 = vmatprep.subr.bf16.mxu0 %v2001_v15  ;;  %1950 = vmatprep.subr.bf16.mxu1 %v2001_v15  ;;  %v1839_v12 = vld [vmem:[%s2480_s2 + $0x80] sm:$0xff]  }
  0x3c   : > { %1858 = vst [vmem:[#allocation2 + $0x20] sm:$0xff] %v1727_v16   ;;  %v340_v24 = vmul.f32 %v1587_v19, %v2212_v38  ;;  %v1619_v25 = vunpack.c.h.bf16 %v1833_v8  ;;  %v1650_v26 = vunpack.c.l.bf16 %v1841_v13  ;;  %v1651_v27 = vunpack.c.h.bf16 %v1841_v13 }
  0x3d   : > { %v2002_v31 = vld [vmem:[#allocation2 + $0x28] sm:$0xff]   ;;  %v545_v32 = vadd.f32 %v529_v17, %v477_v20  ;;  %v546_v33 = vadd.f32 %v530_v18, %v478_v21  ;;  %v391_v34 = vmul.f32 %v1618_v23, %v2221_v44  ;;  %v1682_v35 = vunpack.c.l.bf16 %v1849_v14  ;;  %1904 = vmatpush3.bf16.msra.mxu0 %v2001_v15  ;;  %1958 = vmatpush3.bf16.msra.mxu1 %v2001_v15  ;;  %v1847_v17 = vld [vmem:[%s2480_s2 + $0xc0] sm:$0xff]  }
  0x3e   : > { %v392_v36 = vmul.f32 %v1619_v25, %v2221_v44  ;;  %v459_v37 = vmul.f32 %v1650_v26, %v2234_v48  ;;  %v460_v39 = vmul.f32 %v1651_v27, %v2234_v48  ;;  %v1683_v40 = vunpack.c.h.bf16 %v1849_v14  ;;  %1905 = vmatprep.subr.bf16.mxu0 %v2002_v31  ;;  %1951 = vmatprep.subr.bf16.mxu1 %v2002_v31 }
  0x3f   : > { %v1722_v41 = vpack.c.bf16 %v546_v33, %v545_v32  ;;  %v407_v42 = vadd.f32 %v391_v34, %v339_v22  ;;  %v527_v43 = vmul.f32 %v1682_v35, %v2240_v52  ;;  %v1582_v45 = vunpack.c.l.bf16 %v1824_v28 }
  0x40   : > { %v408_v46 = vadd.f32 %v392_v36, %v340_v24  ;;  %v528_v47 = vmul.f32 %v1683_v40, %v2240_v52  ;;  %v1583_v49 = vunpack.c.h.bf16 %v1824_v28  ;;  %v1614_v50 = vunpack.c.l.bf16 %v1832_v30 }
  0x41   : > { %1857 = vst [vmem:[#allocation2 + $0x18] sm:$0xff] %v1722_v41   ;;  %v475_v53 = vadd.f32 %v459_v37, %v407_v42  ;;  %v337_v54 = vmul.f32 %v1582_v45, %v2212_v38  ;;  %v1615_v55 = vunpack.c.h.bf16 %v1832_v30  ;;  %v1646_v56 = vunpack.c.l.bf16 %v1840_v29  ;;  %1906 = vmatpush3.bf16.msra.mxu0 %v2002_v31  ;;  %1959 = vmatpush3.bf16.msra.mxu1 %v2002_v31  ;;  %v2017_v45 = vld [vmem:[%s2229_s28 + $0x48] sm:$0xff]  }
  0x42   : > { %v476_v57 = vadd.f32 %v460_v39, %v408_v46  ;;  %v338_v58 = vmul.f32 %v1583_v49, %v2212_v38  ;;  %v389_v59 = vmul.f32 %v1614_v50, %v2221_v44  ;;  %v1647_v60 = vunpack.c.h.bf16 %v1840_v29  ;;  %v2010_v46 = vld [vmem:[%s2229_s28 + $0x10] sm:$0xff]   ;;  %v2011_v49 = vld [vmem:[%s2229_s28 + $0x18] sm:$0xff]  }
  0x43   : > { %v2003_v63 = vld [vmem:[#allocation2 + $0x20] sm:$0xff]   ;;  %v543_v0 = vadd.f32 %v527_v43, %v475_v53  ;;  %v390_v1 = vmul.f32 %v1615_v55, %v2221_v44  ;;  %v457_v2 = vmul.f32 %v1646_v56, %v2234_v48  ;;  %v1678_v3 = vunpack.c.l.bf16 %v1848_v51  ;;  %v2009_v43 = vld [vmem:[%s2229_s28 + $0x8] sm:$0xff]   ;;  %v2019_v50 = vld [vmem:[%s2229_s28 + $0x58] sm:$0xff]  }
  0x44   : > { %v544_v4 = vadd.f32 %v528_v47, %v476_v57  ;;  %v405_v5 = vadd.f32 %v389_v59, %v337_v54  ;;  %v458_v6 = vmul.f32 %v1647_v60, %v2234_v48  ;;  %v1679_v7 = vunpack.c.h.bf16 %v1848_v51  ;;  %1907 = vmatprep.subr.bf16.mxu0 %v2003_v63  ;;  %1952 = vmatprep.subr.bf16.mxu1 %v2003_v63  ;;  %v2018_v47 = vld [vmem:[%s2229_s28 + $0x50] sm:$0xff]   ;;  %v2012_v51 = vld [vmem:[%s2229_s28 + $0x20] sm:$0xff]   ;;  %v2013_v54 = vld [vmem:[%s2229_s28 + $0x28] sm:$0xff]  }
  0x45   : > { %v406_v8 = vadd.f32 %v390_v1, %v338_v58  ;;  %v525_v9 = vmul.f32 %v1678_v3, %v2240_v52  ;;  %v1578_v10 = vunpack.c.l.bf16 %v1577_v61  ;;  %v1579_v11 = vunpack.c.h.bf16 %v1577_v61  ;;  %1908 = vmatpush3.bf16.msra.mxu0 %v2003_v63  ;;  %1960 = vmatpush3.bf16.msra.mxu1 %v2003_v63  ;;  %v2020_v53 = vld [vmem:[%s2229_s28 + $0x60] sm:$0xff]   ;;  %v2021_v55 = vld [vmem:[%s2229_s28 + $0x68] sm:$0xff]   ;;  %v2014_v56 = vld [vmem:[%s2229_s28 + $0x30] sm:$0xff]  }
  0x46   : > { %v1717_v13 = vpack.c.bf16 %v544_v4, %v543_v0  ;;  %v473_v14 = vadd.f32 %v457_v2, %v405_v5  ;;  %v526_v15 = vmul.f32 %v1679_v7, %v2240_v52  ;;  %v1610_v16 = vunpack.c.l.bf16 %v1831_v62  ;;  %v2022_v57 = vld [vmem:[%s2229_s28 + $0x70] sm:$0xff]   ;;  %v2015_v58 = vld [vmem:[%s2229_s28 + $0x38] sm:$0xff]   ;;  %v2372_v60 = vld [vmem:[%s2481_s3] ss:$0 sm:$0xff] }
  0x47   : > { %v474_v18 = vadd.f32 %v458_v6, %v406_v8  ;;  %v335_v19 = vmul.f32 %v1578_v10, %v2212_v38  ;;  %v336_v20 = vmul.f32 %v1579_v11, %v2212_v38  ;;  %v1611_v21 = vunpack.c.h.bf16 %v1831_v62  ;;  %v2023_v59 = vld [vmem:[%s2229_s28 + $0x78] sm:$0xff]  }
  0x48   : > { %v2004_v22 = vld [vmem:[#allocation2 + $0x18] sm:$0xff]   ;;  %1856 = vst [vmem:[#allocation2 + $0x10] sm:$0xff] %v1717_v13   ;;  %v541_v23 = vadd.f32 %v525_v9, %v473_v14  ;;  %v387_v24 = vmul.f32 %v1610_v16, %v2221_v44  ;;  %v1642_v25 = vunpack.c.l.bf16 %v1839_v12  ;;  %v1643_v26 = vunpack.c.h.bf16 %v1839_v12 }
  0x49   : > { %v542_v27 = vadd.f32 %v526_v15, %v474_v18  ;;  %v388_v28 = vmul.f32 %v1611_v21, %v2221_v44  ;;  %v1674_v30 = vunpack.c.l.bf16 %v1847_v17  ;;  %v1675_v31 = vunpack.c.h.bf16 %v1847_v17  ;;  %1909 = vmatprep.subr.bf16.mxu0 %v2004_v22  ;;  %1953 = vmatprep.subr.bf16.mxu1 %v2004_v22 }
  0x4a   : > { %v403_v32 = vadd.f32 %v387_v24, %v335_v19  ;;  %v455_v33 = vmul.f32 %v1642_v25, %v2234_v48  ;;  %v456_v34 = vmul.f32 %v1643_v26, %v2234_v48  ;;  %1910 = vmatpush3.bf16.msra.mxu0 %v2004_v22  ;;  %1961 = vmatpush3.bf16.msra.mxu1 %v2004_v22 }
  0x4b   : > { %v1712_v38 = vpack.c.bf16 %v542_v27, %v541_v23  ;;  %v404_v35 = vadd.f32 %v388_v28, %v336_v20  ;;  %v523_v36 = vmul.f32 %v1674_v30, %v2240_v52  ;;  %v524_v37 = vmul.f32 %v1675_v31, %v2240_v52 }
  0x4c   : > { %v471_v39 = vadd.f32 %v455_v33, %v403_v32 }
  0x4d   : > { %1855 = vst [vmem:[#allocation2 + $0x8] sm:$0xff] %v1712_v38   ;;  %v472_v44 = vadd.f32 %v456_v34, %v404_v35 }
  0x4e   : > { %v539_v40 = vadd.f32 %v523_v36, %v471_v39 }
  0x4f   : > { %v2005_v29 = vld [vmem:[#allocation2 + $0x10] sm:$0xff]   ;;  %v540_v41 = vadd.f32 %v524_v37, %v472_v44 }
  0x50   : > { %1911 = vmatprep.subr.bf16.mxu0 %v2005_v29  ;;  %1954 = vmatprep.subr.bf16.mxu1 %v2005_v29 }
  0x51   : > { %v1707_v42 = vpack.c.bf16 %v540_v41, %v539_v40  ;;  %1912 = vmatpush3.bf16.msra.mxu0 %v2005_v29  ;;  %1962 = vmatpush3.bf16.msra.mxu1 %v2005_v29 }
  0x53   : > { %1708 = vst [vmem:[#allocation2] sm:$0xff] %v1707_v42  }
  0x54   : > { %v2006_v48 = vld [vmem:[#allocation2 + $0x8] sm:$0xff]  }
  0x55   : > { %1913 = vmatprep.subr.bf16.mxu0 %v2006_v48  ;;  %1955 = vmatprep.subr.bf16.mxu1 %v2006_v48 }
  0x56   : > { %1914 = vmatpush3.bf16.msra.mxu0 %v2006_v48  ;;  %1963 = vmatpush3.bf16.msra.mxu1 %v2006_v48 }
  0x5a   : > { %v2007_v52 = vld [vmem:[#allocation2] sm:$0xff]  }
  0x5b   : > { %1915 = vmatprep.subr.bf16.mxu0 %v2007_v52  ;;  %1956 = vmatprep.subr.bf16.mxu1 %v2007_v52 }
  0x5c   : > { %1916 = vmatpush3.bf16.msra.mxu0 %v2007_v52  ;;  %1964 = vmatpush3.bf16.msra.mxu1 %v2007_v52 }
  0x5f   : > { %1918 = vmatmul.mubr.bf16.vlgmr.msra.gmra.mxu0 %v2009_v43  ;;  %1934 = vmatmul.mubr.bf16.vlgmr.msra.gmra.mxu1 %v2017_v45 }
  0x60   : > { %1921 = vmatprep.mubr.bf16.mxu0 %v2010_v46  ;;  %1937 = vmatprep.mubr.bf16.mxu1 %v2018_v47 }
  0x67   : > { %1922 = vmatmul.mubr.bf16.gmra.mxu0 %v2011_v49  ;;  %1938 = vmatmul.mubr.bf16.gmra.mxu1 %v2019_v50 }
  0x68   : > { %1925 = vmatprep.mubr.bf16.mxu0 %v2012_v51  ;;  %1941 = vmatprep.mubr.bf16.mxu1 %v2020_v53 }
  0x6f   : > { %1926 = vmatmul.mubr.bf16.gmra.mxu0 %v2013_v54  ;;  %1942 = vmatmul.mubr.bf16.gmra.mxu1 %v2021_v55 }
  0x70   : > { %1929 = vmatprep.mubr.bf16.mxu0 %v2014_v56  ;;  %1945 = vmatprep.mubr.bf16.mxu1 %v2022_v57 }
  0x77   : > { %1930 = vmatmul.mubr.bf16.gmra.mxu0 %v2015_v58  ;;  %1946 = vmatmul.mubr.bf16.gmra.mxu1 %v2023_v59 }
 0x11f   : > { %v1919_v61 = vpop.f32.mrf.mxu0  ;;  %v1935_v62 = vpop.f32.mrf.mxu1 }
 0x120   : > { %v877_v63 = vadd.f32 %v1919_v61, %v2372_v60  ;;  %v941_v0 = vadd.f32 %v1935_v62, %v2372_v60 }
 0x121   : > { %v868_v1 = vpop.f32.mrf.mxu0  ;;  %v932_v2 = vpop.f32.mrf.mxu1 }
 0x122   : > { %v869_v3 = vadd.f32 %v2372_v60, %v868_v1  ;;  %v933_v4 = vadd.f32 %v2372_v60, %v932_v2  ;;  %v997_v5 = vmax.f32 %v877_v63, 0.0  ;;  %v1013_v7 = vmax.f32 %v941_v0, 0.0 }
 0x123   : > { %v1920_v6 = vpop.f32.mrf.mxu0  ;;  %v1936_v8 = vpop.f32.mrf.mxu1 }
 0x124   : > { %v880_v9 = vadd.f32 %v1920_v6, %v2372_v60  ;;  %v995_v10 = vmax.f32 %v869_v3, 0.0  ;;  %v1011_v12 = vmax.f32 %v933_v4, 0.0  ;;  %v944_v13 = vadd.f32 %v1936_v8, %v2372_v60 }
 0x125   : > { %v871_v11 = vpop.f32.mrf.mxu0  ;;  %v935_v14 = vpop.f32.mrf.mxu1  ;;  %v1029_v18 = vmin.f32 %v997_v5, 6.0  ;;  %v2382_v20 = vmin.f32 %v1013_v7, 6.0 }
 0x126   : > { %v998_v15 = vmax.f32 %v880_v9, 0.0  ;;  %v872_v16 = vadd.f32 %v2372_v60, %v871_v11  ;;  %v936_v17 = vadd.f32 %v2372_v60, %v935_v14  ;;  %v1014_v21 = vmax.f32 %v944_v13, 0.0 }
 0x127   : > { %v1923_v19 = vpop.f32.mrf.mxu0  ;;  %v1939_v22 = vpop.f32.mrf.mxu1  ;;  %v1027_v27 = vmin.f32 %v995_v10, 6.0  ;;  %v2392_v30 = vmin.f32 %v1011_v12, 6.0 }
 0x128   : > { %v1030_v23 = vmin.f32 %v998_v15, 6.0  ;;  %v996_v24 = vmax.f32 %v872_v16, 0.0  ;;  %v893_v25 = vadd.f32 %v1923_v19, %v2372_v60  ;;  %v1012_v26 = vmax.f32 %v936_v17, 0.0 }
 0x129   : > { %v884_v28 = vpop.f32.mrf.mxu0  ;;  %v2394_v31 = vmin.f32 %v1014_v21, 6.0  ;;  %v957_v32 = vadd.f32 %v1939_v22, %v2372_v60  ;;  %v948_v33 = vpop.f32.mrf.mxu1 }
 0x12a   : > { %v1752_v34 = vpack.c.bf16 %v1030_v23, %v1029_v18  ;;  %v1028_v38 = vmin.f32 %v996_v24, 6.0  ;;  %v1001_v35 = vmax.f32 %v893_v25, 0.0  ;;  %v885_v36 = vadd.f32 %v2372_v60, %v884_v28 }
 0x12b   : > { %v1924_v37 = vpop.f32.mrf.mxu0  ;;  %v1792_v39 = vpack.c.bf16 %v2394_v31, %v2382_v20  ;;  %v2400_v44 = vmin.f32 %v1012_v26, 6.0  ;;  %v1017_v40 = vmax.f32 %v957_v32, 0.0  ;;  %v949_v29 = vadd.f32 %v2372_v60, %v948_v33  ;;  %v1940_v41 = vpop.f32.mrf.mxu1 }
 0x12c   : > { %1862 = vst [vmem:[%s2390_s29 + $0x8] sm:$0xff] %v1752_v34   ;;  %v1059_v42 = vadd.f32 %v1028_v38, %v1027_v27  ;;  %v1747_v48 = vpack.c.bf16 %v1028_v38, %v1027_v27  ;;  %v999_v52 = vmax.f32 %v885_v36, 0.0  ;;  %v896_v43 = vadd.f32 %v1924_v37, %v2372_v60 }
 0x12d   : > { %v887_v45 = vpop.f32.mrf.mxu0  ;;  %1870 = vst [vmem:[%s2390_s29 + $0x48] sm:$0xff] %v1792_v39   ;;  %v1787_v46 = vpack.c.bf16 %v2400_v44, %v2392_v30  ;;  %v1015_v47 = vmax.f32 %v949_v29, 0.0  ;;  %v951_v49 = vpop.f32.mrf.mxu1  ;;  %v1033_v51 = vmin.f32 %v1001_v35, 6.0  ;;  %v960_v54 = vadd.f32 %v1940_v41, %v2372_v60 }
 0x12e   : > { %v1060_v50 = vadd.f32 %v1059_v42, %v1029_v18  ;;  %1748 = vst [vmem:[%s2390_s29] sm:$0xff] %v1747_v48   ;;  %v888_v53 = vadd.f32 %v2372_v60, %v887_v45  ;;  %v1031_v55 = vmin.f32 %v999_v52, 6.0  ;;  %v1002_v56 = vmax.f32 %v896_v43, 0.0 }
 0x12f   : > { %v1927_v57 = vpop.f32.mrf.mxu0  ;;  %1869 = vst [vmem:[%s2390_s29 + $0x40] sm:$0xff] %v1787_v46   ;;  %v2412_v58 = vmin.f32 %v1017_v40, 6.0  ;;  %v952_v59 = vadd.f32 %v2372_v60, %v951_v49  ;;  %v1943_v61 = vpop.f32.mrf.mxu1  ;;  %v1018_v1 = vmax.f32 %v960_v54, 0.0  ;;  %v2416_v4 = vmin.f32 %v1015_v47, 6.0 }
 0x130   : > { %v1061_v62 = vadd.f32 %v1060_v50, %v1030_v23  ;;  %v1000_v63 = vmax.f32 %v888_v53, 0.0  ;;  %v909_v0 = vadd.f32 %v1927_v57, %v2372_v60  ;;  %v1034_v2 = vmin.f32 %v1002_v56, 6.0 }
 0x131   : > { %v900_v3 = vpop.f32.mrf.mxu0  ;;  %v1016_v5 = vmax.f32 %v952_v59, 0.0  ;;  %v973_v6 = vadd.f32 %v1943_v61, %v2372_v60  ;;  %v964_v7 = vpop.f32.mrf.mxu1  ;;  %v2420_v14 = vmin.f32 %v1018_v1, 6.0 }
 0x132   : > { %v1062_v8 = vadd.f32 %v1061_v62, %v1031_v55  ;;  %v1032_v9 = vmin.f32 %v1000_v63, 6.0  ;;  %v1005_v10 = vmax.f32 %v909_v0, 0.0  ;;  %v901_v11 = vadd.f32 %v2372_v60, %v900_v3 }
 0x133   : > { %v1762_v12 = vpack.c.bf16 %v1034_v2, %v1033_v51  ;;  %v1928_v13 = vpop.f32.mrf.mxu0  ;;  %v2422_v15 = vmin.f32 %v1016_v5, 6.0  ;;  %v1021_v16 = vmax.f32 %v973_v6, 0.0  ;;  %v1944_v17 = vpop.f32.mrf.mxu1  ;;  %v1802_v25 = vpack.c.bf16 %v2420_v14, %v2412_v58 }
 0x134   : > { %v1063_v18 = vadd.f32 %v1062_v8, %v1032_v9  ;;  %v1757_v19 = vpack.c.bf16 %v1032_v9, %v1031_v55  ;;  %v1003_v21 = vmax.f32 %v901_v11, 0.0  ;;  %v1037_v22 = vmin.f32 %v1005_v10, 6.0 }
 0x135   : > { %1864 = vst [vmem:[%s2390_s29 + $0x18] sm:$0xff] %v1762_v12   ;;  %v912_v23 = vadd.f32 %v1928_v13, %v2372_v60  ;;  %v903_v24 = vpop.f32.mrf.mxu0  ;;  %v1797_v26 = vpack.c.bf16 %v2422_v15, %v2416_v4  ;;  %v967_v27 = vpop.f32.mrf.mxu1  ;;  %v2432_v33 = vmin.f32 %v1021_v16, 6.0  ;;  %v965_v34 = vadd.f32 %v2372_v60, %v964_v7  ;;  %1872 = vst [vmem:[%s2390_s29 + $0x58] sm:$0xff] %v1802_v25  }
 0x136   : > { %v1064_v28 = vadd.f32 %v1063_v18, %v1033_v51  ;;  %1863 = vst [vmem:[%s2390_s29 + $0x10] sm:$0xff] %v1757_v19   ;;  %v904_v32 = vadd.f32 %v2372_v60, %v903_v24  ;;  %v1035_v38 = vmin.f32 %v1003_v21, 6.0  ;;  %v976_v37 = vadd.f32 %v1944_v17, %v2372_v60 }
 0x137   : > { %v1006_v35 = vmax.f32 %v912_v23, 0.0  ;;  %v1931_v36 = vpop.f32.mrf.mxu0  ;;  %1871 = vst [vmem:[%s2390_s29 + $0x50] sm:$0xff] %v1797_v26   ;;  %v968_v39 = vadd.f32 %v2372_v60, %v967_v27  ;;  %v1947_v40 = vpop.f32.mrf.mxu1  ;;  %v1019_v48 = vmax.f32 %v965_v34, 0.0 }
 0x138   : > { %v1065_v29 = vadd.f32 %v1064_v28, %v1034_v2  ;;  %v1004_v41 = vmax.f32 %v904_v32, 0.0  ;;  %v925_v42 = vadd.f32 %v1931_v36, %v2372_v60  ;;  %v1022_v45 = vmax.f32 %v976_v37, 0.0 }
 0x139   : > { %v1038_v52 = vmin.f32 %v1006_v35, 6.0  ;;  %v916_v43 = vpop.f32.mrf.mxu0  ;;  %v1020_v46 = vmax.f32 %v968_v39, 0.0  ;;  %v989_v47 = vadd.f32 %v1947_v40, %v2372_v60  ;;  %v980_v49 = vpop.f32.mrf.mxu1  ;;  %v1051_v57 = vmin.f32 %v1019_v48, 6.0 }
 0x13a   : > { %v1066_v50 = vadd.f32 %v1065_v29, %v1035_v38  ;;  %v1036_v51 = vmin.f32 %v1004_v41, 6.0  ;;  %v1009_v53 = vmax.f32 %v925_v42, 0.0  ;;  %v917_v54 = vadd.f32 %v2372_v60, %v916_v43 }
 0x13b   : > { %v1772_v55 = vpack.c.bf16 %v1038_v52, %v1037_v22  ;;  %v1932_v56 = vpop.f32.mrf.mxu0  ;;  %v1054_v59 = vmin.f32 %v1022_v45, 6.0  ;;  %v1052_v61 = vmin.f32 %v1020_v46, 6.0  ;;  %v1948_v62 = vpop.f32.mrf.mxu1  ;;  %v1025_v7 = vmax.f32 %v989_v47, 0.0 }
 0x13c   : > { %v1067_v63 = vadd.f32 %v1066_v50, %v1036_v51  ;;  %v1767_v0 = vpack.c.bf16 %v1036_v51, %v1035_v38  ;;  %v1007_v1 = vmax.f32 %v917_v54, 0.0  ;;  %v928_v2 = vadd.f32 %v1932_v56, %v2372_v60 }
 0x13d   : > { %1866 = vst [vmem:[%s2390_s29 + $0x28] sm:$0xff] %v1772_v55   ;;  %v919_v3 = vpop.f32.mrf.mxu0  ;;  %v1812_v5 = vpack.c.bf16 %v1054_v59, %v2432_v33  ;;  %v1807_v6 = vpack.c.bf16 %v1052_v61, %v1051_v57  ;;  %v983_v8 = vpop.f32.mrf.mxu1  ;;  %v981_v11 = vadd.f32 %v2372_v60, %v980_v49  ;;  %v1041_v12 = vmin.f32 %v1009_v53, 6.0 }
 0x13e   : > { %v1068_v9 = vadd.f32 %v1067_v63, %v1037_v22  ;;  %1865 = vst [vmem:[%s2390_s29 + $0x20] sm:$0xff] %v1767_v0   ;;  %v920_v10 = vadd.f32 %v2372_v60, %v919_v3  ;;  %v1010_v13 = vmax.f32 %v928_v2, 0.0  ;;  %v992_v16 = vadd.f32 %v1948_v62, %v2372_v60 }
 0x13f   : > { %1874 = vst [vmem:[%s2390_s29 + $0x68] sm:$0xff] %v1812_v5   ;;  %1873 = vst [vmem:[%s2390_s29 + $0x60] sm:$0xff] %v1807_v6   ;;  %v984_v17 = vadd.f32 %v2372_v60, %v983_v8  ;;  %v1039_v18 = vmin.f32 %v1007_v1, 6.0  ;;  %v1023_v23 = vmax.f32 %v981_v11, 0.0  ;;  %v1057_v22 = vmin.f32 %v1025_v7, 6.0 }
 0x140   : > { %v1069_v19 = vadd.f32 %v1068_v9, %v1038_v52  ;;  %v1008_v21 = vmax.f32 %v920_v10, 0.0  ;;  %v1042_v24 = vmin.f32 %v1010_v13, 6.0  ;;  %v1026_v25 = vmax.f32 %v992_v16, 0.0 }
 0x141   : > { %v1024_v26 = vmax.f32 %v984_v17, 0.0  ;;  %v1055_v32 = vmin.f32 %v1023_v23, 6.0 }
 0x142   : > { %v1070_v27 = vadd.f32 %v1069_v19, %v1039_v18  ;;  %v1040_v28 = vmin.f32 %v1008_v21, 6.0  ;;  %v1782_v34 = vpack.c.bf16 %v1042_v24, %v1041_v12  ;;  %v1058_v38 = vmin.f32 %v1026_v25, 6.0 }
 0x143   : > { %v1056_v35 = vmin.f32 %v1024_v26, 6.0 }
 0x144   : > { %v1071_v36 = vadd.f32 %v1070_v27, %v1040_v28  ;;  %v1777_v60 = vpack.c.bf16 %v1040_v28, %v1039_v18  ;;  %1868 = vst [vmem:[%s2390_s29 + $0x38] sm:$0xff] %v1782_v34   ;;  %v1822_v37 = vpack.c.bf16 %v1058_v38, %v1057_v22 }
 0x145   : > { %v1817_v39 = vpack.c.bf16 %v1056_v35, %v1055_v32 }
 0x146   : > { %v1072_v40 = vadd.f32 %v1071_v36, %v1041_v12  ;;  %1867 = vst [vmem:[%s2390_s29 + $0x30] sm:$0xff] %v1777_v60   ;;  %1876 = vst [vmem:[%s2390_s29 + $0x78] sm:$0xff] %v1822_v37  }
 0x147   : > { %1875 = vst [vmem:[%s2390_s29 + $0x70] sm:$0xff] %v1817_v39  }
 0x148   : > { %v1073_v29 = vadd.f32 %v1072_v40, %v1042_v24 }
 0x14a   : > { %v1074_v41 = vadd.f32 %v1073_v29, %v2392_v30 }
 0x14c   : > { %v1075_v42 = vadd.f32 %v1074_v41, %v2400_v44 }
 0x14e   : > { %v1076_v48 = vadd.f32 %v1075_v42, %v2382_v20 }
 0x150   : > { %v1077_v52 = vadd.f32 %v1076_v48, %v2394_v31 }
 0x152   : > { %v1078_v43 = vadd.f32 %v1077_v52, %v2416_v4 }
 0x154   : > { %v1079_v45 = vadd.f32 %v1078_v43, %v2422_v15 }
 0x156   : > { %v1080_v46 = vadd.f32 %v1079_v45, %v2412_v58 }
 0x158   : > { %v1081_v47 = vadd.f32 %v1080_v46, %v2420_v14 }
 0x15a   : > { %v1082_v49 = vadd.f32 %v1081_v47, %v1051_v57 }
 0x15c   : > { %v1083_v50 = vadd.f32 %v1082_v49, %v1052_v61 }
 0x15e   : > { %v1084_v51 = vadd.f32 %v1083_v50, %v2432_v33 }
 0x160   : > { %v1085_v30 = vadd.f32 %v1084_v51, %v1054_v59 }
 0x162   : > { %v1086_v53 = vadd.f32 %v1085_v30, %v1055_v32 }
 0x164   : > { %v1087_v44 = vadd.f32 %v1086_v53, %v1056_v35 }
 0x166   : > { %v1088_v54 = vadd.f32 %v1087_v44, %v1057_v22 }
 0x168   : > { %v1089_v20 = vadd.f32 %v1088_v54, %v1058_v38 }
 0x16a   : > { %v1090_v55 = vrot.slane %v1089_v20, 4 }
 0x16c   : > { %v1091_v31 = vadd.f32 %v1090_v55, %v1089_v20 }
 0x16e   : > { %v1092_v56 = vrot.slane %v1091_v31, 2 }
 0x170   : > { %v1093_v4 = vadd.f32 %v1092_v56, %v1091_v31 }
 0x172   : > { %v1094_v62 = vrot.slane %v1093_v4, 1 }
 0x174   : > { %v1095_v58 = vadd.f32 %v1094_v62, %v1093_v4 }
 0x176   : > { %1096 = vst [vmem:[%s294_s7] sm:$0x1] %v1095_v58 }
 0x177 PF: > { %s17_s20 = sadd.s32 1, %s2065_s20   ;;  %s2486_s18 = smov %s2061_s19 }
 0x178   : > { %p14_p2 = scmp.ge.s32.totalorder %s17_s20, 4   ;;  %s2487_s19 = smov %s2489_s22 }
 0x17a   :  { %16 = sbr.rel (!%p14_p2) target bundleno = 2 (0x2), region = 90 }
 0x17f   :  { %1305 = vsyncpa [#allocation4], 1 }
 0x180   :  { %1307 = vsyncpa [#allocation4 + $0x1], 1 }

// kernel: cond_conv_inverted_residual.3
= control target key start
LH: loop header
LB: loop body
LE: loop exit
PB: predicated region body
PF: predicated region fallthrough
CT: control target
= control target key end

     0   :  { %13 = vsyncpa [#allocation6], 0  ;;  %s6247_s0 = inlined_call_operand.vmem [shape: f32[2,4], index: 0, kind: input, shape index: {}]   ;;  %s6248_s1 = inlined_call_operand.vmem [shape: f32[2,4], index: 1, kind: input, shape index: {}]   ;;  %s6249_s2 = inlined_call_operand.vmem [shape: bf16[2,16,16,128], index: 2, kind: input, shape index: {}]   ;;  %s6250_s3 = inlined_call_operand.vmem [shape: bf16[2,16,16,128], index: 3, kind: input, shape index: {}]   ;;  %s6251_s4 = inlined_call_operand.vmem [shape: f32[4,3,3,128], index: 4, kind: input, shape index: {}]   ;;  %s6252_s5 = inlined_call_operand.vmem [shape: f32[1,128], index: 5, kind: input, shape index: {}]   ;;  %s6253_s6 = inlined_call_operand.vmem [shape: bf16[4,128,128], index: 6, kind: input, shape index: {}]   ;;  %s6254_s7 = inlined_call_operand.vmem [shape: f32[1,128], index: 7, kind: input, shape index: {}]   ;;  %s6255_s8 = inlined_call_operand.vmem [shape: bf16[2,16,16,128], index: 8, kind: output, shape index: {}]  }
   0x1   :  { %14 = vsyncpa [#allocation8], 0  ;;  %s5028_s27 = smov 0   ;;  %s5030_s28 = smov 0  }
   0x2   :  { %s5032_s29 = smov 0  }
   0x3 LB: > { %s4173_s30 = sadd.s32 4294967295, %s4978_s29   ;;  %s32_s9 = sadd.s32 1, %s4974_s28  ;;  %s4978_s29 = sphi %s5032_s29, %s20_s29   ;;  %s4974_s28 = sphi %s5030_s28, %s6265_s28   ;;  %s4970_s27 = sphi %s5028_s27, %s6264_s27  }
   0x4   : > { %p34_p0 = scmp.ge.s32.totalorder %s32_s9, 2  ;;  %p4175_p1 = scmp.ge.s32.totalorder %s4978_s29, 1 }
   0x5   : > { %p245_p2 = scmp.lt.s32.totalorder %s4978_s29, 3  ;;  %p5053_p4 = scmp.eq.s32.totalorder %s4173_s30, 0 }
   0x6   : > { %s6267_s9 = smov (%p34_p0, %s32_s9), 0  ;;  %s258_s14 = sshll.u32 %s6247_s0, 4  ;;  %s259_s14 = int_to_ptr.vmem [resolvable:$true] %s258_s14 }
   0x7   : > { %p5049_p3 = pnand %p4175_p1, %p245_p2  ;;  %s269_s17 = sshll.u32 %s6248_s1, 4  ;;  %s270_s17 = int_to_ptr.vmem [resolvable:$true] %s269_s17 }
   0x8   : > { %s6260_s11 = scalar_select %p5053_p4, 1, 0 }
   0x9   : > { %s6259_s10 = scalar_select %p5049_p3, 1, 0 }
   0xa   : > { %p4842_p5 = pneg %p5049_p3  ;;  %s4918_s19 = scalar_lea.vmem %s259_s14, 32 }
   0xb   : > { %p4919_p7 = scmp.ne.s32.totalorder %s259_s14, %s4918_s19  ;;  %p4926_p11 = scmp.lt.s32.totalorder %s259_s14, %s259_s14 }
   0xc   : > { %p5067_p6 = pnand %p5053_p4, %p4842_p5  ;;  %p4927_p12 = scmp.lt.s32.totalorder %s4918_s19, %s4918_s19 }
   0xe   : > { %p4920_p8 = pneg %p5067_p6  ;;  %p4928_p13 = por %p4927_p12, %p4926_p11 }
  0x10   : > { %p4921_p9 = pnand %p4920_p8, %p4919_p7 }
  0x12   : > { %p4922_p10 = pneg %p4921_p9 }
  0x14   : > { %p4929_p0 = pnand %p4928_p13, %p4922_p10 }
  0x16   : > { %4932 = shalt.err (!%p4929_p0)
}
  0x17   : > { %s4980_s20 = smov [#allocation5]   ;;  %s4933_s21 = scalar_lea.vmem %s270_s17, 32 }
  0x18   : > { %4845 = dma.vmem_to_smem (!%p5067_p6), %s259_s14, 32, %s4980_s20, [#allocation6]  }
  0x19   : > { %p4934_p1 = scmp.ne.s32.totalorder %s270_s17, %s4933_s21  ;;  %p4941_p4 = scmp.lt.s32.totalorder %s270_s17, %s270_s17 }
  0x1a   : > { %p4942_p3 = scmp.lt.s32.totalorder %s4933_s21, %s4933_s21 }
  0x1b   : > { %p4936_p2 = pnand %p4934_p1, %p4920_p8 }
  0x1c   : > { %p4943_p7 = por %p4942_p3, %p4941_p4 }
  0x1d   : > { %p4937_p5 = pneg %p4936_p2 }
  0x1f   : > { %p4944_p9 = pnand %p4943_p7, %p4937_p5 }
  0x21   : > { %4947 = shalt.err (!%p4944_p9)
}
  0x22   : > { %s4981_s22 = smov [#allocation7]   ;;  %p6262_p10 = scmp.ne.s32.totalorder %s6259_s10, 0 }
  0x23   : > { %4848 = dma.vmem_to_smem (!%p5067_p6), %s270_s17, 32, %s4981_s22, [#allocation8]  }
  0x24   : > { %316 = sbr.rel (%p6262_p10) target bundleno = 780 (0x30c), region = 52  ;;  %p6263_p11 = scmp.ne.s32.totalorder (!%p6262_p10), %s6260_s11, 0 }
  0x29   : > { %4961 = dma.done.wait (%p6263_p11), [#allocation6], 32  }
  0x2a   : > { %4963 = vsyncadd (%p6263_p11), [#allocation6], 4294967264 }
  0x2b   : > { %4965 = dma.done.wait (%p6263_p11), [#allocation8], 32  }
  0x2c   : > { %4967 = vsyncadd (%p6263_p11), [#allocation8], 4294967264 }
  0x2d   : > { %326 = sfence }
  0x2e   : > { %s5088_s23 = sshll.u32 %s4970_s27, 7  ;;  %v4684_v0 = vld [vmem:[%s6253_s6 + $0x38] sm:$0xff]   ;;  %v404_v2 = vld [vmem:[%s6251_s4] sm:$0x7]  ;;  %v405_v7 = vld [vmem:[%s6251_s4 + $0x4] sm:$0x7] }
  0x2f   : > { %s5091_s24 = sld [smem:[#allocation5 + %s5088_s23]]  ;;  %s461_s30 = sadd.s32 1, %s5088_s23  ;;  %v4692_v1 = vld [vmem:[%s6253_s6 + $0x78] sm:$0xff]   ;;  %v4396_v3 = vunpack.c.l.bf16 %v4684_v0  ;;  %v4397_v4 = vunpack.c.h.bf16 %v4684_v0  ;;  %v406_v8 = vld [vmem:[%s6251_s4 + $0x8] sm:$0x7]  ;;  %v4683_v13 = vld [vmem:[%s6253_s6 + $0x30] sm:$0xff]  }
  0x30   : > { %s5098_s10 = sld [smem:[#allocation7 + %s5088_s23]]  ;;  %s541_s14 = sadd.s32 2, %s5088_s23  ;;  %v5114_v5 = vld [vmem:[%s6253_s6 + $0xb8] sm:$0xff]   ;;  %v4428_v9 = vunpack.c.l.bf16 %v4692_v1  ;;  %v4429_v10 = vunpack.c.h.bf16 %v4692_v1  ;;  %v4189_v14 = vld [vmem:[%s6251_s4 + $0xc] sm:$0x7]  ;;  %v4392_v17 = vunpack.c.l.bf16 %v4683_v13  ;;  %v4393_v18 = vunpack.c.h.bf16 %v4683_v13  ;;  %v4691_v19 = vld [vmem:[%s6253_s6 + $0x70] sm:$0xff]  }
  0x31   : > { %s5103_s13 = sld [smem:[#allocation5 + %s461_s30]]  ;;  %s621_s20 = sadd.s32 3, %s5088_s23  ;;  %v5120_v6 = vld [vmem:[%s6253_s6 + $0xf8] sm:$0xff]   ;;  %v4460_v11 = vunpack.c.l.bf16 %v5114_v5  ;;  %v4461_v12 = vunpack.c.h.bf16 %v5114_v5  ;;  %v5148_v20 = vld [vmem:[%s6253_s6 + $0xb0] sm:$0xff]   ;;  %v4424_v24 = vunpack.c.l.bf16 %v4691_v19  ;;  %v4425_v25 = vunpack.c.h.bf16 %v4691_v19  ;;  %v4210_v41 = vld [vmem:[%s6251_s4 + $0x20] sm:$0x7] }
  0x32   : > { %s5109_s17 = sld [smem:[#allocation7 + %s461_s30]]  ;;  %v4492_v15 = vunpack.c.l.bf16 %v5120_v6  ;;  %v4493_v16 = vunpack.c.h.bf16 %v5120_v6  ;;  %v4190_v22 = vld [vmem:[%s6251_s4 + $0x10] sm:$0x7]  ;;  %v4191_v23 = vld [vmem:[%s6251_s4 + $0x14] sm:$0x7]  ;;  %v4456_v26 = vunpack.c.l.bf16 %v5148_v20  ;;  %v4690_v19 = vld [vmem:[%s6253_s6 + $0x68] sm:$0xff]  }
  0x33   : > { %s5128_s30 = sld [smem:[#allocation5 + %s541_s14]]  ;;  %v4208_v34 = vld [vmem:[%s6251_s4 + $0x18] sm:$0x7]  ;;  %v4209_v40 = vld [vmem:[%s6251_s4 + $0x1c] sm:$0x7]  ;;  %p370_p3 = scmp.lt.s32.totalorder %s4970_s27, 1 }
  0x34   : > { %s5138_s19 = sld [smem:[#allocation7 + %s541_s14]]  ;;  %v4227_v54 = vld [vmem:[%s6251_s4 + $0x24] sm:$0x7]  ;;  %v4228_v55 = vld [vmem:[%s6251_s4 + $0x28] sm:$0x7]  ;;  %vm1187_vm0 = vcmask 1046528  }
  0x35   : > { %v407_v21 = vstv %s5091_s24  ;;  %s5157_s15 = sld [smem:[#allocation5 + %s621_s20]]  ;;  %v4229_v56 = vld [vmem:[%s6251_s4 + $0x2c] sm:$0x7]  ;;  %s6269_s27 = smov (!%p370_p3, %s4970_s27), 1  ;;  %vm1465_vm1 = vcmask 1045504  }
  0x36   : > { %v408_v27 = vmul.f32 %v407_v21, %v404_v2  ;;  %v409_v28 = vmul.f32 %v407_v21, %v405_v7  ;;  %v410_v29 = vmul.f32 %v407_v21, %v406_v8  ;;  %v5161_v30 = vstv %s5098_s10  ;;  %s5163_s24 = sld [smem:[#allocation7 + %s621_s20]]  ;;  %s5315_s16 = sshll.u32 %s6269_s27, 7 }
  0x37   : > { %v459_v31 = vmul.f32 %v4396_v3, %v5161_v30  ;;  %v460_v32 = vmul.f32 %v4397_v4, %v5161_v30  ;;  %v467_v33 = vstv %s5103_s13  ;;  %v457_v35 = vmul.f32 %v4392_v17, %v5161_v30  ;;  %s5335_s25 = scalar_lea.vmem %s6249_s2, %s5315_s16  ;;  %s6148_s10 = scalar_lea.vmem %s6250_s3, %s5315_s16 }
  0x38   : > { %v468_v36 = vmul.f32 %v4189_v14, %v467_v33  ;;  %v469_v37 = vmul.f32 %v4190_v22, %v467_v33  ;;  %v470_v38 = vmul.f32 %v4191_v23, %v467_v33  ;;  %v5173_v39 = vstv %s5109_s17  ;;  %v4682_v14 = vld [vmem:[%s6253_s6 + $0x28] sm:$0xff]  }
  0x39   : > { %v523_v42 = vmul.f32 %v4428_v9, %v5173_v39  ;;  %v524_v43 = vmul.f32 %v4429_v10, %v5173_v39  ;;  %v547_v44 = vstv %s5128_s30  ;;  %v458_v45 = vmul.f32 %v4393_v18, %v5161_v30  ;;  %v4707_v9 = vld [vmem:[%s6253_s6 + $0xf0] sm:$0xff]  }
  0x3a   : > { %v471_v46 = vadd.f32 %v468_v36, %v408_v27  ;;  %v472_v47 = vadd.f32 %v469_v37, %v409_v28  ;;  %v473_v48 = vadd.f32 %v470_v38, %v410_v29  ;;  %v548_v49 = vmul.f32 %v4208_v34, %v547_v44 }
  0x3b   : > { %v539_v50 = vadd.f32 %v523_v42, %v459_v31  ;;  %v540_v51 = vadd.f32 %v524_v43, %v460_v32  ;;  %v549_v52 = vmul.f32 %v4209_v40, %v547_v44  ;;  %v550_v53 = vmul.f32 %v4210_v41, %v547_v44  ;;  %v4698_v31 = vld [vmem:[%s6253_s6 + $0xa8] sm:$0xff]   ;;  %v4681_v40 = vld [vmem:[%s6253_s6 + $0x20] sm:$0xff]  }
  0x3c   : > { %v551_v57 = vadd.f32 %v548_v49, %v471_v46  ;;  %v5195_v58 = vstv %s5138_s19  ;;  %v627_v59 = vstv %s5157_s15  ;;  %v5199_v60 = vstv %s5163_s24  ;;  %v4689_v49 = vld [vmem:[%s6253_s6 + $0x60] sm:$0xff]  }
  0x3d   : > { %v552_v61 = vadd.f32 %v549_v52, %v472_v47  ;;  %v553_v62 = vadd.f32 %v550_v53, %v473_v48  ;;  %v603_v63 = vmul.f32 %v4460_v11, %v5195_v58  ;;  %v604_v0 = vmul.f32 %v4461_v12, %v5195_v58 }
  0x3e   : > { %v628_v1 = vmul.f32 %v4227_v54, %v627_v59  ;;  %v629_v2 = vmul.f32 %v4228_v55, %v627_v59  ;;  %v630_v3 = vmul.f32 %v4229_v56, %v627_v59  ;;  %v683_v4 = vmul.f32 %v4492_v15, %v5199_v60  ;;  %v4697_v54 = vld [vmem:[%s6253_s6 + $0xa0] sm:$0xff]  }
  0x3f   : > { %v619_v5 = vadd.f32 %v603_v63, %v539_v50  ;;  %v620_v6 = vadd.f32 %v604_v0, %v540_v51  ;;  %v684_v7 = vmul.f32 %v4493_v16, %v5199_v60  ;;  %v521_v8 = vmul.f32 %v4424_v24, %v5173_v39 }
  0x40   : > { %v631_v10 = vadd.f32 %v628_v1, %v551_v57  ;;  %v632_v13 = vadd.f32 %v629_v2, %v552_v61  ;;  %v633_v11 = vadd.f32 %v630_v3, %v553_v62  ;;  %v522_v12 = vmul.f32 %v4425_v25, %v5173_v39  ;;  %v4705_v61 = vld [vmem:[%s6253_s6 + $0xe0] sm:$0xff]  }
  0x41   : > { %v699_v15 = vadd.f32 %v683_v4, %v619_v5  ;;  %v700_v17 = vadd.f32 %v684_v7, %v620_v6  ;;  %v537_v18 = vadd.f32 %v521_v8, %v457_v35  ;;  %v4457_v16 = vunpack.c.h.bf16 %v5148_v20  ;;  %v4706_v20 = vld [vmem:[%s6253_s6 + $0xe8] sm:$0xff]   ;;  %v4680_v6 = vld [vmem:[%s6253_s6 + $0x18] sm:$0xff]  }
  0x42   : > { %701 = vst [vmem:[#allocation3] sm:$0x7] %v631_v10  ;;  %702 = vst [vmem:[#allocation3 + $0x4] sm:$0x7] %v632_v13  ;;  %v538_v21 = vadd.f32 %v522_v12, %v458_v45  ;;  %v601_v22 = vmul.f32 %v4456_v26, %v5195_v58  ;;  %v4488_v23 = vunpack.c.l.bf16 %v4707_v9  ;;  %v4489_v24 = vunpack.c.h.bf16 %v4707_v9  ;;  %v4688_v7 = vld [vmem:[%s6253_s6 + $0x58] sm:$0xff]  }
  0x43   : > { %703 = vst [vmem:[#allocation3 + $0x8] sm:$0x7] %v633_v11  ;;  %v4532_v25 = vpack.c.bf16 %v700_v17, %v699_v15  ;;  %v602_v27 = vmul.f32 %v4457_v16, %v5195_v58  ;;  %v4388_v28 = vunpack.c.l.bf16 %v4682_v14  ;;  %v4389_v29 = vunpack.c.h.bf16 %v4682_v14 }
  0x44   : > { %v617_v32 = vadd.f32 %v601_v22, %v537_v18  ;;  %v681_v33 = vmul.f32 %v4488_v23, %v5199_v60  ;;  %v682_v34 = vmul.f32 %v4489_v24, %v5199_v60  ;;  %v4420_v35 = vunpack.c.l.bf16 %v4690_v19  ;;  %v4696_v22 = vld [vmem:[%s6253_s6 + $0x98] sm:$0xff]  }
  0x45   : > { %4715 = vst [vmem:[#allocation4 + $0x38] sm:$0xff] %v4532_v25   ;;  %v618_v26 = vadd.f32 %v602_v27, %v538_v21  ;;  %v455_v36 = vmul.f32 %v4388_v28, %v5161_v30  ;;  %v456_v37 = vmul.f32 %v4389_v29, %v5161_v30  ;;  %v4421_v38 = vunpack.c.h.bf16 %v4690_v19  ;;  %v4704_v28 = vld [vmem:[%s6253_s6 + $0xd8] sm:$0xff]  }
  0x46   : > { %v697_v41 = vadd.f32 %v681_v33, %v617_v32  ;;  %v519_v42 = vmul.f32 %v4420_v35, %v5173_v39  ;;  %v4452_v43 = vunpack.c.l.bf16 %v4698_v31  ;;  %v4453_v44 = vunpack.c.h.bf16 %v4698_v31 }
  0x47   : > { %v698_v45 = vadd.f32 %v682_v34, %v618_v26  ;;  %v520_v46 = vmul.f32 %v4421_v38, %v5173_v39  ;;  %v4484_v47 = vunpack.c.l.bf16 %v4706_v20  ;;  %v4485_v48 = vunpack.c.h.bf16 %v4706_v20 }
  0x48   : > { %v535_v50 = vadd.f32 %v519_v42, %v455_v36  ;;  %v599_v51 = vmul.f32 %v4452_v43, %v5195_v58  ;;  %v600_v52 = vmul.f32 %v4453_v44, %v5195_v58  ;;  %v4384_v53 = vunpack.c.l.bf16 %v4681_v40  ;;  %v4679_v36 = vld [vmem:[%s6253_s6 + $0x10] sm:$0xff]  }
  0x49   : > { %v4527_v55 = vpack.c.bf16 %v698_v45, %v697_v41  ;;  %v536_v56 = vadd.f32 %v520_v46, %v456_v37  ;;  %v679_v57 = vmul.f32 %v4484_v47, %v5199_v60  ;;  %v680_v59 = vmul.f32 %v4485_v48, %v5199_v60  ;;  %v4687_v47 = vld [vmem:[%s6253_s6 + $0x50] sm:$0xff]  }
  0x4a   : > { %v615_v62 = vadd.f32 %v599_v51, %v535_v50  ;;  %v4385_v63 = vunpack.c.h.bf16 %v4681_v40  ;;  %v453_v0 = vmul.f32 %v4384_v53, %v5161_v30  ;;  %v4416_v1 = vunpack.c.l.bf16 %v4689_v49 }
  0x4b   : > { %4714 = vst [vmem:[#allocation4 + $0x30] sm:$0xff] %v4527_v55   ;;  %v616_v2 = vadd.f32 %v600_v52, %v536_v56  ;;  %v4417_v3 = vunpack.c.h.bf16 %v4689_v49  ;;  %v4448_v4 = vunpack.c.l.bf16 %v4697_v54  ;;  %v4449_v5 = vunpack.c.h.bf16 %v4697_v54  ;;  %v4695_v52 = vld [vmem:[%s6253_s6 + $0x90] sm:$0xff]  }
  0x4c   : > { %v4880_v8 = vld [vmem:[#allocation4 + $0x38] sm:$0xff]   ;;  %v695_v9 = vadd.f32 %v679_v57, %v615_v62  ;;  %v454_v10 = vmul.f32 %v4385_v63, %v5161_v30  ;;  %v517_v13 = vmul.f32 %v4416_v1, %v5173_v39  ;;  %v4480_v11 = vunpack.c.l.bf16 %v4705_v61  ;;  %v4703_v57 = vld [vmem:[%s6253_s6 + $0xd0] sm:$0xff]  }
  0x4d   : > { %v696_v12 = vadd.f32 %v680_v59, %v616_v2  ;;  %v518_v14 = vmul.f32 %v4417_v3, %v5173_v39  ;;  %v597_v15 = vmul.f32 %v4448_v4, %v5195_v58  ;;  %v598_v17 = vmul.f32 %v4449_v5, %v5195_v58  ;;  %4770 = vmatprep.subr.bf16.mxu0 %v4880_v8  ;;  %v4686_v5 = vld [vmem:[%s6253_s6 + $0x48] sm:$0xff]  }
  0x4e   : > { %4818 = vmatprep.subr.bf16.mxu1 %v4880_v8  ;;  %v533_v18 = vadd.f32 %v517_v13, %v453_v0  ;;  %v4481_v16 = vunpack.c.h.bf16 %v4705_v61  ;;  %v677_v19 = vmul.f32 %v4480_v11, %v5199_v60  ;;  %v4380_v21 = vunpack.c.l.bf16 %v4680_v6  ;;  %4771 = vmatpush3.bf16.msra.mxu0 %v4880_v8  ;;  %v4678_v0 = vld [vmem:[%s6253_s6 + $0x8] sm:$0xff]  }
  0x4f   : > { %4826 = vmatpush3.bf16.msra.mxu1 %v4880_v8  ;;  %v4522_v23 = vpack.c.bf16 %v696_v12, %v695_v9  ;;  %v534_v24 = vadd.f32 %v518_v14, %v454_v10  ;;  %v4381_v25 = vunpack.c.h.bf16 %v4680_v6  ;;  %v4412_v27 = vunpack.c.l.bf16 %v4688_v7 }
  0x50   : > { %v613_v29 = vadd.f32 %v597_v15, %v533_v18  ;;  %v678_v31 = vmul.f32 %v4481_v16, %v5199_v60  ;;  %v451_v32 = vmul.f32 %v4380_v21, %v5161_v30  ;;  %v4413_v33 = vunpack.c.h.bf16 %v4688_v7  ;;  %v4702_v21 = vld [vmem:[%s6253_s6 + $0xc8] sm:$0xff]  }
  0x51   : > { %4713 = vst [vmem:[#allocation4 + $0x28] sm:$0xff] %v4522_v23   ;;  %v614_v34 = vadd.f32 %v598_v17, %v534_v24  ;;  %v452_v35 = vmul.f32 %v4381_v25, %v5161_v30  ;;  %v515_v20 = vmul.f32 %v4412_v27, %v5173_v39  ;;  %v4444_v26 = vunpack.c.l.bf16 %v4696_v22 }
  0x52   : > { %v4881_v37 = vld [vmem:[#allocation4 + $0x30] sm:$0xff]   ;;  %v693_v38 = vadd.f32 %v677_v19, %v613_v29  ;;  %v516_v40 = vmul.f32 %v4413_v33, %v5173_v39  ;;  %v4445_v41 = vunpack.c.h.bf16 %v4696_v22  ;;  %v4476_v42 = vunpack.c.l.bf16 %v4704_v28  ;;  %v4694_v19 = vld [vmem:[%s6253_s6 + $0x88] sm:$0xff]  }
  0x53   : > { %v694_v43 = vadd.f32 %v678_v31, %v614_v34  ;;  %v531_v44 = vadd.f32 %v515_v20, %v451_v32  ;;  %v595_v45 = vmul.f32 %v4444_v26, %v5195_v58  ;;  %v4477_v46 = vunpack.c.h.bf16 %v4704_v28  ;;  %4772 = vmatprep.subr.bf16.mxu0 %v4881_v37  ;;  %4819 = vmatprep.subr.bf16.mxu1 %v4881_v37  ;;  %v4367_v20 = vld [vmem:[%s6253_s6] sm:$0xff]  }
  0x54   : > { %v532_v48 = vadd.f32 %v516_v40, %v452_v35  ;;  %v596_v49 = vmul.f32 %v4445_v41, %v5195_v58  ;;  %v675_v50 = vmul.f32 %v4476_v42, %v5199_v60  ;;  %v4376_v51 = vunpack.c.l.bf16 %v4679_v36  ;;  %4773 = vmatpush3.bf16.msra.mxu0 %v4881_v37  ;;  %4827 = vmatpush3.bf16.msra.mxu1 %v4881_v37  ;;  %v4685_v26 = vld [vmem:[%s6253_s6 + $0x40] sm:$0xff]  }
  0x55   : > { %v4517_v53 = vpack.c.bf16 %v694_v43, %v693_v38  ;;  %v611_v54 = vadd.f32 %v595_v45, %v531_v44  ;;  %v676_v55 = vmul.f32 %v4477_v46, %v5199_v60  ;;  %v4377_v56 = vunpack.c.h.bf16 %v4679_v36  ;;  %v4693_v46 = vld [vmem:[%s6253_s6 + $0x80] sm:$0xff]  }
  0x56   : > { %v612_v59 = vadd.f32 %v596_v49, %v532_v48  ;;  %v449_v61 = vmul.f32 %v4376_v51, %v5161_v30  ;;  %v4408_v62 = vunpack.c.l.bf16 %v4687_v47  ;;  %v4409_v63 = vunpack.c.h.bf16 %v4687_v47 }
  0x57   : > { %4712 = vst [vmem:[#allocation4 + $0x20] sm:$0xff] %v4517_v53   ;;  %v691_v1 = vadd.f32 %v675_v50, %v611_v54  ;;  %v450_v2 = vmul.f32 %v4377_v56, %v5161_v30  ;;  %v4440_v3 = vunpack.c.l.bf16 %v4695_v52  ;;  %v4441_v4 = vunpack.c.h.bf16 %v4695_v52 }
  0x58   : > { %v4882_v6 = vld [vmem:[#allocation4 + $0x28] sm:$0xff]   ;;  %v692_v7 = vadd.f32 %v676_v55, %v612_v59  ;;  %v513_v8 = vmul.f32 %v4408_v62, %v5173_v39  ;;  %v514_v9 = vmul.f32 %v4409_v63, %v5173_v39  ;;  %v4472_v10 = vunpack.c.l.bf16 %v4703_v57  ;;  %v5341_v55 = vld [vmem:[%s6253_s6 + $0xc0] sm:$0xff]   ;;  %v5348_v63 = vld [vmem:[%s5335_s25 + $0x8] sm:$0xff]  }
  0x59   : > { %v593_v13 = vmul.f32 %v4440_v3, %v5195_v58  ;;  %v594_v11 = vmul.f32 %v4441_v4, %v5195_v58  ;;  %v4473_v12 = vunpack.c.h.bf16 %v4703_v57  ;;  %v4372_v14 = vunpack.c.l.bf16 %v4678_v0  ;;  %4774 = vmatprep.subr.bf16.mxu0 %v4882_v6  ;;  %4820 = vmatprep.subr.bf16.mxu1 %v4882_v6  ;;  %v5345_v62 = vld [vmem:[%s5335_s25] sm:$0xff]   ;;  %v5360_v3 = vld [vmem:[%s5335_s25 + $0x10] sm:$0xff]  }
  0x5a   : > { %v4512_v15 = vpack.c.bf16 %v692_v7, %v691_v1  ;;  %v529_v17 = vadd.f32 %v513_v8, %v449_v61  ;;  %v530_v18 = vadd.f32 %v514_v9, %v450_v2  ;;  %v4373_v16 = vunpack.c.h.bf16 %v4678_v0  ;;  %4775 = vmatpush3.bf16.msra.mxu0 %v4882_v6  ;;  %4828 = vmatpush3.bf16.msra.mxu1 %v4882_v6  ;;  %v5351_v0 = vld [vmem:[%s5335_s25 + $0x38] sm:$0xff]   ;;  %v5354_v1 = vld [vmem:[%s5335_s25 + $0x40] sm:$0xff]   ;;  %v5357_v2 = vld [vmem:[%s5335_s25 + $0x48] sm:$0xff]  }
  0x5b   : > { %v673_v22 = vmul.f32 %v4472_v10, %v5199_v60  ;;  %v674_v23 = vmul.f32 %v4473_v12, %v5199_v60  ;;  %v447_v24 = vmul.f32 %v4372_v14, %v5161_v30  ;;  %v4404_v25 = vunpack.c.l.bf16 %v4686_v5  ;;  %v5377_v12 = vld [vmem:[%s5335_s25 + $0x50] sm:$0xff]   ;;  %v5380_v14 = vld [vmem:[%s5335_s25 + $0x18] sm:$0xff]  }
  0x5c   : > { %4711 = vst [vmem:[#allocation4 + $0x18] sm:$0xff] %v4512_v15   ;;  %v609_v27 = vadd.f32 %v593_v13, %v529_v17  ;;  %v610_v28 = vadd.f32 %v594_v11, %v530_v18  ;;  %v448_v29 = vmul.f32 %v4373_v16, %v5161_v30  ;;  %v4405_v31 = vunpack.c.h.bf16 %v4686_v5  ;;  %v5383_v15 = vld [vmem:[%s5335_s25 + $0x58] sm:$0xff]  }
  0x5d   : > { %v511_v32 = vmul.f32 %v4404_v25, %v5173_v39  ;;  %v4436_v33 = vunpack.c.l.bf16 %v4694_v19  ;;  %v4437_v34 = vunpack.c.h.bf16 %v4694_v19  ;;  %v4468_v35 = vunpack.c.l.bf16 %v4702_v21  ;;  %v5487_v25 = vld [vmem:[#allocation3] ss:$0 sm:$0xff] }
  0x5e   : > { %v4883_v36 = vld [vmem:[#allocation4 + $0x20] sm:$0xff]   ;;  %v689_v37 = vadd.f32 %v673_v22, %v609_v27  ;;  %v690_v38 = vadd.f32 %v674_v23, %v610_v28  ;;  %v512_v40 = vmul.f32 %v4405_v31, %v5173_v39  ;;  %v4469_v41 = vunpack.c.h.bf16 %v4702_v21  ;;  %v5489_v28 = vld [vmem:[#allocation3 + $0x1] ss:$0 sm:$0xff]  ;;  %v5493_v31 = vld [vmem:[#allocation3 + $0x4] ss:$0 sm:$0xff] }
  0x5f   : > { %v527_v42 = vadd.f32 %v511_v32, %v447_v24  ;;  %v591_v43 = vmul.f32 %v4436_v33, %v5195_v58  ;;  %v592_v44 = vmul.f32 %v4437_v34, %v5195_v58  ;;  %v671_v45 = vmul.f32 %v4468_v35, %v5199_v60  ;;  %4776 = vmatprep.subr.bf16.mxu0 %v4883_v36 }
  0x60   : > { %4821 = vmatprep.subr.bf16.mxu1 %v4883_v36  ;;  %v4507_v47 = vpack.c.bf16 %v690_v38, %v689_v37  ;;  %v528_v48 = vadd.f32 %v512_v40, %v448_v29  ;;  %v672_v49 = vmul.f32 %v4469_v41, %v5199_v60  ;;  %v4368_v50 = vunpack.c.l.bf16 %v4367_v20  ;;  %4777 = vmatpush3.bf16.msra.mxu0 %v4883_v36  ;;  %v5491_v29 = vld [vmem:[#allocation3 + $0x2] ss:$0 sm:$0xff] }
  0x61   : > { %4829 = vmatpush3.bf16.msra.mxu1 %v4883_v36  ;;  %v607_v51 = vadd.f32 %v591_v43, %v527_v42  ;;  %v4369_v52 = vunpack.c.h.bf16 %v4367_v20  ;;  %v4400_v53 = vunpack.c.l.bf16 %v4685_v26  ;;  %v4401_v54 = vunpack.c.h.bf16 %v4685_v26 }
  0x62   : > { %4710 = vst [vmem:[#allocation4 + $0x10] sm:$0xff] %v4507_v47   ;;  %v608_v56 = vadd.f32 %v592_v44, %v528_v48  ;;  %v445_v57 = vmul.f32 %v4368_v50, %v5161_v30  ;;  %v4432_v59 = vunpack.c.l.bf16 %v4693_v46  ;;  %v4433_v61 = vunpack.c.h.bf16 %v4693_v46 }
  0x63   : > { %v4884_v4 = vld [vmem:[#allocation4 + $0x18] sm:$0xff]   ;;  %v5362_v5 = vadd.f32 %v671_v45, %v607_v51  ;;  %v446_v6 = vmul.f32 %v4369_v52, %v5161_v30  ;;  %v509_v7 = vmul.f32 %v4400_v53, %v5173_v39  ;;  %v510_v8 = vmul.f32 %v4401_v54, %v5173_v39 }
  0x64   : > { %v5367_v9 = vadd.f32 %v672_v49, %v608_v56  ;;  %v5370_v10 = vmul.f32 %v4432_v59, %v5195_v58  ;;  %v5373_v13 = vmul.f32 %v4433_v61, %v5195_v58  ;;  %v4464_v11 = vunpack.c.l.bf16 %v5341_v55  ;;  %4778 = vmatprep.subr.bf16.mxu0 %v4884_v4  ;;  %4822 = vmatprep.subr.bf16.mxu1 %v4884_v4  ;;  %v5499_v51 = vld [vmem:[#allocation3 + $0x5] ss:$0 sm:$0xff]  ;;  %v5504_v56 = vld [vmem:[#allocation3 + $0x6] ss:$0 sm:$0xff] }
  0x65   : > { %v5385_v30 = vadd.f32 %v509_v7, %v445_v57  ;;  %v5387_v39 = vadd.f32 %v510_v8, %v446_v6  ;;  %v4465_v17 = vunpack.c.h.bf16 %v5341_v55  ;;  %4779 = vmatpush3.bf16.msra.mxu0 %v4884_v4  ;;  %4830 = vmatpush3.bf16.msra.mxu1 %v4884_v4  ;;  %v4982_v16 = vmov 0  }
  0x66   : > { %v4502_v58 = vpack.c.bf16 %v5367_v9, %v5362_v5  ;;  %v5393_v18 = vmul.f32 %v4464_v11, %v5199_v60  ;;  %784 = vst [vmem:[#allocation2] sm:$0xf] %v4982_v16  ;;  %785 = vst [vmem:[#allocation2 + $0x4] sm:$0xf] %v4982_v16  ;;  %vm3266_vm2 = vsmask.f32 4352 }
  0x67   : > { %786 = vst [vmem:[#allocation2 + $0x8] sm:$0xf] %v4982_v16  ;;  %787 = vst [vmem:[#allocation2 + $0xc] sm:$0xf] %v4982_v16  ;;  %v605_v19 = vadd.f32 %v5370_v10, %v5385_v30  ;;  %v606_v21 = vadd.f32 %v5373_v13, %v5387_v39  ;;  %v670_v22 = vmul.f32 %v4465_v17, %v5199_v60  ;;  %v5516_v39 = vld [vmem:[#allocation3 + $0x8] ss:$0 sm:$0xff] }
  0x68   : > { %788 = vst [vmem:[#allocation2 + $0x10] sm:$0xf] %v4982_v16  ;;  %789 = vst [vmem:[#allocation2 + $0x14] sm:$0xf] %v4982_v16 }
  0x69   : > { %790 = vst [vmem:[#allocation2 + $0x18] sm:$0xf] %v4982_v16  ;;  %791 = vst [vmem:[#allocation2 + $0x1c] sm:$0xf] %v4982_v16  ;;  %v4885_v60 = vld [vmem:[#allocation4 + $0x10] sm:$0xff]   ;;  %v685_v23 = vadd.f32 %v5393_v18, %v605_v19  ;;  %v686_v24 = vadd.f32 %v670_v22, %v606_v21 }
  0x6a   : > { %792 = vst [vmem:[#allocation2 + $0x20] sm:$0xf] %v4982_v16  ;;  %793 = vst [vmem:[#allocation2 + $0x24] sm:$0xf] %v4982_v16  ;;  %4780 = vmatprep.subr.bf16.mxu0 %v4885_v60  ;;  %4823 = vmatprep.subr.bf16.mxu1 %v4885_v60 }
  0x6b   : > { %794 = vst [vmem:[#allocation2 + $0x28] sm:$0xf] %v4982_v16  ;;  %795 = vst [vmem:[#allocation2 + $0x2c] sm:$0xf] %v4982_v16  ;;  %v4497_v27 = vpack.c.bf16 %v686_v24, %v685_v23  ;;  %4781 = vmatpush3.bf16.msra.mxu0 %v4885_v60  ;;  %4831 = vmatpush3.bf16.msra.mxu1 %v4885_v60  ;;  %v5520_v23 = vld [vmem:[#allocation3 + $0x9] ss:$0 sm:$0xff] }
  0x6c   : > { %796 = vst [vmem:[#allocation2 + $0x30] sm:$0xf] %v4982_v16  ;;  %797 = vst [vmem:[#allocation2 + $0x34] sm:$0xf] %v4982_v16 }
  0x6d   : > { %798 = vst [vmem:[#allocation2 + $0x38] sm:$0xf] %v4982_v16  ;;  %799 = vst [vmem:[#allocation2 + $0x3c] sm:$0xf] %v4982_v16  ;;  %v921_v32 = vld [vmem:[#allocation2] sm:$0x8] }
  0x6e   : > { %800 = vst [vmem:[#allocation2 + $0x40] sm:$0xf] %v4982_v16  ;;  %801 = vst [vmem:[#allocation2 + $0x44] sm:$0xf] %v4982_v16  ;;  %v922_v33 = vld [vmem:[#allocation2 + $0x4] sm:$0xff]   ;;  %v969_v35 = vunpack.c.l.bf16 %v921_v32 }
  0x6f   : > { %802 = vst [vmem:[#allocation2 + $0x48] sm:$0xf] %v4982_v16  ;;  %803 = vst [vmem:[#allocation2 + $0x4c] sm:$0xf] %v4982_v16  ;;  %v1332_v34 = vld [vmem:[#allocation2 + $0xc] sm:$0x1]  ;;  %v970_v20 = vunpack.c.l.bf16 %v922_v33  ;;  %v971_v26 = vunpack.c.h.bf16 %v922_v33 }
  0x70   : > { %804 = vst [vmem:[#allocation2 + $0x50] sm:$0xf] %v4982_v16  ;;  %805 = vst [vmem:[#allocation2 + $0x54] sm:$0xf] %v4982_v16  ;;  %v1348_v36 = vunpack.c.l.bf16 %v1332_v34  ;;  %v1642_v37 = vld [vmem:[#allocation2 + $0x10] sm:$0x8]  ;;  %v1022_v46 = vmul.f32 %v5487_v25, %v969_v35 }
  0x71   : > { %806 = vst [vmem:[#allocation2 + $0x58] sm:$0xf] %v4982_v16  ;;  %807 = vst [vmem:[#allocation2 + $0x5c] sm:$0xf] %v4982_v16  ;;  %v2053_v40 = vld [vmem:[#allocation2 + $0x1c] sm:$0x1]  ;;  %v1690_v42 = vunpack.c.l.bf16 %v1642_v37  ;;  %v1023_v47 = vmul.f32 %v5487_v25, %v970_v20  ;;  %v1024_v48 = vmul.f32 %v5487_v25, %v971_v26  ;;  %v1123_v49 = vmul.f32 %v5489_v28, %v970_v20 }
  0x72   : > { %808 = vst [vmem:[#allocation2 + $0x60] sm:$0xf] %v4982_v16  ;;  %809 = vst [vmem:[#allocation2 + $0x64] sm:$0xf] %v4982_v16  ;;  %v2069_v45 = vunpack.c.l.bf16 %v2053_v40  ;;  %v2363_v50 = vld [vmem:[#allocation2 + $0x20] sm:$0x8]  ;;  %v1124_v52 = vmul.f32 %v5489_v28, %v971_v26  ;;  %v1369_v53 = vmul.f32 %v5491_v29, %v970_v20  ;;  %v1370_v54 = vmul.f32 %v5491_v29, %v971_v26 }
  0x73   : > { %810 = vst [vmem:[#allocation2 + $0x68] sm:$0xf] %v4982_v16  ;;  %811 = vst [vmem:[#allocation2 + $0x6c] sm:$0xf] %v4982_v16  ;;  %v2411_v55 = vunpack.c.l.bf16 %v2363_v50  ;;  %v1188_v57 = vrot.slane %v1123_v49, 1  ;;  %v1371_v59 = vmul.f32 %v5491_v29, %v1348_v36  ;;  %v1744_v61 = vmul.f32 %v5493_v31, %v1690_v42 }
  0x74   : > { %812 = vst [vmem:[#allocation2 + $0x70] sm:$0xf] %v4982_v16  ;;  %813 = vst [vmem:[#allocation2 + $0x74] sm:$0xf] %v4982_v16  ;;  %v5523_v34 = vld [vmem:[#allocation3 + $0xa] ss:$0 sm:$0xff] }
  0x75   : > { %814 = vst [vmem:[#allocation2 + $0x78] sm:$0xf] %v4982_v16  ;;  %815 = vst [vmem:[#allocation2 + $0x7c] sm:$0xf] %v4982_v16  ;;  %v1284_v4 = vadd.f32 %v1188_v57, %v1022_v46  ;;  %v1469_v5 = vrot.slane %v1371_v59, 2  ;;  %v2465_v36 = vmul.f32 %v5516_v39, %v2411_v55 }
  0x76   : > { %816 = vst [vmem:[#allocation2 + $0x80] sm:$0xf] %v4982_v16  ;;  %817 = vst [vmem:[#allocation2 + $0x84] sm:$0xf] %v4982_v16  ;;  %v2774_v37 = vld [vmem:[#allocation2 + $0x2c] sm:$0x1] }
  0x77   : > { %818 = vst [vmem:[#allocation2 + $0x88] sm:$0xf] %v4982_v16  ;;  %819 = vst [vmem:[#allocation2 + $0x8c] sm:$0xf] %v4982_v16  ;;  %v2790_v49 = vunpack.c.l.bf16 %v2774_v37 }
  0x78   : > { %820 = vst [vmem:[#allocation2 + $0x90] sm:$0xf] %v4982_v16  ;;  %821 = vst [vmem:[#allocation2 + $0x94] sm:$0xf] %v4982_v16 }
  0x79   : > { %822 = vst [vmem:[#allocation2 + $0x98] sm:$0xf] %v4982_v16  ;;  %823 = vst [vmem:[#allocation2 + $0x9c] sm:$0xf] %v4982_v16 }
  0x7a   : > { %824 = vst [vmem:[#allocation2 + $0xa0] sm:$0xf] %v4982_v16  ;;  %825 = vst [vmem:[#allocation2 + $0xa4] sm:$0xf] %v4982_v16 }
  0x7b   : > { %826 = vst [vmem:[#allocation2 + $0xa8] sm:$0xf] %v4982_v16  ;;  %827 = vst [vmem:[#allocation2 + $0xac] sm:$0xf] %v4982_v16 }
  0x7c   : > { %828 = vst [vmem:[#allocation2 + $0xb0] sm:$0xf] %v4982_v16  ;;  %829 = vst [vmem:[#allocation2 + $0xb4] sm:$0xf] %v4982_v16 }
  0x7d   : > { %830 = vst [vmem:[#allocation2 + $0xb8] sm:$0xf] %v4982_v16  ;;  %831 = vst [vmem:[#allocation2 + $0xbc] sm:$0xf] %v4982_v16 }
  0x7e   : > { %832 = vst [vmem:[#allocation2 + $0xc0] sm:$0xf] %v4982_v16  ;;  %833 = vst [vmem:[#allocation2 + $0xc4] sm:$0xf] %v4982_v16 }
  0x7f   : > { %834 = vst [vmem:[#allocation2 + $0xc8] sm:$0xf] %v4982_v16  ;;  %835 = vst [vmem:[#allocation2 + $0xcc] sm:$0xf] %v4982_v16 }
  0x80   : > { %836 = vst [vmem:[#allocation2 + $0xd0] sm:$0xf] %v4982_v16  ;;  %837 = vst [vmem:[#allocation2 + $0xd4] sm:$0xf] %v4982_v16 }
  0x81   : > { %838 = vst [vmem:[#allocation2 + $0xd8] sm:$0xf] %v4982_v16  ;;  %839 = vst [vmem:[#allocation2 + $0xdc] sm:$0xf] %v4982_v16 }
  0x82   : > { %840 = vst [vmem:[#allocation2 + $0xe0] sm:$0xf] %v4982_v16  ;;  %841 = vst [vmem:[#allocation2 + $0xe4] sm:$0xf] %v4982_v16 }
  0x83   : > { %842 = vst [vmem:[#allocation2 + $0xe8] sm:$0xf] %v4982_v16  ;;  %843 = vst [vmem:[#allocation2 + $0xec] sm:$0xf] %v4982_v16 }
  0x84   : > { %844 = vst [vmem:[#allocation2 + $0xf0] sm:$0xf] %v4982_v16  ;;  %845 = vst [vmem:[#allocation2 + $0xf4] sm:$0xf] %v4982_v16 }
  0x85   : > { %846 = vst [vmem:[#allocation2 + $0xf8] sm:$0xf] %v4982_v16  ;;  %847 = vst [vmem:[#allocation2 + $0xfc] sm:$0xf] %v4982_v16 }
  0x86   : > { %848 = vst [vmem:[#allocation2 + $0x100] sm:$0xf] %v4982_v16  ;;  %849 = vst [vmem:[#allocation2 + $0x104] sm:$0xf] %v4982_v16 }
  0x87   : > { %850 = vst [vmem:[#allocation2 + $0x108] sm:$0xf] %v4982_v16  ;;  %851 = vst [vmem:[#allocation2 + $0x10c] sm:$0xf] %v4982_v16 }
  0x88   : > { %852 = vst [vmem:[#allocation2 + $0x110] sm:$0xf] %v4982_v16  ;;  %853 = vst [vmem:[#allocation2 + $0x114] sm:$0xf] %v4982_v16 }
  0x89   : > { %854 = vst [vmem:[#allocation2 + $0x118] sm:$0xf] %v4982_v16  ;;  %855 = vst [vmem:[#allocation2 + $0x11c] sm:$0xf] %v4982_v16  ;;  %v2092_v16 = vmul.f32 %v5504_v56, %v2069_v45 }
  0x8a   : > { %889 = vst [vmem:[#allocation2 + $0x14] sm:$0xff] %v5345_v62   ;;  %891 = vst [vmem:[#allocation2 + $0x24] sm:$0xff] %v5348_v63   ;;  %v1189_v63 = vrot.slane %v1124_v52, 1  ;;  %v945_v52 = vld [vmem:[#allocation2 + $0x80] sm:$0x8] }
  0x8b   : > { %903 = vst [vmem:[#allocation2 + $0x84] sm:$0xff] %v5351_v0   ;;  %905 = vst [vmem:[#allocation2 + $0x94] sm:$0xff] %v5354_v1   ;;  %v1466_v0 = vrot.slane %v1369_v53, 2  ;;  %v1467_v1 = vrot.slane %v1370_v54, 2  ;;  %v2189_v33 = vrot.slane %v2092_v16, 2 }
  0x8c   : > { %907 = vst [vmem:[#allocation2 + $0xa4] sm:$0xff] %v5357_v2   ;;  %893 = vst [vmem:[#allocation2 + $0x34] sm:$0xff] %v5360_v3   ;;  %v1190_v8 = vsel %vm1187_vm0, %v1188_v57, %v1189_v63  ;;  %v1286_v9 = vadd.f32 %v1189_v63, %v1024_v48  ;;  %v2813_v63 = vmul.f32 %v5523_v34, %v2790_v49 }
  0x8d   : > { %909 = vst [vmem:[#allocation2 + $0xb4] sm:$0xff] %v5377_v12   ;;  %895 = vst [vmem:[#allocation2 + $0x44] sm:$0xff] %v5380_v14   ;;  %v1468_v10 = vsel %vm1465_vm1, %v1466_v0, %v1467_v1  ;;  %v1285_v12 = vadd.f32 %v1190_v8, %v1023_v47  ;;  %v1470_v14 = vsel %vm1465_vm1, %v1467_v1, %v1469_v5  ;;  %v5539_v8 = vld [vmem:[%s6252_s5] ss:$0 sm:$0xff] }
  0x8e   : > { %911 = vst [vmem:[#allocation2 + $0xc4] sm:$0xff] %v5383_v15   ;;  %4709 = vst [vmem:[#allocation4 + $0x8] sm:$0xff] %v4502_v58   ;;  %v1594_v15 = vadd.f32 %v1466_v0, %v1284_v4  ;;  %v1596_v17 = vadd.f32 %v1470_v14, %v1286_v9  ;;  %v993_v4 = vunpack.c.l.bf16 %v945_v52 }
  0x8f   : > { %4498 = vst [vmem:[#allocation4] sm:$0xff] %v4497_v27   ;;  %v1595_v19 = vadd.f32 %v1468_v10, %v1285_v12  ;;  %v864_v10 = vld [vmem:[%s5335_s25 + $0x20] sm:$0xff]  }
  0x90   : > { %v1792_v21 = vadd.f32 %v1744_v61, %v1594_v15  ;;  %v1340_v15 = vld [vmem:[#allocation2 + $0x8c] sm:$0x1]  ;;  %897 = vst [vmem:[#allocation2 + $0x54] sm:$0xff] %v864_v10  }
  0x91   : > { %v1643_v38 = vld [vmem:[#allocation2 + $0x14] sm:$0xff]   ;;  %v2364_v11 = vld [vmem:[#allocation2 + $0x24] sm:$0xff]  }
  0x92   : > { %v1691_v43 = vunpack.c.l.bf16 %v1643_v38  ;;  %v1692_v44 = vunpack.c.h.bf16 %v1643_v38  ;;  %v2412_v60 = vunpack.c.l.bf16 %v2364_v11  ;;  %v2413_v26 = vunpack.c.h.bf16 %v2364_v11  ;;  %v946_v59 = vld [vmem:[#allocation2 + $0x84] sm:$0xff]  }
  0x93   : > { %v994_v9 = vunpack.c.l.bf16 %v946_v59  ;;  %v995_v14 = vunpack.c.h.bf16 %v946_v59 }
  0x94   : > { %v1745_v62 = vmul.f32 %v5493_v31, %v1691_v43  ;;  %v1746_v2 = vmul.f32 %v5493_v31, %v1692_v44  ;;  %v1845_v6 = vmul.f32 %v5499_v51, %v1691_v43  ;;  %v1846_v7 = vmul.f32 %v5499_v51, %v1692_v44 }
  0x95   : > { %v4886_v41 = vld [vmem:[#allocation4 + $0x8] sm:$0xff]   ;;  %v2090_v13 = vmul.f32 %v5504_v56, %v1691_v43  ;;  %v2091_v18 = vmul.f32 %v5504_v56, %v1692_v44  ;;  %v2466_v42 = vmul.f32 %v5516_v39, %v2412_v60  ;;  %v2467_v45 = vmul.f32 %v5516_v39, %v2413_v26 }
  0x96   : > { %4782 = vmatprep.subr.bf16.mxu0 %v4886_v41  ;;  %4824 = vmatprep.subr.bf16.mxu1 %v4886_v41  ;;  %v4887_v3 = vld [vmem:[#allocation4] sm:$0xff]   ;;  %v1909_v30 = vrot.slane %v1845_v6, 1  ;;  %v1910_v58 = vrot.slane %v1846_v7, 1  ;;  %v1794_v24 = vadd.f32 %v1746_v2, %v1596_v17  ;;  %v1793_v35 = vadd.f32 %v1745_v62, %v1595_v19 }
  0x97   : > { %4783 = vmatpush3.bf16.msra.mxu0 %v4886_v41  ;;  %4832 = vmatpush3.bf16.msra.mxu1 %v4886_v41  ;;  %v2186_v22 = vrot.slane %v2090_v13, 2  ;;  %v2187_v32 = vrot.slane %v2091_v18, 2  ;;  %v2566_v46 = vmul.f32 %v5520_v23, %v2412_v60  ;;  %v2567_v48 = vmul.f32 %v5520_v23, %v2413_v26 }
  0x98   : > { %4784 = vmatprep.subr.bf16.mxu0 %v4887_v3  ;;  %4825 = vmatprep.subr.bf16.mxu1 %v4887_v3  ;;  %v1911_v27 = vsel %vm1187_vm0, %v1909_v30, %v1910_v58  ;;  %v2005_v20 = vadd.f32 %v1909_v30, %v1792_v21  ;;  %v2007_v38 = vadd.f32 %v1910_v58, %v1794_v24  ;;  %v2910_v7 = vrot.slane %v2813_v63, 2 }
  0x99   : > { %v2188_v40 = vsel %vm1465_vm1, %v2186_v22, %v2187_v32  ;;  %v2190_v41 = vsel %vm1465_vm1, %v2187_v32, %v2189_v33  ;;  %v2006_v43 = vadd.f32 %v1911_v27, %v1793_v35  ;;  %v2811_v50 = vmul.f32 %v5523_v34, %v2412_v60 }
  0x9a   : > { %v2314_v44 = vadd.f32 %v2186_v22, %v2005_v20  ;;  %v2316_v47 = vadd.f32 %v2190_v41, %v2007_v38  ;;  %v2630_v55 = vrot.slane %v2566_v46, 1  ;;  %v2812_v57 = vmul.f32 %v5523_v34, %v2413_v26  ;;  %v1666_v41 = vld [vmem:[#allocation2 + $0x90] sm:$0x8]  ;;  %v1667_v46 = vld [vmem:[#allocation2 + $0x94] sm:$0xff]  }
  0x9b   : > { %4785 = vmatpush3.bf16.msra.mxu0 %v4887_v3  ;;  %4833 = vmatpush3.bf16.msra.mxu1 %v4887_v3  ;;  %v2315_v53 = vadd.f32 %v2188_v40, %v2006_v43  ;;  %v2631_v62 = vrot.slane %v2567_v48, 1  ;;  %v2907_v0 = vrot.slane %v2811_v50, 2  ;;  %v1046_v17 = vmul.f32 %v5487_v25, %v993_v4 }
  0x9c   : > { %v2513_v54 = vadd.f32 %v2465_v36, %v2314_v44  ;;  %v2515_v61 = vadd.f32 %v2467_v45, %v2316_v47  ;;  %v2908_v3 = vrot.slane %v2812_v57, 2  ;;  %v1047_v58 = vmul.f32 %v5487_v25, %v994_v9 }
  0x9d   : > { %v2514_v1 = vadd.f32 %v2466_v42, %v2315_v53  ;;  %v2632_v5 = vsel %vm1187_vm0, %v2630_v55, %v2631_v62  ;;  %v1139_v18 = vmul.f32 %v5489_v28, %v994_v9  ;;  %v1048_v22 = vmul.f32 %v5487_v25, %v995_v14 }
  0x9e   : > { %v2726_v2 = vadd.f32 %v2630_v55, %v2513_v54  ;;  %v2728_v6 = vadd.f32 %v2631_v62, %v2515_v61  ;;  %v2909_v11 = vsel %vm1465_vm1, %v2907_v0, %v2908_v3  ;;  %v2911_v30 = vsel %vm1465_vm1, %v2908_v3, %v2910_v7  ;;  %v2061_v7 = vld [vmem:[#allocation2 + $0x9c] sm:$0x1] }
  0x9f   : > { %v2727_v13 = vadd.f32 %v2632_v5, %v2514_v1  ;;  %v1140_v60 = vmul.f32 %v5489_v28, %v995_v14  ;;  %v1212_v24 = vrot.slane %v1139_v18, 1  ;;  %v1356_v27 = vunpack.c.l.bf16 %v1340_v15 }
  0xa0   : > { %v3035_v12 = vadd.f32 %v2907_v0, %v2726_v2  ;;  %v3037_v19 = vadd.f32 %v2911_v30, %v2728_v6  ;;  %v1393_v32 = vmul.f32 %v5491_v29, %v994_v9  ;;  %v1394_v26 = vmul.f32 %v5491_v29, %v995_v14 }
  0xa1   : > { %v3036_v16 = vadd.f32 %v2909_v11, %v2727_v13  ;;  %v1213_v36 = vrot.slane %v1140_v60, 1  ;;  %v1308_v37 = vadd.f32 %v1212_v24, %v1046_v17  ;;  %v1395_v38 = vmul.f32 %v5491_v29, %v1356_v27 }
  0xa2   : > { %v3090_v21 = vadd.f32 %v5539_v8, %v3035_v12  ;;  %v3092_v35 = vadd.f32 %v5539_v8, %v3037_v19  ;;  %v1506_v40 = vrot.slane %v1393_v32, 2  ;;  %v1507_v45 = vrot.slane %v1394_v26, 2  ;;  %v880_v12 = vld [vmem:[%s5335_s25 + $0x60] sm:$0xff]  }
  0xa3   : > { %v3091_v33 = vadd.f32 %v5539_v8, %v3036_v16  ;;  %v1214_v47 = vsel %vm1187_vm0, %v1212_v24, %v1213_v36  ;;  %v1310_v48 = vadd.f32 %v1213_v36, %v1048_v22  ;;  %v1509_v49 = vrot.slane %v1395_v38, 2  ;;  %913 = vst [vmem:[#allocation2 + $0xd4] sm:$0xff] %v880_v12  }
  0xa4   : > { %v3138_v20 = vmax.f32 %v3090_v21, 0.0  ;;  %v3140_v43 = vmax.f32 %v3092_v35, 0.0  ;;  %v1618_v50 = vadd.f32 %v1506_v40, %v1308_v37  ;;  %v1309_v54 = vadd.f32 %v1214_v47, %v1047_v58  ;;  %v2387_v58 = vld [vmem:[#allocation2 + $0xa0] sm:$0x8] }
  0xa5   : > { %v3139_v42 = vmax.f32 %v3091_v33, 0.0  ;;  %v1508_v55 = vsel %vm1465_vm1, %v1506_v40, %v1507_v45  ;;  %v1510_v57 = vsel %vm1465_vm1, %v1507_v45, %v1509_v49  ;;  %v1714_v59 = vunpack.c.l.bf16 %v1666_v41  ;;  %v2782_v41 = vld [vmem:[#allocation2 + $0xac] sm:$0x1] }
  0xa6   : > { %v3186_v44 = vmin.f32 %v3138_v20, 6.0  ;;  %v3188_v53 = vmin.f32 %v3140_v43, 6.0  ;;  %v1715_v61 = vunpack.c.l.bf16 %v1667_v46  ;;  %v1716_v62 = vunpack.c.h.bf16 %v1667_v46  ;;  %v2388_v20 = vld [vmem:[#allocation2 + $0xa4] sm:$0xff]  }
  0xa7   : > { %v3187_v52 = vmin.f32 %v3139_v42, 6.0  ;;  %v1619_v1 = vadd.f32 %v1508_v55, %v1309_v54  ;;  %v1620_v2 = vadd.f32 %v1510_v57, %v1310_v48  ;;  %v1768_v3 = vmul.f32 %v5493_v31, %v1714_v59  ;;  %v924_v42 = vld [vmem:[#allocation2 + $0x10] sm:$0x8] }
  0xa8   : > { %v3235_v0 = vpack.c.bf16 %v3188_v53, %v3188_v53  ;;  %v1769_v4 = vmul.f32 %v5493_v31, %v1715_v61  ;;  %v1770_v5 = vmul.f32 %v5493_v31, %v1716_v62  ;;  %v1861_v6 = vmul.f32 %v5499_v51, %v1715_v61 }
  0xa9   : > { %v3234_v63 = vpack.c.bf16 %v3187_v52, %v3186_v44  ;;  %v1816_v14 = vadd.f32 %v1768_v3, %v1618_v50  ;;  %v1862_v17 = vmul.f32 %v5499_v51, %v1716_v62  ;;  %v2077_v24 = vunpack.c.l.bf16 %v2061_v7 }
  0xaa   : > { %v3276_v13 = vshrl.u32 %v3235_v0, 16  ;;  %v3279_v11 = vshll.u32 %v3235_v0, 16  ;;  %v1817_v15 = vadd.f32 %v1769_v4, %v1619_v1  ;;  %v1818_v30 = vadd.f32 %v1770_v5, %v1620_v2 }
  0xab   : > { %v3268_v9 = vshrl.u32 %v3234_v63, 16  ;;  %v3271_v10 = vshll.u32 %v3234_v63, 16  ;;  %v1933_v22 = vrot.slane %v1861_v6, 1  ;;  %v1934_v60 = vrot.slane %v1862_v17, 1  ;;  %v925_v63 = vld [vmem:[#allocation2 + $0x14] sm:$0xff]  }
  0xac   : > { %v3278_v19 = vrot.slane %v3276_v13, 3  ;;  %v3281_v21 = vrot.slane %v3279_v11, 4  ;;  %v2114_v27 = vmul.f32 %v5504_v56, %v1715_v61  ;;  %v2115_v35 = vmul.f32 %v5504_v56, %v1716_v62 }
  0xad   : > { %v3270_v18 = vrot.slane %v3268_v9, 3  ;;  %v3273_v16 = vrot.slane %v3271_v10, 4  ;;  %v2435_v26 = vunpack.c.l.bf16 %v2387_v58  ;;  %v1935_v36 = vsel %vm1187_vm0, %v1933_v22, %v1934_v60 }
  0xae   : > { %v3282_v33 = vor.u32 %v3281_v21, %v3278_v19  ;;  %v2029_v37 = vadd.f32 %v1933_v22, %v1816_v14  ;;  %v2031_v38 = vadd.f32 %v1934_v60, %v1818_v30  ;;  %v2116_v40 = vmul.f32 %v5504_v56, %v2077_v24  ;;  %v1333_v19 = vld [vmem:[#allocation2 + $0x1c] sm:$0x1] }
  0xaf   : > { %v3274_v32 = vor.u32 %v3273_v16, %v3270_v18  ;;  %v2030_v44 = vadd.f32 %v1935_v36, %v1817_v15  ;;  %v2226_v45 = vrot.slane %v2114_v27, 2  ;;  %v2227_v46 = vrot.slane %v2115_v35, 2 }
  0xb0   : > { %v2229_v47 = vrot.slane %v2116_v40, 2  ;;  %v2436_v48 = vunpack.c.l.bf16 %v2388_v20  ;;  %v2437_v49 = vunpack.c.h.bf16 %v2388_v20  ;;  %v2489_v50 = vmul.f32 %v5516_v39, %v2435_v26 }
  0xb1   : > { %v3283_v43 = vsel %vm3266_vm2, %v3274_v32, %v3282_v33  ;;  %v2228_v52 = vsel %vm1465_vm1, %v2226_v45, %v2227_v46  ;;  %v2338_v53 = vadd.f32 %v2226_v45, %v2029_v37  ;;  %v2798_v54 = vunpack.c.l.bf16 %v2782_v41 }
  0xb2   : > { %4786 = vmatprep.mubr.bf16.mxu0 %v3283_v43  ;;  %v972_v55 = vunpack.c.l.bf16 %v924_v42  ;;  %v2230_v57 = vsel %vm1465_vm1, %v2227_v46, %v2229_v47  ;;  %v2339_v59 = vadd.f32 %v2228_v52, %v2030_v44  ;;  %v2490_v61 = vmul.f32 %v5516_v39, %v2436_v48  ;;  %v1645_v52 = vld [vmem:[#allocation2 + $0x20] sm:$0x8] }
  0xb3   : > { %v2491_v62 = vmul.f32 %v5516_v39, %v2437_v49  ;;  %v2340_v0 = vadd.f32 %v2230_v57, %v2031_v38  ;;  %v2537_v1 = vadd.f32 %v2489_v50, %v2338_v53  ;;  %v2582_v2 = vmul.f32 %v5520_v23, %v2436_v48 }
  0xb4   : > { %v2583_v3 = vmul.f32 %v5520_v23, %v2437_v49  ;;  %v2538_v4 = vadd.f32 %v2490_v61, %v2339_v59  ;;  %v2835_v5 = vmul.f32 %v5523_v34, %v2436_v48  ;;  %v2836_v6 = vmul.f32 %v5523_v34, %v2437_v49  ;;  %v1646_v59 = vld [vmem:[#allocation2 + $0x24] sm:$0xff]  }
  0xb5   : > { %v2837_v7 = vmul.f32 %v5523_v34, %v2798_v54  ;;  %v2539_v9 = vadd.f32 %v2491_v62, %v2340_v0  ;;  %v2654_v10 = vrot.slane %v2582_v2, 1  ;;  %v973_v11 = vunpack.c.l.bf16 %v925_v63 }
  0xb6   : > { %v2655_v13 = vrot.slane %v2583_v3, 1  ;;  %v2947_v12 = vrot.slane %v2835_v5, 2  ;;  %v2948_v14 = vrot.slane %v2836_v6, 2  ;;  %v974_v30 = vunpack.c.h.bf16 %v925_v63 }
  0xb7   : > { %v2950_v15 = vrot.slane %v2837_v7, 2  ;;  %v2750_v58 = vadd.f32 %v2654_v10, %v2537_v1  ;;  %v1025_v16 = vmul.f32 %v5487_v25, %v972_v55  ;;  %v1026_v24 = vmul.f32 %v5487_v25, %v973_v11  ;;  %v2054_v1 = vld [vmem:[#allocation2 + $0x2c] sm:$0x1] }
  0xb8   : > { %v2656_v17 = vsel %vm1187_vm0, %v2654_v10, %v2655_v13  ;;  %v2752_v18 = vadd.f32 %v2655_v13, %v2539_v9  ;;  %v2949_v22 = vsel %vm1465_vm1, %v2947_v12, %v2948_v14  ;;  %v1027_v33 = vmul.f32 %v5487_v25, %v974_v30 }
  0xb9   : > { %v2751_v21 = vadd.f32 %v2656_v17, %v2538_v4  ;;  %v2951_v60 = vsel %vm1465_vm1, %v2948_v14, %v2950_v15  ;;  %v3059_v27 = vadd.f32 %v2947_v12, %v2750_v58  ;;  %v1125_v35 = vmul.f32 %v5489_v28, %v973_v11 }
  0xba   : > { %v3061_v32 = vadd.f32 %v2951_v60, %v2752_v18  ;;  %v1126_v26 = vmul.f32 %v5489_v28, %v974_v30  ;;  %v1349_v36 = vunpack.c.l.bf16 %v1333_v19  ;;  %v1372_v37 = vmul.f32 %v5491_v29, %v973_v11 }
  0xbb   : > { %v3060_v20 = vadd.f32 %v2949_v22, %v2751_v21  ;;  %v3114_v38 = vadd.f32 %v5539_v8, %v3059_v27  ;;  %v1191_v41 = vrot.slane %v1125_v35, 1  ;;  %v1373_v42 = vmul.f32 %v5491_v29, %v974_v30 }
  0xbc   : > { %v3116_v40 = vadd.f32 %v5539_v8, %v3061_v32  ;;  %v1192_v44 = vrot.slane %v1126_v26, 1  ;;  %v1374_v45 = vmul.f32 %v5491_v29, %v1349_v36  ;;  %v1471_v46 = vrot.slane %v1372_v37, 2  ;;  %v2366_v32 = vld [vmem:[#allocation2 + $0x30] sm:$0x8] }
  0xbd   : > { %v3115_v43 = vadd.f32 %v5539_v8, %v3060_v20  ;;  %v3162_v47 = vmax.f32 %v3114_v38, 0.0  ;;  %v1287_v49 = vadd.f32 %v1191_v41, %v1025_v16  ;;  %v1472_v50 = vrot.slane %v1373_v42, 2 }
  0xbe   : > { %v3164_v48 = vmax.f32 %v3116_v40, 0.0  ;;  %v1193_v54 = vsel %vm1187_vm0, %v1191_v41, %v1192_v44  ;;  %v1289_v55 = vadd.f32 %v1192_v44, %v1027_v33  ;;  %v1474_v57 = vrot.slane %v1374_v45, 2  ;;  %v2367_v41 = vld [vmem:[#allocation2 + $0x34] sm:$0xff]  }
  0xbf   : > { %v3163_v53 = vmax.f32 %v3115_v43, 0.0  ;;  %v3210_v61 = vmin.f32 %v3162_v47, 6.0  ;;  %v1288_v63 = vadd.f32 %v1193_v54, %v1026_v24  ;;  %v1473_v0 = vsel %vm1465_vm1, %v1471_v46, %v1472_v50 }
  0xc0   : > { %v3212_v62 = vmin.f32 %v3164_v48, 6.0  ;;  %v1475_v3 = vsel %vm1465_vm1, %v1472_v50, %v1474_v57  ;;  %v1597_v4 = vadd.f32 %v1471_v46, %v1287_v49  ;;  %v1693_v5 = vunpack.c.l.bf16 %v1645_v52  ;;  %v866_v46 = vld [vmem:[%s5335_s25 + $0x28] sm:$0xff]  }
  0xc1   : > { %v3211_v2 = vmin.f32 %v3163_v53, 6.0  ;;  %v1598_v7 = vadd.f32 %v1473_v0, %v1288_v63  ;;  %v1599_v9 = vadd.f32 %v1475_v3, %v1289_v55  ;;  %v1694_v10 = vunpack.c.l.bf16 %v1646_v59  ;;  %899 = vst [vmem:[#allocation2 + $0x64] sm:$0xff] %v866_v46   ;;  %v2775_v63 = vld [vmem:[#allocation2 + $0x3c] sm:$0x1] }
  0xc2   : > { %v3251_v6 = vpack.c.bf16 %v3212_v62, %v3212_v62  ;;  %v1695_v11 = vunpack.c.h.bf16 %v1646_v59  ;;  %v1747_v12 = vmul.f32 %v5493_v31, %v1693_v5  ;;  %v2070_v14 = vunpack.c.l.bf16 %v2054_v1 }
  0xc3   : > { %v3250_v13 = vpack.c.bf16 %v3211_v2, %v3210_v61  ;;  %v1748_v17 = vmul.f32 %v5493_v31, %v1694_v10  ;;  %v1847_v58 = vmul.f32 %v5499_v51, %v1694_v10  ;;  %v2093_v38 = vmul.f32 %v5504_v56, %v1694_v10  ;;  %v949_v10 = vld [vmem:[#allocation2 + $0x94] sm:$0xff]  }
  0xc4   : > { %v3412_v15 = vshrl.u32 %v3251_v6, 16  ;;  %v3415_v30 = vshll.u32 %v3251_v6, 16  ;;  %v1749_v19 = vmul.f32 %v5493_v31, %v1695_v11  ;;  %v1795_v21 = vadd.f32 %v1747_v12, %v1597_v4  ;;  %v948_v4 = vld [vmem:[#allocation2 + $0x90] sm:$0x8] }
  0xc5   : > { %v3404_v18 = vshrl.u32 %v3250_v13, 16  ;;  %v3407_v16 = vshll.u32 %v3250_v13, 16  ;;  %v1796_v24 = vadd.f32 %v1748_v17, %v1598_v7  ;;  %v1848_v27 = vmul.f32 %v5499_v51, %v1695_v11 }
  0xc6   : > { %v3414_v22 = vrot.slane %v3412_v15, 3  ;;  %v3417_v60 = vrot.slane %v3415_v30, 4  ;;  %v1797_v20 = vadd.f32 %v1749_v19, %v1599_v9  ;;  %v1912_v26 = vrot.slane %v1847_v58, 1 }
  0xc7   : > { %v3406_v33 = vrot.slane %v3404_v18, 3  ;;  %v3409_v35 = vrot.slane %v3407_v16, 4  ;;  %v1913_v37 = vrot.slane %v1848_v27, 1  ;;  %v2094_v40 = vmul.f32 %v5504_v56, %v1695_v11 }
  0xc8   : > { %v3418_v36 = vor.u32 %v3417_v60, %v3414_v22  ;;  %v2008_v43 = vadd.f32 %v1912_v26, %v1795_v21  ;;  %v2095_v44 = vmul.f32 %v5504_v56, %v2070_v14  ;;  %v2414_v45 = vunpack.c.l.bf16 %v2366_v32 }
  0xc9   : > { %v3410_v42 = vor.u32 %v3409_v35, %v3406_v33  ;;  %v1914_v47 = vsel %vm1187_vm0, %v1912_v26, %v1913_v37  ;;  %v2010_v48 = vadd.f32 %v1913_v37, %v1797_v20  ;;  %v2191_v49 = vrot.slane %v2093_v38, 2  ;;  %v1341_v26 = vld [vmem:[#allocation2 + $0x9c] sm:$0x1] }
  0xca   : > { %v2192_v50 = vrot.slane %v2094_v40, 2  ;;  %v2009_v53 = vadd.f32 %v1914_v47, %v1796_v24  ;;  %v2194_v54 = vrot.slane %v2095_v44, 2  ;;  %v2415_v55 = vunpack.c.l.bf16 %v2367_v41 }
  0xcb   : > { %v3419_v52 = vsel %vm3266_vm2, %v3410_v42, %v3418_v36  ;;  %v2317_v59 = vadd.f32 %v2191_v49, %v2008_v43  ;;  %v2416_v61 = vunpack.c.h.bf16 %v2367_v41  ;;  %v2468_v62 = vmul.f32 %v5516_v39, %v2414_v45 }
  0xcc   : > { %4802 = vmatprep.mubr.bf16.mxu1 %v3419_v52  ;;  %v2193_v57 = vsel %vm1465_vm1, %v2191_v49, %v2192_v50  ;;  %v2195_v0 = vsel %vm1465_vm1, %v2192_v50, %v2194_v54  ;;  %v2469_v2 = vmul.f32 %v5516_v39, %v2415_v55  ;;  %v2568_v3 = vmul.f32 %v5520_v23, %v2415_v55 }
  0xcd   : > { %v2318_v1 = vadd.f32 %v2193_v57, %v2009_v53  ;;  %v2319_v5 = vadd.f32 %v2195_v0, %v2010_v48  ;;  %v2470_v6 = vmul.f32 %v5516_v39, %v2416_v61  ;;  %v2516_v7 = vadd.f32 %v2468_v62, %v2317_v59  ;;  %v1670_v62 = vld [vmem:[#allocation2 + $0xa4] sm:$0xff]  }
  0xce   : > { %v2569_v9 = vmul.f32 %v5520_v23, %v2416_v61  ;;  %v2633_v11 = vrot.slane %v2568_v3, 1  ;;  %v2791_v12 = vunpack.c.l.bf16 %v2775_v63  ;;  %v2814_v14 = vmul.f32 %v5523_v34, %v2415_v55 }
  0xcf   : > { %v2517_v13 = vadd.f32 %v2469_v2, %v2318_v1  ;;  %v2518_v15 = vadd.f32 %v2470_v6, %v2319_v5  ;;  %v2815_v17 = vmul.f32 %v5523_v34, %v2416_v61  ;;  %v996_v58 = vunpack.c.l.bf16 %v948_v4  ;;  %v1669_v61 = vld [vmem:[#allocation2 + $0xa0] sm:$0x8] }
  0xd0   : > { %v2634_v30 = vrot.slane %v2569_v9, 1  ;;  %v2729_v18 = vadd.f32 %v2633_v11, %v2516_v7  ;;  %v2816_v16 = vmul.f32 %v5523_v34, %v2791_v12  ;;  %v2912_v19 = vrot.slane %v2814_v14, 2 }
  0xd1   : > { %v997_v21 = vunpack.c.l.bf16 %v949_v10  ;;  %v2913_v24 = vrot.slane %v2815_v17, 2  ;;  %v998_v27 = vunpack.c.h.bf16 %v949_v10  ;;  %v1049_v20 = vmul.f32 %v5487_v25, %v996_v58 }
  0xd2   : > { %v2635_v22 = vsel %vm1187_vm0, %v2633_v11, %v2634_v30  ;;  %v2731_v60 = vadd.f32 %v2634_v30, %v2518_v15  ;;  %v2915_v33 = vrot.slane %v2816_v16, 2  ;;  %v3038_v35 = vadd.f32 %v2912_v19, %v2729_v18 }
  0xd3   : > { %v2730_v32 = vadd.f32 %v2635_v22, %v2517_v13  ;;  %v2914_v36 = vsel %vm1465_vm1, %v2912_v19, %v2913_v24  ;;  %v1050_v37 = vmul.f32 %v5487_v25, %v997_v21  ;;  %v1051_v38 = vmul.f32 %v5487_v25, %v998_v27 }
  0xd4   : > { %v1141_v40 = vmul.f32 %v5489_v28, %v997_v21  ;;  %v2916_v41 = vsel %vm1465_vm1, %v2913_v24, %v2915_v33  ;;  %v3093_v43 = vadd.f32 %v5539_v8, %v3038_v35  ;;  %v1142_v44 = vmul.f32 %v5489_v28, %v998_v27  ;;  %v2062_v35 = vld [vmem:[#allocation2 + $0xac] sm:$0x1] }
  0xd5   : > { %v3039_v42 = vadd.f32 %v2914_v36, %v2730_v32  ;;  %v3040_v45 = vadd.f32 %v2916_v41, %v2731_v60  ;;  %v1357_v47 = vunpack.c.l.bf16 %v1341_v26  ;;  %v1396_v48 = vmul.f32 %v5491_v29, %v997_v21  ;;  %v882_v60 = vld [vmem:[%s5335_s25 + $0x68] sm:$0xff]  }
  0xd6   : > { %v1215_v46 = vrot.slane %v1141_v40, 1  ;;  %v3141_v50 = vmax.f32 %v3093_v43, 0.0  ;;  %v1216_v52 = vrot.slane %v1142_v44, 1  ;;  %v1397_v53 = vmul.f32 %v5491_v29, %v998_v27  ;;  %915 = vst [vmem:[#allocation2 + $0xe4] sm:$0xff] %v882_v60  }
  0xd7   : > { %v3094_v49 = vadd.f32 %v5539_v8, %v3039_v42  ;;  %v3095_v54 = vadd.f32 %v5539_v8, %v3040_v45  ;;  %v1398_v57 = vmul.f32 %v5491_v29, %v1357_v47  ;;  %v1511_v59 = vrot.slane %v1396_v48, 2  ;;  %v2391_v47 = vld [vmem:[#allocation2 + $0xb4] sm:$0xff]  }
  0xd8   : > { %v1311_v55 = vadd.f32 %v1215_v46, %v1049_v20  ;;  %v3189_v0 = vmin.f32 %v3141_v50, 6.0  ;;  %v1217_v1 = vsel %vm1187_vm0, %v1215_v46, %v1216_v52  ;;  %v1313_v2 = vadd.f32 %v1216_v52, %v1051_v38  ;;  %v2390_v46 = vld [vmem:[#allocation2 + $0xb0] sm:$0x8] }
  0xd9   : > { %v3142_v63 = vmax.f32 %v3094_v49, 0.0  ;;  %v3143_v3 = vmax.f32 %v3095_v54, 0.0  ;;  %v1312_v4 = vadd.f32 %v1217_v1, %v1050_v37  ;;  %v1512_v5 = vrot.slane %v1397_v53, 2  ;;  %v2783_v53 = vld [vmem:[#allocation2 + $0xbc] sm:$0x1] }
  0xda   : > { %v1514_v6 = vrot.slane %v1398_v57, 2  ;;  %v1621_v9 = vadd.f32 %v1511_v59, %v1311_v55  ;;  %v1717_v10 = vunpack.c.l.bf16 %v1669_v61  ;;  %v1718_v13 = vunpack.c.l.bf16 %v1670_v62 }
  0xdb   : > { %v3190_v7 = vmin.f32 %v3142_v63, 6.0  ;;  %v3191_v11 = vmin.f32 %v3143_v3, 6.0  ;;  %v1513_v12 = vsel %vm1465_vm1, %v1511_v59, %v1512_v5  ;;  %v1719_v15 = vunpack.c.h.bf16 %v1670_v62 }
  0xdc   : > { %v1515_v14 = vsel %vm1465_vm1, %v1512_v5, %v1514_v6  ;;  %v1622_v17 = vadd.f32 %v1513_v12, %v1312_v4  ;;  %v1771_v18 = vmul.f32 %v5493_v31, %v1717_v10  ;;  %v1772_v19 = vmul.f32 %v5493_v31, %v1718_v13 }
  0xdd   : > { %v3236_v30 = vpack.c.bf16 %v3190_v7, %v3189_v0  ;;  %v1623_v58 = vadd.f32 %v1515_v14, %v1313_v2  ;;  %v3237_v16 = vpack.c.bf16 %v3191_v11, %v3191_v11  ;;  %v1773_v21 = vmul.f32 %v5493_v31, %v1719_v15  ;;  %v927_v14 = vld [vmem:[#allocation2 + $0x20] sm:$0x8] }
  0xde   : > { %v1863_v22 = vmul.f32 %v5499_v51, %v1718_v13  ;;  %v1819_v32 = vadd.f32 %v1771_v18, %v1621_v9  ;;  %v1864_v33 = vmul.f32 %v5499_v51, %v1719_v15  ;;  %v1820_v36 = vadd.f32 %v1772_v19, %v1622_v17 }
  0xdf   : > { %v3285_v24 = vshrl.u32 %v3236_v30, 16  ;;  %v3288_v27 = vshll.u32 %v3236_v30, 16  ;;  %v3293_v20 = vshrl.u32 %v3237_v16, 16  ;;  %v3296_v26 = vshll.u32 %v3237_v16, 16 }
  0xe0   : > { %v1821_v37 = vadd.f32 %v1773_v21, %v1623_v58  ;;  %v1936_v41 = vrot.slane %v1863_v22, 1  ;;  %v1937_v42 = vrot.slane %v1864_v33, 1  ;;  %v2078_v44 = vunpack.c.l.bf16 %v2062_v35  ;;  %v928_v22 = vld [vmem:[#allocation2 + $0x24] sm:$0xff]  }
  0xe1   : > { %v3287_v38 = vrot.slane %v3285_v24, 3  ;;  %v3290_v40 = vrot.slane %v3288_v27, 4  ;;  %v3295_v43 = vrot.slane %v3293_v20, 3  ;;  %v3298_v31 = vrot.slane %v3296_v26, 4 }
  0xe2   : > { %v2117_v45 = vmul.f32 %v5504_v56, %v1718_v13  ;;  %v1938_v49 = vsel %vm1187_vm0, %v1936_v41, %v1937_v42  ;;  %v2032_v50 = vadd.f32 %v1936_v41, %v1819_v32  ;;  %v2034_v52 = vadd.f32 %v1937_v42, %v1821_v37  ;;  %v1334_v41 = vld [vmem:[#allocation2 + $0x2c] sm:$0x1] }
  0xe3   : > { %v3291_v48 = vor.u32 %v3290_v40, %v3287_v38  ;;  %v3299_v54 = vor.u32 %v3298_v31, %v3295_v43  ;;  %v2033_v55 = vadd.f32 %v1938_v49, %v1820_v36  ;;  %v2118_v57 = vmul.f32 %v5504_v56, %v1719_v15 }
  0xe4   : > { %v2119_v59 = vmul.f32 %v5504_v56, %v2078_v44  ;;  %v2231_v61 = vrot.slane %v2117_v45, 2  ;;  %v2438_v62 = vunpack.c.l.bf16 %v2390_v46  ;;  %v2439_v63 = vunpack.c.l.bf16 %v2391_v47 }
  0xe5   : > { %v2440_v0 = vunpack.c.h.bf16 %v2391_v47  ;;  %v3300_v1 = vsel %vm3266_vm2, %v3291_v48, %v3299_v54  ;;  %v2232_v2 = vrot.slane %v2118_v57, 2  ;;  %v2799_v4 = vunpack.c.l.bf16 %v2783_v53 }
  0xe6   : > { %v2234_v3 = vrot.slane %v2119_v59, 2  ;;  %4787 = vmatmul.mubr.bf16.vlgmr.msra.gmra.mxu0 %v3300_v1  ;;  %v2341_v5 = vadd.f32 %v2231_v61, %v2032_v50  ;;  %v2492_v6 = vmul.f32 %v5516_v39, %v2438_v62  ;;  %v2493_v7 = vmul.f32 %v5516_v39, %v2439_v63 }
  0xe7   : > { %v2494_v9 = vmul.f32 %v5516_v39, %v2440_v0  ;;  %v2233_v10 = vsel %vm1465_vm1, %v2231_v61, %v2232_v2  ;;  %v2584_v11 = vmul.f32 %v5520_v23, %v2439_v63  ;;  %v2585_v12 = vmul.f32 %v5520_v23, %v2440_v0 }
  0xe8   : > { %v2235_v13 = vsel %vm1465_vm1, %v2232_v2, %v2234_v3  ;;  %v2342_v15 = vadd.f32 %v2233_v10, %v2033_v55  ;;  %v2540_v17 = vadd.f32 %v2492_v6, %v2341_v5  ;;  %v2838_v58 = vmul.f32 %v5523_v34, %v2439_v63 }
  0xe9   : > { %v2343_v30 = vadd.f32 %v2235_v13, %v2034_v52  ;;  %v2657_v18 = vrot.slane %v2584_v11, 1  ;;  %v2658_v16 = vrot.slane %v2585_v12, 1  ;;  %v2839_v19 = vmul.f32 %v5523_v34, %v2440_v0  ;;  %v1648_v0 = vld [vmem:[#allocation2 + $0x30] sm:$0x8] }
  0xea   : > { %v2840_v21 = vmul.f32 %v5523_v34, %v2799_v4  ;;  %v2541_v60 = vadd.f32 %v2493_v7, %v2342_v15  ;;  %v2952_v27 = vrot.slane %v2838_v58, 2  ;;  %v975_v32 = vunpack.c.l.bf16 %v927_v14 }
  0xeb   : > { %v2542_v24 = vadd.f32 %v2494_v9, %v2343_v30  ;;  %v2659_v33 = vsel %vm1187_vm0, %v2657_v18, %v2658_v16  ;;  %v2753_v35 = vadd.f32 %v2657_v18, %v2540_v17  ;;  %v2953_v20 = vrot.slane %v2839_v19, 2 }
  0xec   : > { %v2955_v26 = vrot.slane %v2840_v21, 2  ;;  %v2754_v36 = vadd.f32 %v2659_v33, %v2541_v60  ;;  %v976_v38 = vunpack.c.l.bf16 %v928_v22  ;;  %v977_v40 = vunpack.c.h.bf16 %v928_v22  ;;  %v5672_v21 = vld [vmem:[#allocation3 + $0x4] ss:$0 sm:$0xff] }
  0xed   : > { %v2755_v37 = vadd.f32 %v2658_v16, %v2542_v24  ;;  %v2954_v42 = vsel %vm1465_vm1, %v2952_v27, %v2953_v20  ;;  %v3062_v31 = vadd.f32 %v2952_v27, %v2753_v35  ;;  %v1028_v44 = vmul.f32 %v5487_v25, %v975_v32 }
  0xee   : > { %v2956_v43 = vsel %vm1465_vm1, %v2953_v20, %v2955_v26  ;;  %v3063_v45 = vadd.f32 %v2954_v42, %v2754_v36  ;;  %v1029_v47 = vmul.f32 %v5487_v25, %v976_v38  ;;  %v1030_v48 = vmul.f32 %v5487_v25, %v977_v40  ;;  %v2055_v20 = vld [vmem:[#allocation2 + $0x3c] sm:$0x1] }
  0xef   : > { %v3064_v46 = vadd.f32 %v2956_v43, %v2755_v37  ;;  %v3117_v49 = vadd.f32 %v5539_v8, %v3062_v31  ;;  %v1127_v50 = vmul.f32 %v5489_v28, %v976_v38  ;;  %v1128_v52 = vmul.f32 %v5489_v28, %v977_v40  ;;  %v1649_v28 = vld [vmem:[#allocation2 + $0x34] sm:$0xff]  }
  0xf0   : > { %v1350_v53 = vunpack.c.l.bf16 %v1334_v41  ;;  %v3118_v54 = vadd.f32 %v5539_v8, %v3063_v45  ;;  %v1375_v57 = vmul.f32 %v5491_v29, %v976_v38  ;;  %v1376_v59 = vmul.f32 %v5491_v29, %v977_v40  ;;  %v868_v40 = vld [vmem:[%s5335_s25 + $0x30] sm:$0xff]  }
  0xf1   : > { %v3119_v55 = vadd.f32 %v5539_v8, %v3064_v46  ;;  %v3165_v61 = vmax.f32 %v3117_v49, 0.0  ;;  %v1194_v62 = vrot.slane %v1127_v50, 1  ;;  %v1195_v63 = vrot.slane %v1128_v52, 1  ;;  %901 = vst [vmem:[#allocation2 + $0x74] sm:$0xff] %v868_v40   ;;  %v5679_v46 = vld [vmem:[#allocation3 + $0x5] ss:$0 sm:$0xff] }
  0xf2   : > { %v1377_v25 = vmul.f32 %v5491_v29, %v1350_v53  ;;  %v3166_v1 = vmax.f32 %v3118_v54, 0.0  ;;  %v1476_v3 = vrot.slane %v1375_v57, 2  ;;  %v1477_v4 = vrot.slane %v1376_v59, 2  ;;  %v2370_v49 = vld [vmem:[#allocation2 + $0x44] sm:$0xff]  }
  0xf3   : > { %v3167_v2 = vmax.f32 %v3119_v55, 0.0  ;;  %v3213_v5 = vmin.f32 %v3165_v61, 6.0  ;;  %v1196_v6 = vsel %vm1187_vm0, %v1194_v62, %v1195_v63  ;;  %v1290_v7 = vadd.f32 %v1194_v62, %v1028_v44  ;;  %v2369_v44 = vld [vmem:[#allocation2 + $0x40] sm:$0x8]  ;;  %v5683_v54 = vld [vmem:[#allocation3 + $0x6] ss:$0 sm:$0xff] }
  0xf4   : > { %v1292_v9 = vadd.f32 %v1195_v63, %v1030_v48  ;;  %v3214_v10 = vmin.f32 %v3166_v1, 6.0  ;;  %v1291_v11 = vadd.f32 %v1196_v6, %v1029_v47  ;;  %v1478_v12 = vsel %vm1465_vm1, %v1476_v3, %v1477_v4 }
  0xf5   : > { %v3215_v13 = vmin.f32 %v3167_v2, 6.0  ;;  %v1479_v14 = vrot.slane %v1377_v25, 2  ;;  %v1600_v15 = vadd.f32 %v1476_v3, %v1290_v7  ;;  %v1696_v30 = vunpack.c.l.bf16 %v1648_v0 }
  0xf6   : > { %v1697_v29 = vunpack.c.l.bf16 %v1649_v28  ;;  %v3252_v17 = vpack.c.bf16 %v3214_v10, %v3213_v5  ;;  %v1601_v18 = vadd.f32 %v1478_v12, %v1291_v11  ;;  %v1698_v16 = vunpack.c.h.bf16 %v1649_v28 }
  0xf7   : > { %v3253_v58 = vpack.c.bf16 %v3215_v13, %v3215_v13  ;;  %v1480_v19 = vsel %vm1465_vm1, %v1477_v4, %v1479_v14  ;;  %v1750_v22 = vmul.f32 %v5672_v21, %v1696_v30  ;;  %v2071_v48 = vunpack.c.l.bf16 %v2055_v20  ;;  %v951_v14 = vld [vmem:[#allocation2 + $0xa0] sm:$0x8] }
  0xf8   : > { %v1751_v60 = vmul.f32 %v5672_v21, %v1697_v29  ;;  %v1849_v24 = vmul.f32 %v5499_v51, %v1697_v29  ;;  %v3421_v27 = vshrl.u32 %v3252_v17, 16  ;;  %v3424_v32 = vshll.u32 %v3252_v17, 16 }
  0xf9   : > { %v3429_v33 = vshrl.u32 %v3253_v58, 16  ;;  %v3432_v35 = vshll.u32 %v3253_v58, 16  ;;  %v1602_v26 = vadd.f32 %v1480_v19, %v1292_v9  ;;  %v1752_v36 = vmul.f32 %v5672_v21, %v1698_v16  ;;  %v2776_v9 = vld [vmem:[#allocation2 + $0x4c] sm:$0x1] }
  0xfa   : > { %v1798_v37 = vadd.f32 %v1750_v22, %v1600_v15  ;;  %v1799_v38 = vadd.f32 %v1751_v60, %v1601_v18  ;;  %v3423_v41 = vrot.slane %v3421_v27, 3  ;;  %v3426_v42 = vrot.slane %v3424_v32, 4  ;;  %v952_v22 = vld [vmem:[#allocation2 + $0xa4] sm:$0xff]  }
  0xfb   : > { %v3431_v43 = vrot.slane %v3429_v33, 3  ;;  %v3434_v31 = vrot.slane %v3432_v35, 4  ;;  %v1800_v45 = vadd.f32 %v1752_v36, %v1602_v26  ;;  %v1850_v51 = vmul.f32 %v5679_v46, %v1698_v16 }
  0xfc   : > { %v1915_v47 = vrot.slane %v1849_v24, 1  ;;  %v3427_v50 = vor.u32 %v3426_v42, %v3423_v41  ;;  %v2096_v53 = vmul.f32 %v5504_v56, %v1697_v29  ;;  %v2097_v55 = vmul.f32 %v5683_v54, %v1698_v16 }
  0xfd   : > { %v3435_v52 = vor.u32 %v3434_v31, %v3431_v43  ;;  %v1916_v57 = vrot.slane %v1850_v51, 1  ;;  %v2098_v61 = vmul.f32 %v5683_v54, %v2071_v48  ;;  %v2417_v62 = vunpack.c.l.bf16 %v2369_v44  ;;  %v1342_v43 = vld [vmem:[#allocation2 + $0xac] sm:$0x1]  ;;  %v5701_v31 = vld [vmem:[#allocation3] ss:$0 sm:$0xff] }
  0xfe   : > { %v2011_v59 = vadd.f32 %v1915_v47, %v1798_v37  ;;  %v2196_v25 = vrot.slane %v2096_v53, 2  ;;  %v2197_v0 = vrot.slane %v2097_v55, 2  ;;  %v2418_v1 = vunpack.c.l.bf16 %v2370_v49  ;;  %v5706_v51 = vld [vmem:[#allocation3 + $0x1] ss:$0 sm:$0xff] }
  0xff   : > { %v3436_v63 = vsel %vm3266_vm2, %v3427_v50, %v3435_v52  ;;  %v1917_v2 = vsel %vm1187_vm0, %v1915_v47, %v1916_v57  ;;  %v2013_v3 = vadd.f32 %v1916_v57, %v1800_v45  ;;  %v2199_v4 = vrot.slane %v2098_v61, 2 }
 0x100   : > { %4803 = vmatmul.mubr.bf16.vlgmr.msra.gmra.mxu1 %v3436_v63  ;;  %v2419_v56 = vunpack.c.h.bf16 %v2370_v49  ;;  %v2012_v28 = vadd.f32 %v1917_v2, %v1799_v38  ;;  %v2198_v5 = vsel %vm1465_vm1, %v2196_v25, %v2197_v0  ;;  %v2320_v6 = vadd.f32 %v2196_v25, %v2011_v59  ;;  %v5712_v59 = vld [vmem:[#allocation3 + $0x2] ss:$0 sm:$0xff] }
 0x101   : > { %v2471_v7 = vmul.f32 %v5516_v39, %v2417_v62  ;;  %v2200_v10 = vsel %vm1465_vm1, %v2197_v0, %v2199_v4  ;;  %v2472_v13 = vmul.f32 %v5516_v39, %v2418_v1  ;;  %v2570_v12 = vmul.f32 %v5520_v23, %v2418_v1 }
 0x102   : > { %v2473_v11 = vmul.f32 %v5516_v39, %v2419_v56  ;;  %v2321_v15 = vadd.f32 %v2198_v5, %v2012_v28  ;;  %v2322_v30 = vadd.f32 %v2200_v10, %v2013_v3  ;;  %v2571_v17 = vmul.f32 %v5520_v23, %v2419_v56  ;;  %v1673_v28 = vld [vmem:[#allocation2 + $0xb4] sm:$0xff]  }
 0x103   : > { %v2519_v29 = vadd.f32 %v2471_v7, %v2320_v6  ;;  %v2636_v58 = vrot.slane %v2570_v12, 1  ;;  %v2792_v18 = vunpack.c.l.bf16 %v2776_v9  ;;  %v2817_v16 = vmul.f32 %v5523_v34, %v2418_v1 }
 0x104   : > { %v2818_v19 = vmul.f32 %v5523_v34, %v2419_v56  ;;  %v2520_v60 = vadd.f32 %v2472_v13, %v2321_v15  ;;  %v2521_v24 = vadd.f32 %v2473_v11, %v2322_v30  ;;  %v2637_v27 = vrot.slane %v2571_v17, 1  ;;  %v1672_v56 = vld [vmem:[#allocation2 + $0xb0] sm:$0x8] }
 0x105   : > { %v999_v32 = vunpack.c.l.bf16 %v951_v14  ;;  %v2732_v39 = vadd.f32 %v2636_v58, %v2519_v29  ;;  %v2819_v33 = vmul.f32 %v5523_v34, %v2792_v18  ;;  %v2917_v35 = vrot.slane %v2817_v16, 2 }
 0x106   : > { %v2918_v20 = vrot.slane %v2818_v19, 2  ;;  %v2638_v26 = vsel %vm1187_vm0, %v2636_v58, %v2637_v27  ;;  %v2734_v36 = vadd.f32 %v2637_v27, %v2521_v24  ;;  %v1000_v23 = vunpack.c.l.bf16 %v952_v22 }
 0x107   : > { %v1001_v37 = vunpack.c.h.bf16 %v952_v22  ;;  %v2733_v38 = vadd.f32 %v2638_v26, %v2520_v60  ;;  %v2920_v41 = vrot.slane %v2819_v33, 2  ;;  %v3041_v42 = vadd.f32 %v2917_v35, %v2732_v39 }
 0x108   : > { %v2919_v40 = vsel %vm1465_vm1, %v2917_v35, %v2918_v20  ;;  %v1052_v44 = vmul.f32 %v5701_v31, %v999_v32  ;;  %v1053_v45 = vmul.f32 %v5701_v31, %v1000_v23  ;;  %v1143_v47 = vmul.f32 %v5706_v51, %v1000_v23 }
 0x109   : > { %v1054_v34 = vmul.f32 %v5701_v31, %v1001_v37  ;;  %v2921_v48 = vsel %vm1465_vm1, %v2918_v20, %v2920_v41  ;;  %v3042_v49 = vadd.f32 %v2919_v40, %v2733_v38  ;;  %v3096_v50 = vadd.f32 %v5539_v8, %v3041_v42 }
 0x10a   : > { %v1144_v52 = vmul.f32 %v5706_v51, %v1001_v37  ;;  %v3043_v53 = vadd.f32 %v2921_v48, %v2734_v36  ;;  %v1218_v55 = vrot.slane %v1143_v47, 1  ;;  %v1358_v57 = vunpack.c.l.bf16 %v1342_v43  ;;  %v2063_v36 = vld [vmem:[#allocation2 + $0xbc] sm:$0x1] }
 0x10b   : > { %v1399_v61 = vmul.f32 %v5712_v59, %v1000_v23  ;;  %v3097_v62 = vadd.f32 %v5539_v8, %v3042_v49  ;;  %v3144_v63 = vmax.f32 %v3096_v50, 0.0  ;;  %v1400_v0 = vmul.f32 %v5712_v59, %v1001_v37  ;;  %v884_v23 = vld [vmem:[%s5335_s25 + $0x70] sm:$0xff]   ;;  %v2393_v50 = vld [vmem:[#allocation2 + $0xc0] sm:$0x8] }
 0x10c   : > { %v1219_v25 = vrot.slane %v1144_v52, 1  ;;  %v3098_v1 = vadd.f32 %v5539_v8, %v3043_v53  ;;  %v1314_v2 = vadd.f32 %v1218_v55, %v1052_v44  ;;  %v1401_v3 = vmul.f32 %v5712_v59, %v1358_v57  ;;  %917 = vst [vmem:[#allocation2 + $0xf4] sm:$0xff] %v884_v23   ;;  %v2394_v52 = vld [vmem:[#allocation2 + $0xc4] sm:$0xff]  }
 0x10d   : > { %v1516_v4 = vrot.slane %v1399_v61, 2  ;;  %v3145_v5 = vmax.f32 %v3097_v62, 0.0  ;;  %v3192_v6 = vmin.f32 %v3144_v63, 6.0  ;;  %v1517_v11 = vrot.slane %v1400_v0, 2  ;;  %v2784_v62 = vld [vmem:[#allocation2 + $0xcc] sm:$0x1] }
 0x10e   : > { %v1220_v7 = vsel %vm1187_vm0, %v1218_v55, %v1219_v25  ;;  %v1316_v9 = vadd.f32 %v1219_v25, %v1054_v34  ;;  %v3146_v10 = vmax.f32 %v3098_v1, 0.0  ;;  %v1519_v12 = vrot.slane %v1401_v3, 2 }
 0x10f   : > { %v1315_v13 = vadd.f32 %v1220_v7, %v1053_v45  ;;  %v3193_v14 = vmin.f32 %v3145_v5, 6.0  ;;  %v1624_v15 = vadd.f32 %v1516_v4, %v1314_v2  ;;  %v1720_v30 = vunpack.c.l.bf16 %v1672_v56 }
 0x110   : > { %v1721_v29 = vunpack.c.l.bf16 %v1673_v28  ;;  %v3194_v8 = vmin.f32 %v3146_v10, 6.0  ;;  %v1518_v17 = vsel %vm1465_vm1, %v1516_v4, %v1517_v11  ;;  %v1520_v58 = vsel %vm1465_vm1, %v1517_v11, %v1519_v12  ;;  %v5733_v10 = vld [vmem:[#allocation3 + $0x8] ss:$0 sm:$0xff] }
 0x111   : > { %v1722_v18 = vunpack.c.h.bf16 %v1673_v28  ;;  %v3238_v16 = vpack.c.bf16 %v3193_v14, %v3192_v6  ;;  %v1625_v19 = vadd.f32 %v1518_v17, %v1315_v13  ;;  %v1626_v22 = vadd.f32 %v1520_v58, %v1316_v9  ;;  %v930_v17 = vld [vmem:[#allocation2 + $0x30] sm:$0x8] }
 0x112   : > { %v1774_v60 = vmul.f32 %v5672_v21, %v1720_v30  ;;  %v3239_v24 = vpack.c.bf16 %v3194_v8, %v3194_v8  ;;  %v1775_v27 = vmul.f32 %v5672_v21, %v1721_v29  ;;  %v1865_v39 = vmul.f32 %v5679_v46, %v1721_v29  ;;  %v5740_v30 = vld [vmem:[#allocation3 + $0x9] ss:$0 sm:$0xff] }
 0x113   : > { %v1776_v32 = vmul.f32 %v5672_v21, %v1722_v18  ;;  %v3302_v33 = vshrl.u32 %v3238_v16, 16  ;;  %v3305_v35 = vshll.u32 %v3238_v16, 16  ;;  %v1866_v26 = vmul.f32 %v5679_v46, %v1722_v18 }
 0x114   : > { %v1822_v20 = vadd.f32 %v1774_v60, %v1624_v15  ;;  %v3310_v37 = vshrl.u32 %v3239_v24, 16  ;;  %v3313_v38 = vshll.u32 %v3239_v24, 16  ;;  %v1823_v40 = vadd.f32 %v1775_v27, %v1625_v19  ;;  %v5744_v19 = vld [vmem:[#allocation3 + $0xa] ss:$0 sm:$0xff] }
 0x115   : > { %v1824_v41 = vadd.f32 %v1776_v32, %v1626_v22  ;;  %v3304_v42 = vrot.slane %v3302_v33, 3  ;;  %v3307_v43 = vrot.slane %v3305_v35, 4  ;;  %v1939_v44 = vrot.slane %v1865_v39, 1  ;;  %v931_v39 = vld [vmem:[#allocation2 + $0x34] sm:$0xff]  }
 0x116   : > { %v1940_v45 = vrot.slane %v1866_v26, 1  ;;  %v3312_v34 = vrot.slane %v3310_v37, 3  ;;  %v3315_v47 = vrot.slane %v3313_v38, 4  ;;  %v2079_v48 = vunpack.c.l.bf16 %v2063_v36 }
 0x117   : > { %v2120_v49 = vmul.f32 %v5683_v54, %v1721_v29  ;;  %v3308_v53 = vor.u32 %v3307_v43, %v3304_v42  ;;  %v2035_v57 = vadd.f32 %v1939_v44, %v1822_v20  ;;  %v2121_v0 = vmul.f32 %v5683_v54, %v1722_v18 }
 0x118   : > { %v1941_v55 = vsel %vm1187_vm0, %v1939_v44, %v1940_v45  ;;  %v2037_v61 = vadd.f32 %v1940_v45, %v1824_v41  ;;  %v3316_v63 = vor.u32 %v3315_v47, %v3312_v34  ;;  %v2122_v1 = vmul.f32 %v5683_v54, %v2079_v48  ;;  %v1335_v44 = vld [vmem:[#allocation2 + $0x3c] sm:$0x1] }
 0x119   : > { %v2036_v25 = vadd.f32 %v1941_v55, %v1823_v40  ;;  %v2236_v2 = vrot.slane %v2120_v49, 2  ;;  %v2441_v3 = vunpack.c.l.bf16 %v2393_v50  ;;  %v2442_v4 = vunpack.c.l.bf16 %v2394_v52  ;;  %v5758_v55 = vld [vmem:[%s6252_s5] ss:$0 sm:$0xff] }
 0x11a   : > { %v2443_v56 = vunpack.c.h.bf16 %v2394_v52  ;;  %v3317_v28 = vsel %vm3266_vm2, %v3308_v53, %v3316_v63  ;;  %v2237_v5 = vrot.slane %v2121_v0, 2  ;;  %v2239_v6 = vrot.slane %v2122_v1, 2 }
 0x11b   : > { %v2800_v7 = vunpack.c.l.bf16 %v2784_v62  ;;  %4790 = vmatprep.mubr.bf16.mxu0 %v3317_v28  ;;  %v2344_v9 = vadd.f32 %v2236_v2, %v2035_v57  ;;  %v2495_v13 = vmul.f32 %v5733_v10, %v2441_v3  ;;  %v2496_v11 = vmul.f32 %v5733_v10, %v2442_v4 }
 0x11c   : > { %v2497_v12 = vmul.f32 %v5733_v10, %v2443_v56  ;;  %v2238_v14 = vsel %vm1465_vm1, %v2236_v2, %v2237_v5  ;;  %v2240_v15 = vsel %vm1465_vm1, %v2237_v5, %v2239_v6  ;;  %v2586_v29 = vmul.f32 %v5740_v30, %v2442_v4  ;;  %v1652_v5 = vld [vmem:[#allocation2 + $0x44] sm:$0xff]  }
 0x11d   : > { %v2587_v8 = vmul.f32 %v5740_v30, %v2443_v56  ;;  %v2345_v58 = vadd.f32 %v2238_v14, %v2036_v25  ;;  %v2346_v18 = vadd.f32 %v2240_v15, %v2037_v61  ;;  %v2543_v16 = vadd.f32 %v2495_v13, %v2344_v9 }
 0x11e   : > { %v2841_v22 = vmul.f32 %v5744_v19, %v2442_v4  ;;  %v2660_v60 = vrot.slane %v2586_v29, 1  ;;  %v2842_v27 = vmul.f32 %v5744_v19, %v2443_v56  ;;  %v2843_v32 = vmul.f32 %v5744_v19, %v2800_v7 }
 0x11f   : > { %v2661_v24 = vrot.slane %v2587_v8, 1  ;;  %v2544_v33 = vadd.f32 %v2496_v11, %v2345_v58  ;;  %v2545_v35 = vadd.f32 %v2497_v12, %v2346_v18  ;;  %v978_v26 = vunpack.c.l.bf16 %v930_v17  ;;  %v1651_v11 = vld [vmem:[#allocation2 + $0x40] sm:$0x8] }
 0x120   : > { %v2957_v20 = vrot.slane %v2841_v22, 2  ;;  %v2756_v23 = vadd.f32 %v2660_v60, %v2543_v16  ;;  %v2958_v37 = vrot.slane %v2842_v27, 2  ;;  %v2960_v38 = vrot.slane %v2843_v32, 2 }
 0x121   : > { %v2662_v36 = vsel %vm1187_vm0, %v2660_v60, %v2661_v24  ;;  %v2758_v41 = vadd.f32 %v2661_v24, %v2545_v35  ;;  %v979_v42 = vunpack.c.l.bf16 %v931_v39  ;;  %v980_v43 = vunpack.c.h.bf16 %v931_v39 }
 0x122   : > { %v2757_v40 = vadd.f32 %v2662_v36, %v2544_v33  ;;  %v2959_v45 = vsel %vm1465_vm1, %v2957_v20, %v2958_v37  ;;  %v2961_v34 = vsel %vm1465_vm1, %v2958_v37, %v2960_v38  ;;  %v3065_v47 = vadd.f32 %v2957_v20, %v2756_v23 }
 0x123   : > { %v1031_v48 = vmul.f32 %v5701_v31, %v978_v26  ;;  %v3067_v50 = vadd.f32 %v2961_v34, %v2758_v41  ;;  %v1032_v52 = vmul.f32 %v5701_v31, %v979_v42  ;;  %v1033_v53 = vmul.f32 %v5701_v31, %v980_v43  ;;  %v2056_v41 = vld [vmem:[#allocation2 + $0x4c] sm:$0x1] }
 0x124   : > { %v3066_v49 = vadd.f32 %v2959_v45, %v2757_v40  ;;  %v3120_v57 = vadd.f32 %v5758_v55, %v3065_v47  ;;  %v1129_v61 = vmul.f32 %v5706_v51, %v979_v42  ;;  %v1130_v62 = vmul.f32 %v5706_v51, %v980_v43 }
 0x125   : > { %v1351_v63 = vunpack.c.l.bf16 %v1335_v44  ;;  %v3122_v0 = vadd.f32 %v5758_v55, %v3067_v50  ;;  %v1378_v1 = vmul.f32 %v5712_v59, %v979_v42  ;;  %v1379_v2 = vmul.f32 %v5712_v59, %v980_v43  ;;  %v2372_v50 = vld [vmem:[#allocation2 + $0x50] sm:$0x8] }
 0x126   : > { %v3121_v25 = vadd.f32 %v5758_v55, %v3066_v49  ;;  %v3168_v3 = vmax.f32 %v3120_v57, 0.0  ;;  %v1197_v4 = vrot.slane %v1129_v61, 1  ;;  %v1198_v56 = vrot.slane %v1130_v62, 1  ;;  %v2373_v62 = vld [vmem:[#allocation2 + $0x54] sm:$0xff]  }
 0x127   : > { %v1380_v28 = vmul.f32 %v5712_v59, %v1351_v63  ;;  %v3170_v7 = vmax.f32 %v3122_v0, 0.0  ;;  %v1481_v9 = vrot.slane %v1378_v1, 2  ;;  %v1482_v13 = vrot.slane %v1379_v2, 2 }
 0x128   : > { %v3169_v6 = vmax.f32 %v3121_v25, 0.0  ;;  %v3216_v12 = vmin.f32 %v3168_v3, 6.0  ;;  %v1199_v14 = vsel %vm1187_vm0, %v1197_v4, %v1198_v56  ;;  %v1293_v15 = vadd.f32 %v1197_v4, %v1031_v48 }
 0x129   : > { %v1295_v29 = vadd.f32 %v1198_v56, %v1033_v53  ;;  %v3218_v17 = vmin.f32 %v3170_v7, 6.0  ;;  %v1294_v58 = vadd.f32 %v1199_v14, %v1032_v52  ;;  %v1483_v18 = vsel %vm1465_vm1, %v1481_v9, %v1482_v13 }
 0x12a   : > { %v3217_v8 = vmin.f32 %v3169_v6, 6.0  ;;  %v1484_v16 = vrot.slane %v1380_v28, 2  ;;  %v1603_v22 = vadd.f32 %v1481_v9, %v1293_v15  ;;  %v1699_v60 = vunpack.c.l.bf16 %v1651_v11 }
 0x12b   : > { %v1700_v24 = vunpack.c.l.bf16 %v1652_v5  ;;  %v3255_v32 = vpack.c.bf16 %v3218_v17, %v3218_v17  ;;  %v1604_v39 = vadd.f32 %v1483_v18, %v1294_v58  ;;  %v1701_v33 = vunpack.c.h.bf16 %v1652_v5  ;;  %v2777_v17 = vld [vmem:[#allocation2 + $0x5c] sm:$0x1] }
 0x12c   : > { %v3254_v27 = vpack.c.bf16 %v3217_v8, %v3216_v12  ;;  %v1485_v35 = vsel %vm1465_vm1, %v1482_v13, %v1484_v16  ;;  %v1753_v20 = vmul.f32 %v5672_v21, %v1699_v60  ;;  %v2072_v61 = vunpack.c.l.bf16 %v2056_v41  ;;  %v954_v60 = vld [vmem:[#allocation2 + $0xb0] sm:$0x8] }
 0x12d   : > { %v1754_v26 = vmul.f32 %v5672_v21, %v1700_v24  ;;  %v1851_v36 = vmul.f32 %v5679_v46, %v1700_v24  ;;  %v3446_v38 = vshrl.u32 %v3255_v32, 16  ;;  %v3449_v40 = vshll.u32 %v3255_v32, 16 }
 0x12e   : > { %v3438_v23 = vshrl.u32 %v3254_v27, 16  ;;  %v3441_v37 = vshll.u32 %v3254_v27, 16  ;;  %v1605_v42 = vadd.f32 %v1485_v35, %v1295_v29  ;;  %v1755_v43 = vmul.f32 %v5672_v21, %v1701_v33 }
 0x12f   : > { %v1801_v44 = vadd.f32 %v1753_v20, %v1603_v22  ;;  %v1802_v45 = vadd.f32 %v1754_v26, %v1604_v39  ;;  %v3448_v48 = vrot.slane %v3446_v38, 3  ;;  %v3451_v49 = vrot.slane %v3449_v40, 4 }
 0x130   : > { %v3440_v34 = vrot.slane %v3438_v23, 3  ;;  %v3443_v47 = vrot.slane %v3441_v37, 4  ;;  %v1803_v52 = vadd.f32 %v1755_v43, %v1605_v42  ;;  %v1852_v53 = vmul.f32 %v5679_v46, %v1701_v33 }
 0x131   : > { %v1918_v57 = vrot.slane %v1851_v36, 1  ;;  %v3452_v25 = vor.u32 %v3451_v49, %v3448_v48  ;;  %v2099_v0 = vmul.f32 %v5683_v54, %v1700_v24  ;;  %v2100_v1 = vmul.f32 %v5683_v54, %v1701_v33  ;;  %v955_v36 = vld [vmem:[#allocation2 + $0xb4] sm:$0xff]  }
 0x132   : > { %v3444_v63 = vor.u32 %v3443_v47, %v3440_v34  ;;  %v1919_v2 = vrot.slane %v1852_v53, 1  ;;  %v2101_v4 = vmul.f32 %v5683_v54, %v2072_v61  ;;  %v2420_v56 = vunpack.c.l.bf16 %v2372_v50 }
 0x133   : > { %v2014_v3 = vadd.f32 %v1918_v57, %v1801_v44  ;;  %v2201_v5 = vrot.slane %v2099_v0, 2  ;;  %v2202_v6 = vrot.slane %v2100_v1, 2  ;;  %v2421_v7 = vunpack.c.l.bf16 %v2373_v62 }
 0x134   : > { %v3453_v28 = vsel %vm3266_vm2, %v3444_v63, %v3452_v25  ;;  %v1920_v9 = vsel %vm1187_vm0, %v1918_v57, %v1919_v2  ;;  %v2016_v13 = vadd.f32 %v1919_v2, %v1803_v52  ;;  %v2204_v11 = vrot.slane %v2101_v4, 2  ;;  %v1343_v57 = vld [vmem:[#allocation2 + $0xbc] sm:$0x1] }
 0x135   : > { %4806 = vmatprep.mubr.bf16.mxu1 %v3453_v28  ;;  %v2422_v12 = vunpack.c.h.bf16 %v2373_v62  ;;  %v2015_v14 = vadd.f32 %v1920_v9, %v1802_v45  ;;  %v2203_v15 = vsel %vm1465_vm1, %v2201_v5, %v2202_v6  ;;  %v2323_v29 = vadd.f32 %v2201_v5, %v2014_v3 }
 0x136   : > { %v2474_v8 = vmul.f32 %v5733_v10, %v2420_v56  ;;  %v2205_v58 = vsel %vm1465_vm1, %v2202_v6, %v2204_v11  ;;  %v2475_v18 = vmul.f32 %v5733_v10, %v2421_v7  ;;  %v2572_v22 = vmul.f32 %v5740_v30, %v2421_v7 }
 0x137   : > { %v2476_v16 = vmul.f32 %v5733_v10, %v2422_v12  ;;  %v2324_v24 = vadd.f32 %v2203_v15, %v2015_v14  ;;  %v2325_v27 = vadd.f32 %v2205_v58, %v2016_v13  ;;  %v2573_v39 = vmul.f32 %v5740_v30, %v2422_v12 }
 0x138   : > { %v2522_v32 = vadd.f32 %v2474_v8, %v2323_v29  ;;  %v2639_v33 = vrot.slane %v2572_v22, 1  ;;  %v2793_v35 = vunpack.c.l.bf16 %v2777_v17  ;;  %v2820_v20 = vmul.f32 %v5744_v19, %v2421_v7  ;;  %v1675_v29 = vld [vmem:[#allocation2 + $0xc0] sm:$0x8]  ;;  %v1676_v8 = vld [vmem:[#allocation2 + $0xc4] sm:$0xff]  }
 0x139   : > { %v2821_v26 = vmul.f32 %v5744_v19, %v2422_v12  ;;  %v2523_v23 = vadd.f32 %v2475_v18, %v2324_v24  ;;  %v2524_v37 = vadd.f32 %v2476_v16, %v2325_v27  ;;  %v2640_v38 = vrot.slane %v2573_v39, 1 }
 0x13a   : > { %v1002_v40 = vunpack.c.l.bf16 %v954_v60  ;;  %v2735_v41 = vadd.f32 %v2639_v33, %v2522_v32  ;;  %v2822_v42 = vmul.f32 %v5744_v19, %v2793_v35  ;;  %v2922_v43 = vrot.slane %v2820_v20, 2 }
 0x13b   : > { %v2923_v44 = vrot.slane %v2821_v26, 2  ;;  %v2641_v45 = vsel %vm1187_vm0, %v2639_v33, %v2640_v38  ;;  %v2737_v34 = vadd.f32 %v2640_v38, %v2524_v37  ;;  %v1003_v47 = vunpack.c.l.bf16 %v955_v36 }
 0x13c   : > { %v1004_v48 = vunpack.c.h.bf16 %v955_v36  ;;  %v2736_v49 = vadd.f32 %v2641_v45, %v2523_v23  ;;  %v2925_v52 = vrot.slane %v2822_v42, 2  ;;  %v3044_v53 = vadd.f32 %v2922_v43, %v2735_v41 }
 0x13d   : > { %v2924_v50 = vsel %vm1465_vm1, %v2922_v43, %v2923_v44  ;;  %v1055_v61 = vmul.f32 %v5701_v31, %v1002_v40  ;;  %v1056_v62 = vmul.f32 %v5701_v31, %v1003_v47  ;;  %v1145_v25 = vmul.f32 %v5706_v51, %v1003_v47 }
 0x13e   : > { %v1057_v63 = vmul.f32 %v5701_v31, %v1004_v48  ;;  %v2926_v0 = vsel %vm1465_vm1, %v2923_v44, %v2925_v52  ;;  %v3045_v1 = vadd.f32 %v2924_v50, %v2736_v49  ;;  %v3099_v2 = vadd.f32 %v5758_v55, %v3044_v53  ;;  %v2064_v52 = vld [vmem:[#allocation2 + $0xcc] sm:$0x1] }
 0x13f   : > { %v1146_v3 = vmul.f32 %v5706_v51, %v1004_v48  ;;  %v3046_v4 = vadd.f32 %v2926_v0, %v2737_v34  ;;  %v1221_v56 = vrot.slane %v1145_v25, 1  ;;  %v1359_v28 = vunpack.c.l.bf16 %v1343_v57  ;;  %v886_v34 = vld [vmem:[%s5335_s25 + $0x78] sm:$0xff]   ;;  %s6182_s25 = scalar_lea.vmem %s6255_s8, %s5315_s16 }
 0x140   : > { %v1402_v5 = vmul.f32 %v5712_v59, %v1003_v47  ;;  %v3100_v6 = vadd.f32 %v5758_v55, %v3045_v1  ;;  %v3147_v7 = vmax.f32 %v3099_v2, 0.0  ;;  %v1403_v13 = vmul.f32 %v5712_v59, %v1004_v48  ;;  %919 = vst [vmem:[#allocation2 + $0x104] sm:$0xff] %v886_v34   ;;  %v934_v34 = vld [vmem:[#allocation2 + $0x44] sm:$0xff]  }
 0x141   : > { %v1222_v9 = vrot.slane %v1146_v3, 1  ;;  %v3101_v11 = vadd.f32 %v5758_v55, %v3046_v4  ;;  %v1317_v12 = vadd.f32 %v1221_v56, %v1055_v61  ;;  %v1404_v14 = vmul.f32 %v5712_v59, %v1359_v28  ;;  %v2396_v28 = vld [vmem:[#allocation2 + $0xd0] sm:$0x8] }
 0x142   : > { %v1521_v15 = vrot.slane %v1402_v5, 2  ;;  %v3148_v17 = vmax.f32 %v3100_v6, 0.0  ;;  %v3195_v58 = vmin.f32 %v3147_v7, 6.0  ;;  %v1522_v24 = vrot.slane %v1403_v13, 2  ;;  %v2397_v5 = vld [vmem:[#allocation2 + $0xd4] sm:$0xff]  }
 0x143   : > { %v1223_v18 = vsel %vm1187_vm0, %v1221_v56, %v1222_v9  ;;  %v1319_v16 = vadd.f32 %v1222_v9, %v1057_v63  ;;  %v3149_v22 = vmax.f32 %v3101_v11, 0.0  ;;  %v1524_v27 = vrot.slane %v1404_v14, 2  ;;  %v2785_v11 = vld [vmem:[#allocation2 + $0xdc] sm:$0x1] }
 0x144   : > { %v1318_v60 = vadd.f32 %v1223_v18, %v1056_v62  ;;  %v3196_v32 = vmin.f32 %v3148_v17, 6.0  ;;  %v1627_v39 = vadd.f32 %v1521_v15, %v1317_v12  ;;  %v1723_v33 = vunpack.c.l.bf16 %v1675_v29 }
 0x145   : > { %v1724_v35 = vunpack.c.l.bf16 %v1676_v8  ;;  %v3197_v20 = vmin.f32 %v3149_v22, 6.0  ;;  %v1523_v26 = vsel %vm1465_vm1, %v1521_v15, %v1522_v24  ;;  %v1525_v36 = vsel %vm1465_vm1, %v1522_v24, %v1524_v27 }
 0x146   : > { %v1725_v23 = vunpack.c.h.bf16 %v1676_v8  ;;  %v3240_v37 = vpack.c.bf16 %v3196_v32, %v3195_v58  ;;  %v1628_v38 = vadd.f32 %v1523_v26, %v1318_v60  ;;  %v1629_v40 = vadd.f32 %v1525_v36, %v1319_v16 }
 0x147   : > { %v1777_v41 = vmul.f32 %v5672_v21, %v1723_v33  ;;  %v3241_v42 = vpack.c.bf16 %v3197_v20, %v3197_v20  ;;  %v1778_v43 = vmul.f32 %v5672_v21, %v1724_v35  ;;  %v1867_v45 = vmul.f32 %v5679_v46, %v1724_v35 }
 0x148   : > { %v1779_v44 = vmul.f32 %v5672_v21, %v1725_v23  ;;  %v3319_v47 = vshrl.u32 %v3240_v37, 16  ;;  %v3322_v48 = vshll.u32 %v3240_v37, 16  ;;  %v1868_v50 = vmul.f32 %v5679_v46, %v1725_v23 }
 0x149   : > { %v1825_v49 = vadd.f32 %v1777_v41, %v1627_v39  ;;  %v3327_v53 = vshrl.u32 %v3241_v42, 16  ;;  %v3330_v57 = vshll.u32 %v3241_v42, 16  ;;  %v1826_v61 = vadd.f32 %v1778_v43, %v1628_v38 }
 0x14a   : > { %v1827_v62 = vadd.f32 %v1779_v44, %v1629_v40  ;;  %v3321_v63 = vrot.slane %v3319_v47, 3  ;;  %v3324_v25 = vrot.slane %v3322_v48, 4  ;;  %v1942_v0 = vrot.slane %v1867_v45, 1 }
 0x14b   : > { %v1943_v1 = vrot.slane %v1868_v50, 1  ;;  %v3329_v2 = vrot.slane %v3327_v53, 3  ;;  %v3332_v3 = vrot.slane %v3330_v57, 4  ;;  %v2080_v4 = vunpack.c.l.bf16 %v2064_v52 }
 0x14c   : > { %v2123_v56 = vmul.f32 %v5683_v54, %v1724_v35  ;;  %v3325_v6 = vor.u32 %v3324_v25, %v3321_v63  ;;  %v2038_v9 = vadd.f32 %v1942_v0, %v1825_v49  ;;  %v2124_v15 = vmul.f32 %v5683_v54, %v1725_v23  ;;  %v933_v23 = vld [vmem:[#allocation2 + $0x40] sm:$0x8] }
 0x14d   : > { %v1944_v7 = vsel %vm1187_vm0, %v1942_v0, %v1943_v1  ;;  %v2040_v13 = vadd.f32 %v1943_v1, %v1827_v62  ;;  %v3333_v12 = vor.u32 %v3332_v3, %v3329_v2  ;;  %v2125_v29 = vmul.f32 %v5683_v54, %v2080_v4  ;;  %v1336_v1 = vld [vmem:[#allocation2 + $0x4c] sm:$0x1] }
 0x14e   : > { %v2039_v14 = vadd.f32 %v1944_v7, %v1826_v61  ;;  %v2241_v8 = vrot.slane %v2123_v56, 2  ;;  %v2444_v17 = vunpack.c.l.bf16 %v2396_v28  ;;  %v2445_v58 = vunpack.c.l.bf16 %v2397_v5 }
 0x14f   : > { %v2446_v18 = vunpack.c.h.bf16 %v2397_v5  ;;  %v3334_v16 = vsel %vm3266_vm2, %v3325_v6, %v3333_v12  ;;  %v2242_v22 = vrot.slane %v2124_v15, 2  ;;  %v2244_v60 = vrot.slane %v2125_v29, 2 }
 0x150   : > { %v2801_v24 = vunpack.c.l.bf16 %v2785_v11  ;;  %4791 = vmatmul.mubr.bf16.gmra.mxu0 %v3334_v16  ;;  %v2347_v27 = vadd.f32 %v2241_v8, %v2038_v9  ;;  %v2498_v32 = vmul.f32 %v5733_v10, %v2444_v17  ;;  %v2499_v39 = vmul.f32 %v5733_v10, %v2445_v58 }
 0x151   : > { %v2500_v33 = vmul.f32 %v5733_v10, %v2446_v18  ;;  %v2243_v35 = vsel %vm1465_vm1, %v2241_v8, %v2242_v22  ;;  %v2245_v20 = vsel %vm1465_vm1, %v2242_v22, %v2244_v60  ;;  %v2588_v26 = vmul.f32 %v5740_v30, %v2445_v58  ;;  %v1655_v22 = vld [vmem:[#allocation2 + $0x54] sm:$0xff]  }
 0x152   : > { %v2589_v36 = vmul.f32 %v5740_v30, %v2446_v18  ;;  %v2348_v37 = vadd.f32 %v2243_v35, %v2039_v14  ;;  %v2349_v38 = vadd.f32 %v2245_v20, %v2040_v13  ;;  %v2546_v40 = vadd.f32 %v2498_v32, %v2347_v27 }
 0x153   : > { %v2844_v41 = vmul.f32 %v5744_v19, %v2445_v58  ;;  %v2663_v42 = vrot.slane %v2588_v26, 1  ;;  %v2845_v44 = vmul.f32 %v5744_v19, %v2446_v18  ;;  %v2846_v45 = vmul.f32 %v5744_v19, %v2801_v24 }
 0x154   : > { %v2664_v43 = vrot.slane %v2589_v36, 1  ;;  %v2547_v47 = vadd.f32 %v2499_v39, %v2348_v37  ;;  %v2548_v48 = vadd.f32 %v2500_v33, %v2349_v38  ;;  %v981_v50 = vunpack.c.l.bf16 %v933_v23  ;;  %v1654_v39 = vld [vmem:[#allocation2 + $0x50] sm:$0x8] }
 0x155   : > { %v2962_v49 = vrot.slane %v2844_v41, 2  ;;  %v2759_v53 = vadd.f32 %v2663_v42, %v2546_v40  ;;  %v2963_v57 = vrot.slane %v2845_v44, 2  ;;  %v2965_v61 = vrot.slane %v2846_v45, 2 }
 0x156   : > { %v2665_v52 = vsel %vm1187_vm0, %v2663_v42, %v2664_v43  ;;  %v2761_v63 = vadd.f32 %v2664_v43, %v2548_v48  ;;  %v982_v25 = vunpack.c.l.bf16 %v934_v34  ;;  %v983_v0 = vunpack.c.h.bf16 %v934_v34 }
 0x157   : > { %v2760_v62 = vadd.f32 %v2665_v52, %v2547_v47  ;;  %v2964_v2 = vsel %vm1465_vm1, %v2962_v49, %v2963_v57  ;;  %v2966_v3 = vsel %vm1465_vm1, %v2963_v57, %v2965_v61  ;;  %v3068_v4 = vadd.f32 %v2962_v49, %v2759_v53 }
 0x158   : > { %v1034_v56 = vmul.f32 %v5701_v31, %v981_v50  ;;  %v3070_v5 = vadd.f32 %v2966_v3, %v2761_v63  ;;  %v1035_v6 = vmul.f32 %v5701_v31, %v982_v25  ;;  %v1036_v7 = vmul.f32 %v5701_v31, %v983_v0  ;;  %v2057_v63 = vld [vmem:[#allocation2 + $0x5c] sm:$0x1] }
 0x159   : > { %v3069_v28 = vadd.f32 %v2964_v2, %v2760_v62  ;;  %v3123_v9 = vadd.f32 %v5758_v55, %v3068_v4  ;;  %v1131_v13 = vmul.f32 %v5706_v51, %v982_v25  ;;  %v1132_v11 = vmul.f32 %v5706_v51, %v983_v0 }
 0x15a   : > { %v1352_v12 = vunpack.c.l.bf16 %v1336_v1  ;;  %v3125_v15 = vadd.f32 %v5758_v55, %v3070_v5  ;;  %v1381_v29 = vmul.f32 %v5712_v59, %v982_v25  ;;  %v1382_v8 = vmul.f32 %v5712_v59, %v983_v0  ;;  %v2375_v5 = vld [vmem:[#allocation2 + $0x60] sm:$0x8] }
 0x15b   : > { %v3124_v14 = vadd.f32 %v5758_v55, %v3069_v28  ;;  %v3171_v17 = vmax.f32 %v3123_v9, 0.0  ;;  %v1200_v58 = vrot.slane %v1131_v13, 1  ;;  %v1201_v18 = vrot.slane %v1132_v11, 1  ;;  %v2376_v11 = vld [vmem:[#allocation2 + $0x64] sm:$0xff]  }
 0x15c   : > { %v1383_v16 = vmul.f32 %v5712_v59, %v1352_v12  ;;  %v3173_v24 = vmax.f32 %v3125_v15, 0.0  ;;  %v1486_v27 = vrot.slane %v1381_v29, 2  ;;  %v1487_v32 = vrot.slane %v1382_v8, 2 }
 0x15d   : > { %v3172_v60 = vmax.f32 %v3124_v14, 0.0  ;;  %v3219_v33 = vmin.f32 %v3171_v17, 6.0  ;;  %v1202_v35 = vsel %vm1187_vm0, %v1200_v58, %v1201_v18  ;;  %v1296_v20 = vadd.f32 %v1200_v58, %v1034_v56 }
 0x15e   : > { %v1298_v26 = vadd.f32 %v1201_v18, %v1036_v7  ;;  %v3221_v23 = vmin.f32 %v3173_v24, 6.0  ;;  %v1297_v37 = vadd.f32 %v1202_v35, %v1035_v6  ;;  %v1488_v38 = vsel %vm1465_vm1, %v1486_v27, %v1487_v32 }
 0x15f   : > { %v3220_v36 = vmin.f32 %v3172_v60, 6.0  ;;  %v1489_v40 = vrot.slane %v1383_v16, 2  ;;  %v1606_v41 = vadd.f32 %v1486_v27, %v1296_v20  ;;  %v1702_v42 = vunpack.c.l.bf16 %v1654_v39 }
 0x160   : > { %v1703_v43 = vunpack.c.l.bf16 %v1655_v22  ;;  %v3257_v45 = vpack.c.bf16 %v3221_v23, %v3221_v23  ;;  %v1607_v34 = vadd.f32 %v1488_v38, %v1297_v37  ;;  %v1704_v47 = vunpack.c.h.bf16 %v1655_v22  ;;  %v957_v38 = vld [vmem:[#allocation2 + $0xc0] sm:$0x8] }
 0x161   : > { %v3256_v44 = vpack.c.bf16 %v3220_v36, %v3219_v33  ;;  %v1490_v48 = vsel %vm1465_vm1, %v1487_v32, %v1489_v40  ;;  %v1756_v49 = vmul.f32 %v5672_v21, %v1702_v42  ;;  %v2073_v13 = vunpack.c.l.bf16 %v2057_v63 }
 0x162   : > { %v1757_v50 = vmul.f32 %v5672_v21, %v1703_v43  ;;  %v1853_v52 = vmul.f32 %v5679_v46, %v1703_v43  ;;  %v3463_v61 = vshrl.u32 %v3257_v45, 16  ;;  %v3466_v62 = vshll.u32 %v3257_v45, 16 }
 0x163   : > { %v3455_v53 = vshrl.u32 %v3256_v44, 16  ;;  %v3458_v57 = vshll.u32 %v3256_v44, 16  ;;  %v1608_v25 = vadd.f32 %v1490_v48, %v1298_v26  ;;  %v1758_v0 = vmul.f32 %v5672_v21, %v1704_v47  ;;  %v2778_v26 = vld [vmem:[#allocation2 + $0x6c] sm:$0x1]  ;;  %v958_v48 = vld [vmem:[#allocation2 + $0xc4] sm:$0xff]  }
 0x164   : > { %v1804_v1 = vadd.f32 %v1756_v49, %v1606_v41  ;;  %v1805_v2 = vadd.f32 %v1757_v50, %v1607_v34  ;;  %v3465_v56 = vrot.slane %v3463_v61, 3  ;;  %v3468_v28 = vrot.slane %v3466_v62, 4 }
 0x165   : > { %v3457_v3 = vrot.slane %v3455_v53, 3  ;;  %v3460_v4 = vrot.slane %v3458_v57, 4  ;;  %v1806_v6 = vadd.f32 %v1758_v0, %v1608_v25  ;;  %v1854_v7 = vmul.f32 %v5679_v46, %v1704_v47 }
 0x166   : > { %v1921_v9 = vrot.slane %v1853_v52, 1  ;;  %v3469_v14 = vor.u32 %v3468_v28, %v3465_v56  ;;  %v2102_v15 = vmul.f32 %v5683_v54, %v1703_v43  ;;  %v2103_v29 = vmul.f32 %v5683_v54, %v1704_v47 }
 0x167   : > { %v3461_v12 = vor.u32 %v3460_v4, %v3457_v3  ;;  %v1922_v21 = vrot.slane %v1854_v7, 1  ;;  %v2104_v17 = vmul.f32 %v5683_v54, %v2073_v13  ;;  %v2423_v58 = vunpack.c.l.bf16 %v2375_v5  ;;  %v1344_v5 = vld [vmem:[#allocation2 + $0xcc] sm:$0x1] }
 0x168   : > { %v2017_v8 = vadd.f32 %v1921_v9, %v1804_v1  ;;  %v2206_v16 = vrot.slane %v2102_v15, 2  ;;  %v2207_v22 = vrot.slane %v2103_v29, 2  ;;  %v2424_v60 = vunpack.c.l.bf16 %v2376_v11 }
 0x169   : > { %v3470_v18 = vsel %vm3266_vm2, %v3461_v12, %v3469_v14  ;;  %v1923_v46 = vsel %vm1187_vm0, %v1921_v9, %v1922_v21  ;;  %v2019_v24 = vadd.f32 %v1922_v21, %v1806_v6  ;;  %v2209_v27 = vrot.slane %v2104_v17, 2 }
 0x16a   : > { %4807 = vmatmul.mubr.bf16.gmra.mxu1 %v3470_v18  ;;  %v2425_v32 = vunpack.c.h.bf16 %v2376_v11  ;;  %v2018_v39 = vadd.f32 %v1923_v46, %v1805_v2  ;;  %v2208_v33 = vsel %vm1465_vm1, %v2206_v16, %v2207_v22  ;;  %v2326_v35 = vadd.f32 %v2206_v16, %v2017_v8 }
 0x16b   : > { %v2477_v20 = vmul.f32 %v5733_v10, %v2423_v58  ;;  %v2210_v54 = vsel %vm1465_vm1, %v2207_v22, %v2209_v27  ;;  %v2478_v36 = vmul.f32 %v5733_v10, %v2424_v60  ;;  %v2574_v37 = vmul.f32 %v5740_v30, %v2424_v60  ;;  %v1678_v27 = vld [vmem:[#allocation2 + $0xd0] sm:$0x8] }
 0x16c   : > { %v2479_v23 = vmul.f32 %v5733_v10, %v2425_v32  ;;  %v2327_v40 = vadd.f32 %v2208_v33, %v2018_v39  ;;  %v2328_v41 = vadd.f32 %v2210_v54, %v2019_v24  ;;  %v2575_v43 = vmul.f32 %v5740_v30, %v2425_v32 }
 0x16d   : > { %v2525_v42 = vadd.f32 %v2477_v20, %v2326_v35  ;;  %v2642_v44 = vrot.slane %v2574_v37, 1  ;;  %v2794_v45 = vunpack.c.l.bf16 %v2778_v26  ;;  %v2823_v34 = vmul.f32 %v5744_v19, %v2424_v60 }
 0x16e   : > { %v2824_v47 = vmul.f32 %v5744_v19, %v2425_v32  ;;  %v2526_v49 = vadd.f32 %v2478_v36, %v2327_v40  ;;  %v2527_v50 = vadd.f32 %v2479_v23, %v2328_v41  ;;  %v2643_v52 = vrot.slane %v2575_v43, 1  ;;  %v1679_v32 = vld [vmem:[#allocation2 + $0xd4] sm:$0xff]  }
 0x16f   : > { %v1005_v53 = vunpack.c.l.bf16 %v957_v38  ;;  %v2738_v57 = vadd.f32 %v2642_v44, %v2525_v42  ;;  %v2825_v61 = vmul.f32 %v5744_v19, %v2794_v45  ;;  %v2927_v62 = vrot.slane %v2823_v34, 2 }
 0x170   : > { %v2928_v63 = vrot.slane %v2824_v47, 2  ;;  %v2644_v25 = vsel %vm1187_vm0, %v2642_v44, %v2643_v52  ;;  %v2740_v0 = vadd.f32 %v2643_v52, %v2527_v50  ;;  %v1006_v1 = vunpack.c.l.bf16 %v958_v48  ;;  %v5883_v47 = vld [vmem:[#allocation3 + $0x4] ss:$0 sm:$0xff] }
 0x171   : > { %v1007_v2 = vunpack.c.h.bf16 %v958_v48  ;;  %v2739_v3 = vadd.f32 %v2644_v25, %v2526_v49  ;;  %v2930_v56 = vrot.slane %v2825_v61, 2  ;;  %v3047_v28 = vadd.f32 %v2927_v62, %v2738_v57 }
 0x172   : > { %v2929_v4 = vsel %vm1465_vm1, %v2927_v62, %v2928_v63  ;;  %v1058_v6 = vmul.f32 %v5701_v31, %v1005_v53  ;;  %v1059_v7 = vmul.f32 %v5701_v31, %v1006_v1  ;;  %v1147_v13 = vmul.f32 %v5706_v51, %v1006_v1  ;;  %v5888_v53 = vld [vmem:[#allocation3 + $0x5] ss:$0 sm:$0xff] }
 0x173   : > { %v1060_v9 = vmul.f32 %v5701_v31, %v1007_v2  ;;  %v2931_v11 = vsel %vm1465_vm1, %v2928_v63, %v2930_v56  ;;  %v3048_v12 = vadd.f32 %v2929_v4, %v2739_v3  ;;  %v3102_v14 = vadd.f32 %v5758_v55, %v3047_v28 }
 0x174   : > { %v1148_v15 = vmul.f32 %v5706_v51, %v1007_v2  ;;  %v3049_v29 = vadd.f32 %v2931_v11, %v2740_v0  ;;  %v1224_v21 = vrot.slane %v1147_v13, 1  ;;  %v1360_v8 = vunpack.c.l.bf16 %v1344_v5  ;;  %v2065_v0 = vld [vmem:[#allocation2 + $0xdc] sm:$0x1]  ;;  %v5892_v11 = vld [vmem:[#allocation3 + $0x6] ss:$0 sm:$0xff] }
 0x175   : > { %v1405_v17 = vmul.f32 %v5712_v59, %v1006_v1  ;;  %v3103_v58 = vadd.f32 %v5758_v55, %v3048_v12  ;;  %v3150_v18 = vmax.f32 %v3102_v14, 0.0  ;;  %v1406_v31 = vmul.f32 %v5712_v59, %v1007_v2  ;;  %v2399_v14 = vld [vmem:[#allocation2 + $0xe0] sm:$0x8] }
 0x176   : > { %v1225_v16 = vrot.slane %v1148_v15, 1  ;;  %v3104_v22 = vadd.f32 %v5758_v55, %v3049_v29  ;;  %v1320_v60 = vadd.f32 %v1224_v21, %v1058_v6  ;;  %v1407_v46 = vmul.f32 %v5712_v59, %v1360_v8  ;;  %v2400_v15 = vld [vmem:[#allocation2 + $0xe4] sm:$0xff]  }
 0x177   : > { %v1526_v24 = vrot.slane %v1405_v17, 2  ;;  %v3151_v51 = vmax.f32 %v3103_v58, 0.0  ;;  %v3198_v39 = vmin.f32 %v3150_v18, 6.0  ;;  %v1527_v54 = vrot.slane %v1406_v31, 2  ;;  %v2786_v58 = vld [vmem:[#allocation2 + $0xec] sm:$0x1] }
 0x178   : > { %v1226_v33 = vsel %vm1187_vm0, %v1224_v21, %v1225_v16  ;;  %v1322_v35 = vadd.f32 %v1225_v16, %v1060_v9  ;;  %v3152_v20 = vmax.f32 %v3104_v22, 0.0  ;;  %v1529_v36 = vrot.slane %v1407_v46, 2 }
 0x179   : > { %v1321_v26 = vadd.f32 %v1226_v33, %v1059_v7  ;;  %v3199_v23 = vmin.f32 %v3151_v51, 6.0  ;;  %v1630_v37 = vadd.f32 %v1526_v24, %v1320_v60  ;;  %v1726_v38 = vunpack.c.l.bf16 %v1678_v27 }
 0x17a   : > { %v1727_v40 = vunpack.c.l.bf16 %v1679_v32  ;;  %v3200_v41 = vmin.f32 %v3152_v20, 6.0  ;;  %v1528_v42 = vsel %vm1465_vm1, %v1526_v24, %v1527_v54  ;;  %v1530_v59 = vsel %vm1465_vm1, %v1527_v54, %v1529_v36 }
 0x17b   : > { %v1728_v43 = vunpack.c.h.bf16 %v1679_v32  ;;  %v3242_v44 = vpack.c.bf16 %v3199_v23, %v3198_v39  ;;  %v1631_v45 = vadd.f32 %v1528_v42, %v1321_v26  ;;  %v1632_v34 = vadd.f32 %v1530_v59, %v1322_v35 }
 0x17c   : > { %v1780_v48 = vmul.f32 %v5883_v47, %v1726_v38  ;;  %v3243_v49 = vpack.c.bf16 %v3200_v41, %v3200_v41  ;;  %v1781_v50 = vmul.f32 %v5883_v47, %v1727_v40  ;;  %v1869_v57 = vmul.f32 %v5888_v53, %v1727_v40 }
 0x17d   : > { %v1782_v52 = vmul.f32 %v5883_v47, %v1728_v43  ;;  %v3336_v61 = vshrl.u32 %v3242_v44, 16  ;;  %v3339_v62 = vshll.u32 %v3242_v44, 16  ;;  %v1870_v25 = vmul.f32 %v5888_v53, %v1728_v43 }
 0x17e   : > { %v1828_v63 = vadd.f32 %v1780_v48, %v1630_v37  ;;  %v3344_v1 = vshrl.u32 %v3243_v49, 16  ;;  %v3347_v2 = vshll.u32 %v3243_v49, 16  ;;  %v1829_v3 = vadd.f32 %v1781_v50, %v1631_v45  ;;  %v937_v48 = vld [vmem:[#allocation2 + $0x54] sm:$0xff]  }
 0x17f   : > { %v1830_v4 = vadd.f32 %v1782_v52, %v1632_v34  ;;  %v3338_v56 = vrot.slane %v3336_v61, 3  ;;  %v3341_v28 = vrot.slane %v3339_v62, 4  ;;  %v1945_v5 = vrot.slane %v1869_v57, 1 }
 0x180   : > { %v1946_v6 = vrot.slane %v1870_v25, 1  ;;  %v3346_v7 = vrot.slane %v3344_v1, 3  ;;  %v3349_v9 = vrot.slane %v3347_v2, 4  ;;  %v2081_v13 = vunpack.c.l.bf16 %v2065_v0 }
 0x181   : > { %v2126_v12 = vmul.f32 %v5892_v11, %v1727_v40  ;;  %v3342_v29 = vor.u32 %v3341_v28, %v3338_v56  ;;  %v2041_v8 = vadd.f32 %v1945_v5, %v1828_v63  ;;  %v2127_v31 = vmul.f32 %v5892_v11, %v1728_v43  ;;  %v936_v40 = vld [vmem:[#allocation2 + $0x50] sm:$0x8]  ;;  %v5912_v28 = vld [vmem:[#allocation3] ss:$0 sm:$0xff] }
 0x182   : > { %v1947_v21 = vsel %vm1187_vm0, %v1945_v5, %v1946_v6  ;;  %v2043_v17 = vadd.f32 %v1946_v6, %v1830_v4  ;;  %v3350_v18 = vor.u32 %v3349_v9, %v3346_v7  ;;  %v2128_v22 = vmul.f32 %v5892_v11, %v2081_v13 }
 0x183   : > { %v2042_v16 = vadd.f32 %v1947_v21, %v1829_v3  ;;  %v2246_v60 = vrot.slane %v2126_v12, 2  ;;  %v2447_v46 = vunpack.c.l.bf16 %v2399_v14  ;;  %v2448_v24 = vunpack.c.l.bf16 %v2400_v15  ;;  %v1337_v3 = vld [vmem:[#allocation2 + $0x5c] sm:$0x1]  ;;  %v5918_v14 = vld [vmem:[#allocation3 + $0x1] ss:$0 sm:$0xff] }
 0x184   : > { %v2449_v27 = vunpack.c.h.bf16 %v2400_v15  ;;  %v3351_v32 = vsel %vm3266_vm2, %v3342_v29, %v3350_v18  ;;  %v2247_v51 = vrot.slane %v2127_v31, 2  ;;  %v2249_v39 = vrot.slane %v2128_v22, 2 }
 0x185   : > { %v2802_v33 = vunpack.c.l.bf16 %v2786_v58  ;;  %4794 = vmatprep.mubr.bf16.mxu0 %v3351_v32  ;;  %v2350_v35 = vadd.f32 %v2246_v60, %v2041_v8  ;;  %v2501_v20 = vmul.f32 %v5733_v10, %v2447_v46  ;;  %v2502_v26 = vmul.f32 %v5733_v10, %v2448_v24  ;;  %v5924_v58 = vld [vmem:[#allocation3 + $0x2] ss:$0 sm:$0xff] }
 0x186   : > { %v2503_v54 = vmul.f32 %v5733_v10, %v2449_v27  ;;  %v2248_v36 = vsel %vm1465_vm1, %v2246_v60, %v2247_v51  ;;  %v2250_v23 = vsel %vm1465_vm1, %v2247_v51, %v2249_v39  ;;  %v2590_v37 = vmul.f32 %v5740_v30, %v2448_v24 }
 0x187   : > { %v2591_v38 = vmul.f32 %v5740_v30, %v2449_v27  ;;  %v2351_v41 = vadd.f32 %v2248_v36, %v2042_v16  ;;  %v2352_v42 = vadd.f32 %v2250_v23, %v2043_v17  ;;  %v2549_v59 = vadd.f32 %v2501_v20, %v2350_v35 }
 0x188   : > { %v2847_v43 = vmul.f32 %v5744_v19, %v2448_v24  ;;  %v2666_v44 = vrot.slane %v2590_v37, 1  ;;  %v2848_v34 = vmul.f32 %v5744_v19, %v2449_v27  ;;  %v2849_v10 = vmul.f32 %v5744_v19, %v2802_v33  ;;  %v1658_v24 = vld [vmem:[#allocation2 + $0x64] sm:$0xff]   ;;  %v1657_v33 = vld [vmem:[#allocation2 + $0x60] sm:$0x8] }
 0x189   : > { %v2667_v45 = vrot.slane %v2591_v38, 1  ;;  %v2550_v49 = vadd.f32 %v2502_v26, %v2351_v41  ;;  %v2551_v50 = vadd.f32 %v2503_v54, %v2352_v42  ;;  %v984_v57 = vunpack.c.l.bf16 %v936_v40 }
 0x18a   : > { %v2967_v52 = vrot.slane %v2847_v43, 2  ;;  %v2762_v30 = vadd.f32 %v2666_v44, %v2549_v59  ;;  %v2968_v62 = vrot.slane %v2848_v34, 2  ;;  %v2970_v63 = vrot.slane %v2849_v10, 2 }
 0x18b   : > { %v2668_v61 = vsel %vm1187_vm0, %v2666_v44, %v2667_v45  ;;  %v2764_v0 = vadd.f32 %v2667_v45, %v2551_v50  ;;  %v985_v1 = vunpack.c.l.bf16 %v937_v48  ;;  %v986_v2 = vunpack.c.h.bf16 %v937_v48 }
 0x18c   : > { %v2763_v25 = vadd.f32 %v2668_v61, %v2550_v49  ;;  %v2969_v4 = vsel %vm1465_vm1, %v2967_v52, %v2968_v62  ;;  %v2971_v56 = vsel %vm1465_vm1, %v2968_v62, %v2970_v63  ;;  %v3071_v19 = vadd.f32 %v2967_v52, %v2762_v30  ;;  %v2058_v30 = vld [vmem:[#allocation2 + $0x6c] sm:$0x1] }
 0x18d   : > { %v1037_v5 = vmul.f32 %v5912_v28, %v984_v57  ;;  %v3073_v7 = vadd.f32 %v2971_v56, %v2764_v0  ;;  %v1038_v9 = vmul.f32 %v5912_v28, %v985_v1  ;;  %v1039_v13 = vmul.f32 %v5912_v28, %v986_v2  ;;  %v2378_v56 = vld [vmem:[#allocation2 + $0x70] sm:$0x8] }
 0x18e   : > { %v3072_v6 = vadd.f32 %v2969_v4, %v2763_v25  ;;  %v3126_v12 = vadd.f32 %v5758_v55, %v3071_v19  ;;  %v1133_v15 = vmul.f32 %v5918_v14, %v985_v1  ;;  %v1134_v29 = vmul.f32 %v5918_v14, %v986_v2 }
 0x18f   : > { %v1353_v21 = vunpack.c.l.bf16 %v1337_v3  ;;  %v3128_v17 = vadd.f32 %v5758_v55, %v3073_v7  ;;  %v1384_v18 = vmul.f32 %v5924_v58, %v985_v1  ;;  %v1385_v16 = vmul.f32 %v5924_v58, %v986_v2 }
 0x190   : > { %v3127_v8 = vadd.f32 %v5758_v55, %v3072_v6  ;;  %v3174_v31 = vmax.f32 %v3126_v12, 0.0  ;;  %v1203_v22 = vrot.slane %v1133_v15, 1  ;;  %v1204_v60 = vrot.slane %v1134_v29, 1 }
 0x191   : > { %v1386_v46 = vmul.f32 %v5924_v58, %v1353_v21  ;;  %v3176_v32 = vmax.f32 %v3128_v17, 0.0  ;;  %v1491_v51 = vrot.slane %v1384_v18, 2  ;;  %v1492_v39 = vrot.slane %v1385_v16, 2 }
 0x192   : > { %v3175_v27 = vmax.f32 %v3127_v8, 0.0  ;;  %v3222_v35 = vmin.f32 %v3174_v31, 6.0  ;;  %v1205_v55 = vsel %vm1187_vm0, %v1203_v22, %v1204_v60  ;;  %v1299_v20 = vadd.f32 %v1203_v22, %v1037_v5 }
 0x193   : > { %v1301_v26 = vadd.f32 %v1204_v60, %v1039_v13  ;;  %v3224_v36 = vmin.f32 %v3176_v32, 6.0  ;;  %v1300_v23 = vadd.f32 %v1205_v55, %v1038_v9  ;;  %v1493_v37 = vsel %vm1465_vm1, %v1491_v51, %v1492_v39  ;;  %v2379_v9 = vld [vmem:[#allocation2 + $0x74] sm:$0xff]  }
 0x194   : > { %v3223_v54 = vmin.f32 %v3175_v27, 6.0  ;;  %v1494_v38 = vrot.slane %v1386_v46, 2  ;;  %v1609_v40 = vadd.f32 %v1491_v51, %v1299_v20  ;;  %v1705_v41 = vunpack.c.l.bf16 %v1657_v33  ;;  %v2779_v20 = vld [vmem:[#allocation2 + $0x7c] sm:$0x1] }
 0x195   : > { %v1706_v42 = vunpack.c.l.bf16 %v1658_v24  ;;  %v3259_v43 = vpack.c.bf16 %v3224_v36, %v3224_v36  ;;  %v1610_v44 = vadd.f32 %v1493_v37, %v1300_v23  ;;  %v1707_v45 = vunpack.c.h.bf16 %v1658_v24  ;;  %v5949_v23 = vld [vmem:[#allocation3 + $0x9] ss:$0 sm:$0xff] }
 0x196   : > { %v3258_v59 = vpack.c.bf16 %v3223_v54, %v3222_v35  ;;  %v1495_v34 = vsel %vm1465_vm1, %v1492_v39, %v1494_v38  ;;  %v1759_v10 = vmul.f32 %v5883_v47, %v1705_v41  ;;  %v2074_v7 = vunpack.c.l.bf16 %v2058_v30  ;;  %v5943_v35 = vld [vmem:[#allocation3 + $0x8] ss:$0 sm:$0xff]  ;;  %v960_v38 = vld [vmem:[#allocation2 + $0xd0] sm:$0x8] }
 0x197   : > { %v1760_v48 = vmul.f32 %v5883_v47, %v1706_v42  ;;  %v1855_v49 = vmul.f32 %v5888_v53, %v1706_v42  ;;  %v3480_v57 = vshrl.u32 %v3259_v43, 16  ;;  %v3483_v61 = vshll.u32 %v3259_v43, 16 }
 0x198   : > { %v3472_v50 = vshrl.u32 %v3258_v59, 16  ;;  %v3475_v52 = vshll.u32 %v3258_v59, 16  ;;  %v1611_v62 = vadd.f32 %v1495_v34, %v1301_v26  ;;  %v1761_v63 = vmul.f32 %v5883_v47, %v1707_v45 }
 0x199   : > { %v1807_v25 = vadd.f32 %v1759_v10, %v1609_v40  ;;  %v1808_v0 = vadd.f32 %v1760_v48, %v1610_v44  ;;  %v3482_v3 = vrot.slane %v3480_v57, 3  ;;  %v3485_v4 = vrot.slane %v3483_v61, 4  ;;  %v961_v48 = vld [vmem:[#allocation2 + $0xd4] sm:$0xff]  }
 0x19a   : > { %v3474_v1 = vrot.slane %v3472_v50, 3  ;;  %v3477_v2 = vrot.slane %v3475_v52, 4  ;;  %v1809_v19 = vadd.f32 %v1761_v63, %v1611_v62  ;;  %v1856_v5 = vmul.f32 %v5888_v53, %v1707_v45 }
 0x19b   : > { %v1924_v6 = vrot.slane %v1855_v49, 1  ;;  %v3486_v12 = vor.u32 %v3485_v4, %v3482_v3  ;;  %v2105_v15 = vmul.f32 %v5892_v11, %v1706_v42  ;;  %v2106_v29 = vmul.f32 %v5892_v11, %v1707_v45  ;;  %v5953_v45 = vld [vmem:[#allocation3 + $0xa] ss:$0 sm:$0xff] }
 0x19c   : > { %v3478_v13 = vor.u32 %v3477_v2, %v3474_v1  ;;  %v1925_v21 = vrot.slane %v1856_v5, 1  ;;  %v2107_v17 = vmul.f32 %v5892_v11, %v2074_v7  ;;  %v2426_v18 = vunpack.c.l.bf16 %v2378_v56  ;;  %v1345_v5 = vld [vmem:[#allocation2 + $0xdc] sm:$0x1] }
 0x19d   : > { %v2020_v8 = vadd.f32 %v1924_v6, %v1807_v25  ;;  %v2211_v31 = vrot.slane %v2105_v15, 2  ;;  %v2212_v22 = vrot.slane %v2106_v29, 2  ;;  %v2427_v60 = vunpack.c.l.bf16 %v2379_v9  ;;  %v5968_v29 = vld [vmem:[%s6252_s5] ss:$0 sm:$0xff] }
 0x19e   : > { %v3487_v16 = vsel %vm3266_vm2, %v3478_v13, %v3486_v12  ;;  %v1926_v46 = vsel %vm1187_vm0, %v1924_v6, %v1925_v21  ;;  %v2022_v24 = vadd.f32 %v1925_v21, %v1809_v19  ;;  %v2214_v27 = vrot.slane %v2107_v17, 2 }
 0x19f   : > { %4810 = vmatprep.mubr.bf16.mxu1 %v3487_v16  ;;  %v2428_v32 = vunpack.c.h.bf16 %v2379_v9  ;;  %v2021_v51 = vadd.f32 %v1926_v46, %v1808_v0  ;;  %v2213_v39 = vsel %vm1465_vm1, %v2211_v31, %v2212_v22  ;;  %v2329_v33 = vadd.f32 %v2211_v31, %v2020_v8 }
 0x1a0   : > { %v2480_v55 = vmul.f32 %v5943_v35, %v2426_v18  ;;  %v2215_v26 = vsel %vm1465_vm1, %v2212_v22, %v2214_v27  ;;  %v2481_v54 = vmul.f32 %v5943_v35, %v2427_v60  ;;  %v2576_v37 = vmul.f32 %v5949_v23, %v2427_v60 }
 0x1a1   : > { %v2482_v36 = vmul.f32 %v5943_v35, %v2428_v32  ;;  %v2330_v40 = vadd.f32 %v2213_v39, %v2021_v51  ;;  %v2331_v41 = vadd.f32 %v2215_v26, %v2022_v24  ;;  %v2577_v59 = vmul.f32 %v5949_v23, %v2428_v32 }
 0x1a2   : > { %v2528_v42 = vadd.f32 %v2480_v55, %v2329_v33  ;;  %v2645_v43 = vrot.slane %v2576_v37, 1  ;;  %v2795_v44 = vunpack.c.l.bf16 %v2779_v20  ;;  %v2826_v34 = vmul.f32 %v5953_v45, %v2427_v60  ;;  %v1681_v33 = vld [vmem:[#allocation2 + $0xe0] sm:$0x8]  ;;  %v1682_v55 = vld [vmem:[#allocation2 + $0xe4] sm:$0xff]  }
 0x1a3   : > { %v2827_v10 = vmul.f32 %v5953_v45, %v2428_v32  ;;  %v2529_v49 = vadd.f32 %v2481_v54, %v2330_v40  ;;  %v2530_v50 = vadd.f32 %v2482_v36, %v2331_v41  ;;  %v2646_v52 = vrot.slane %v2577_v59, 1 }
 0x1a4   : > { %v1008_v57 = vunpack.c.l.bf16 %v960_v38  ;;  %v2741_v61 = vadd.f32 %v2645_v43, %v2528_v42  ;;  %v2828_v30 = vmul.f32 %v5953_v45, %v2795_v44  ;;  %v2932_v62 = vrot.slane %v2826_v34, 2 }
 0x1a5   : > { %v2933_v63 = vrot.slane %v2827_v10, 2  ;;  %v2647_v25 = vsel %vm1187_vm0, %v2645_v43, %v2646_v52  ;;  %v2743_v0 = vadd.f32 %v2646_v52, %v2530_v50  ;;  %v1009_v1 = vunpack.c.l.bf16 %v961_v48 }
 0x1a6   : > { %v1010_v2 = vunpack.c.h.bf16 %v961_v48  ;;  %v2742_v3 = vadd.f32 %v2647_v25, %v2529_v49  ;;  %v2935_v56 = vrot.slane %v2828_v30, 2  ;;  %v3050_v19 = vadd.f32 %v2932_v62, %v2741_v61 }
 0x1a7   : > { %v2934_v4 = vsel %vm1465_vm1, %v2932_v62, %v2933_v63  ;;  %v1061_v6 = vmul.f32 %v5912_v28, %v1008_v57  ;;  %v1062_v7 = vmul.f32 %v5912_v28, %v1009_v1  ;;  %v1149_v13 = vmul.f32 %v5918_v14, %v1009_v1 }
 0x1a8   : > { %v1063_v9 = vmul.f32 %v5912_v28, %v1010_v2  ;;  %v2936_v12 = vsel %vm1465_vm1, %v2933_v63, %v2935_v56  ;;  %v3051_v15 = vadd.f32 %v2934_v4, %v2742_v3  ;;  %v3105_v21 = vadd.f32 %v5968_v29, %v3050_v19  ;;  %v2066_v4 = vld [vmem:[#allocation2 + $0xec] sm:$0x1] }
 0x1a9   : > { %v1150_v8 = vmul.f32 %v5918_v14, %v1010_v2  ;;  %v3052_v17 = vadd.f32 %v2936_v12, %v2743_v0  ;;  %v1227_v18 = vrot.slane %v1149_v13, 1  ;;  %v1361_v16 = vunpack.c.l.bf16 %v1345_v5 }
 0x1aa   : > { %v1408_v31 = vmul.f32 %v5924_v58, %v1009_v1  ;;  %v3106_v22 = vadd.f32 %v5968_v29, %v3051_v15  ;;  %v3153_v60 = vmax.f32 %v3105_v21, 0.0  ;;  %v1409_v24 = vmul.f32 %v5924_v58, %v1010_v2 }
 0x1ab   : > { %v1228_v46 = vrot.slane %v1150_v8, 1  ;;  %v3107_v27 = vadd.f32 %v5968_v29, %v3052_v17  ;;  %v1323_v32 = vadd.f32 %v1227_v18, %v1061_v6  ;;  %v1410_v51 = vmul.f32 %v5924_v58, %v1361_v16  ;;  %v2403_v16 = vld [vmem:[#allocation2 + $0xf4] sm:$0xff]  }
 0x1ac   : > { %v1531_v39 = vrot.slane %v1408_v31, 2  ;;  %v3154_v20 = vmax.f32 %v3106_v22, 0.0  ;;  %v3201_v26 = vmin.f32 %v3153_v60, 6.0  ;;  %v1532_v40 = vrot.slane %v1409_v24, 2  ;;  %v2787_v24 = vld [vmem:[#allocation2 + $0xfc] sm:$0x1] }
 0x1ad   : > { %v1229_v54 = vsel %vm1187_vm0, %v1227_v18, %v1228_v46  ;;  %v1325_v36 = vadd.f32 %v1228_v46, %v1063_v9  ;;  %v3155_v37 = vmax.f32 %v3107_v27, 0.0  ;;  %v1534_v41 = vrot.slane %v1410_v51, 2  ;;  %v2402_v18 = vld [vmem:[#allocation2 + $0xf0] sm:$0x8] }
 0x1ae   : > { %v1324_v38 = vadd.f32 %v1229_v54, %v1062_v7  ;;  %v3202_v42 = vmin.f32 %v3154_v20, 6.0  ;;  %v1633_v59 = vadd.f32 %v1531_v39, %v1323_v32  ;;  %v1729_v43 = vunpack.c.l.bf16 %v1681_v33 }
 0x1af   : > { %v1730_v44 = vunpack.c.l.bf16 %v1682_v55  ;;  %v3203_v34 = vmin.f32 %v3155_v37, 6.0  ;;  %v1533_v10 = vsel %vm1465_vm1, %v1531_v39, %v1532_v40  ;;  %v1535_v48 = vsel %vm1465_vm1, %v1532_v40, %v1534_v41 }
 0x1b0   : > { %v1731_v49 = vunpack.c.h.bf16 %v1682_v55  ;;  %v3244_v50 = vpack.c.bf16 %v3202_v42, %v3201_v26  ;;  %v1634_v52 = vadd.f32 %v1533_v10, %v1324_v38  ;;  %v1635_v57 = vadd.f32 %v1535_v48, %v1325_v36  ;;  %v939_v48 = vld [vmem:[#allocation2 + $0x60] sm:$0x8] }
 0x1b1   : > { %v1783_v61 = vmul.f32 %v5883_v47, %v1729_v43  ;;  %v3245_v30 = vpack.c.bf16 %v3203_v34, %v3203_v34  ;;  %v1784_v62 = vmul.f32 %v5883_v47, %v1730_v44  ;;  %v1871_v25 = vmul.f32 %v5888_v53, %v1730_v44 }
 0x1b2   : > { %v1785_v63 = vmul.f32 %v5883_v47, %v1731_v49  ;;  %v3353_v0 = vshrl.u32 %v3244_v50, 16  ;;  %v3356_v1 = vshll.u32 %v3244_v50, 16  ;;  %v1872_v3 = vmul.f32 %v5888_v53, %v1731_v49 }
 0x1b3   : > { %v1831_v2 = vadd.f32 %v1783_v61, %v1633_v59  ;;  %v3361_v56 = vshrl.u32 %v3245_v30, 16  ;;  %v3364_v19 = vshll.u32 %v3245_v30, 16  ;;  %v1832_v5 = vadd.f32 %v1784_v62, %v1634_v52 }
 0x1b4   : > { %v1833_v6 = vadd.f32 %v1785_v63, %v1635_v57  ;;  %v3355_v7 = vrot.slane %v3353_v0, 3  ;;  %v3358_v9 = vrot.slane %v3356_v1, 4  ;;  %v1948_v13 = vrot.slane %v1871_v25, 1  ;;  %v940_v25 = vld [vmem:[#allocation2 + $0x64] sm:$0xff]  }
 0x1b5   : > { %v1949_v12 = vrot.slane %v1872_v3, 1  ;;  %v3363_v15 = vrot.slane %v3361_v56, 3  ;;  %v3366_v21 = vrot.slane %v3364_v19, 4  ;;  %v2082_v8 = vunpack.c.l.bf16 %v2066_v4 }
 0x1b6   : > { %v2129_v17 = vmul.f32 %v5892_v11, %v1730_v44  ;;  %v3359_v31 = vor.u32 %v3358_v9, %v3355_v7  ;;  %v2044_v60 = vadd.f32 %v1948_v13, %v1831_v2  ;;  %v2130_v51 = vmul.f32 %v5892_v11, %v1731_v49 }
 0x1b7   : > { %v1950_v22 = vsel %vm1187_vm0, %v1948_v13, %v1949_v12  ;;  %v2046_v46 = vadd.f32 %v1949_v12, %v1833_v6  ;;  %v3367_v27 = vor.u32 %v3366_v21, %v3363_v15  ;;  %v2131_v39 = vmul.f32 %v5892_v11, %v2082_v8  ;;  %v1338_v12 = vld [vmem:[#allocation2 + $0x6c] sm:$0x1] }
 0x1b8   : > { %v2045_v32 = vadd.f32 %v1950_v22, %v1832_v5  ;;  %v2251_v33 = vrot.slane %v2129_v17, 2  ;;  %v2450_v55 = vunpack.c.l.bf16 %v2402_v18  ;;  %v2451_v20 = vunpack.c.l.bf16 %v2403_v16 }
 0x1b9   : > { %v2452_v26 = vunpack.c.h.bf16 %v2403_v16  ;;  %v3368_v54 = vsel %vm3266_vm2, %v3359_v31, %v3367_v27  ;;  %v2252_v36 = vrot.slane %v2130_v51, 2  ;;  %v2254_v37 = vrot.slane %v2131_v39, 2 }
 0x1ba   : > { %v2803_v38 = vunpack.c.l.bf16 %v2787_v24  ;;  %4795 = vmatmul.mubr.bf16.gmra.mxu0 %v3368_v54  ;;  %v2353_v40 = vadd.f32 %v2251_v33, %v2044_v60  ;;  %v2504_v41 = vmul.f32 %v5943_v35, %v2450_v55  ;;  %v2505_v42 = vmul.f32 %v5943_v35, %v2451_v20 }
 0x1bb   : > { %v2506_v59 = vmul.f32 %v5943_v35, %v2452_v26  ;;  %v2253_v43 = vsel %vm1465_vm1, %v2251_v33, %v2252_v36  ;;  %v2255_v44 = vsel %vm1465_vm1, %v2252_v36, %v2254_v37  ;;  %v2592_v34 = vmul.f32 %v5949_v23, %v2451_v20  ;;  %v1661_v36 = vld [vmem:[#allocation2 + $0x74] sm:$0xff]  }
 0x1bc   : > { %v2593_v10 = vmul.f32 %v5949_v23, %v2452_v26  ;;  %v2354_v49 = vadd.f32 %v2253_v43, %v2045_v32  ;;  %v2355_v50 = vadd.f32 %v2255_v44, %v2046_v46  ;;  %v2552_v52 = vadd.f32 %v2504_v41, %v2353_v40 }
 0x1bd   : > { %v2850_v57 = vmul.f32 %v5953_v45, %v2451_v20  ;;  %v2669_v61 = vrot.slane %v2592_v34, 1  ;;  %v2851_v62 = vmul.f32 %v5953_v45, %v2452_v26  ;;  %v2852_v63 = vmul.f32 %v5953_v45, %v2803_v38 }
 0x1be   : > { %v2670_v30 = vrot.slane %v2593_v10, 1  ;;  %v2553_v0 = vadd.f32 %v2505_v42, %v2354_v49  ;;  %v2554_v1 = vadd.f32 %v2506_v59, %v2355_v50  ;;  %v987_v3 = vunpack.c.l.bf16 %v939_v48  ;;  %v1660_v42 = vld [vmem:[#allocation2 + $0x70] sm:$0x8] }
 0x1bf   : > { %v2972_v2 = vrot.slane %v2850_v57, 2  ;;  %v2765_v56 = vadd.f32 %v2669_v61, %v2552_v52  ;;  %v2973_v19 = vrot.slane %v2851_v62, 2  ;;  %v2975_v5 = vrot.slane %v2852_v63, 2 }
 0x1c0   : > { %v2671_v4 = vsel %vm1187_vm0, %v2669_v61, %v2670_v30  ;;  %v2767_v7 = vadd.f32 %v2670_v30, %v2554_v1  ;;  %v988_v9 = vunpack.c.l.bf16 %v940_v25  ;;  %v989_v13 = vunpack.c.h.bf16 %v940_v25 }
 0x1c1   : > { %v2766_v6 = vadd.f32 %v2671_v4, %v2553_v0  ;;  %v2974_v15 = vsel %vm1465_vm1, %v2972_v2, %v2973_v19  ;;  %v2976_v21 = vsel %vm1465_vm1, %v2973_v19, %v2975_v5  ;;  %v3074_v8 = vadd.f32 %v2972_v2, %v2765_v56 }
 0x1c2   : > { %v1040_v17 = vmul.f32 %v5912_v28, %v987_v3  ;;  %v3076_v16 = vadd.f32 %v2976_v21, %v2767_v7  ;;  %v1041_v31 = vmul.f32 %v5912_v28, %v988_v9  ;;  %v1042_v22 = vmul.f32 %v5912_v28, %v989_v13  ;;  %v2059_v7 = vld [vmem:[#allocation2 + $0x7c] sm:$0x1] }
 0x1c3   : > { %v3075_v18 = vadd.f32 %v2974_v15, %v2766_v6  ;;  %v3129_v60 = vadd.f32 %v5968_v29, %v3074_v8  ;;  %v1135_v46 = vmul.f32 %v5918_v14, %v988_v9  ;;  %v1136_v24 = vmul.f32 %v5918_v14, %v989_v13 }
 0x1c4   : > { %v1354_v27 = vunpack.c.l.bf16 %v1338_v12  ;;  %v3131_v51 = vadd.f32 %v5968_v29, %v3076_v16  ;;  %v1387_v39 = vmul.f32 %v5924_v58, %v988_v9  ;;  %v1388_v33 = vmul.f32 %v5924_v58, %v989_v13  ;;  %v2381_v16 = vld [vmem:[#allocation2 + $0x80] sm:$0x8] }
 0x1c5   : > { %v3130_v32 = vadd.f32 %v5968_v29, %v3075_v18  ;;  %v3177_v55 = vmax.f32 %v3129_v60, 0.0  ;;  %v1206_v20 = vrot.slane %v1135_v46, 1  ;;  %v1207_v26 = vrot.slane %v1136_v24, 1  ;;  %v2382_v24 = vld [vmem:[#allocation2 + $0x84] sm:$0xff]  }
 0x1c6   : > { %v1389_v54 = vmul.f32 %v5924_v58, %v1354_v27  ;;  %v3179_v38 = vmax.f32 %v3131_v51, 0.0  ;;  %v1496_v40 = vrot.slane %v1387_v39, 2  ;;  %v1497_v41 = vrot.slane %v1388_v33, 2 }
 0x1c7   : > { %v3178_v37 = vmax.f32 %v3130_v32, 0.0  ;;  %v3225_v59 = vmin.f32 %v3177_v55, 6.0  ;;  %v1208_v43 = vsel %vm1187_vm0, %v1206_v20, %v1207_v26  ;;  %v1302_v44 = vadd.f32 %v1206_v20, %v1040_v17 }
 0x1c8   : > { %v1304_v34 = vadd.f32 %v1207_v26, %v1042_v22  ;;  %v3227_v48 = vmin.f32 %v3179_v38, 6.0  ;;  %v1303_v49 = vadd.f32 %v1208_v43, %v1041_v31  ;;  %v1498_v50 = vsel %vm1465_vm1, %v1496_v40, %v1497_v41 }
 0x1c9   : > { %v3226_v10 = vmin.f32 %v3178_v37, 6.0  ;;  %v1499_v52 = vrot.slane %v1389_v54, 2  ;;  %v1612_v57 = vadd.f32 %v1496_v40, %v1302_v44  ;;  %v1708_v61 = vunpack.c.l.bf16 %v1660_v42 }
 0x1ca   : > { %v1709_v30 = vunpack.c.l.bf16 %v1661_v36  ;;  %v3261_v63 = vpack.c.bf16 %v3227_v48, %v3227_v48  ;;  %v1613_v25 = vadd.f32 %v1498_v50, %v1303_v49  ;;  %v1710_v0 = vunpack.c.h.bf16 %v1661_v36  ;;  %v2780_v48 = vld [vmem:[#allocation2 + $0x8c] sm:$0x1] }
 0x1cb   : > { %v3260_v62 = vpack.c.bf16 %v3226_v10, %v3225_v59  ;;  %v1500_v1 = vsel %vm1465_vm1, %v1497_v41, %v1499_v52  ;;  %v1762_v2 = vmul.f32 %v5883_v47, %v1708_v61  ;;  %v2075_v46 = vunpack.c.l.bf16 %v2059_v7  ;;  %v963_v61 = vld [vmem:[#allocation2 + $0xe0] sm:$0x8] }
 0x1cc   : > { %v1763_v3 = vmul.f32 %v5883_v47, %v1709_v30  ;;  %v1857_v4 = vmul.f32 %v5888_v53, %v1709_v30  ;;  %v3497_v5 = vshrl.u32 %v3261_v63, 16  ;;  %v3500_v6 = vshll.u32 %v3261_v63, 16 }
 0x1cd   : > { %v3489_v56 = vshrl.u32 %v3260_v62, 16  ;;  %v3492_v19 = vshll.u32 %v3260_v62, 16  ;;  %v1614_v9 = vadd.f32 %v1500_v1, %v1304_v34  ;;  %v1764_v13 = vmul.f32 %v5883_v47, %v1710_v0 }
 0x1ce   : > { %v1810_v12 = vadd.f32 %v1762_v2, %v1612_v57  ;;  %v1811_v15 = vadd.f32 %v1763_v3, %v1613_v25  ;;  %v3499_v17 = vrot.slane %v3497_v5, 3  ;;  %v3502_v18 = vrot.slane %v3500_v6, 4 }
 0x1cf   : > { %v3491_v21 = vrot.slane %v3489_v56, 3  ;;  %v3494_v8 = vrot.slane %v3492_v19, 4  ;;  %v1812_v31 = vadd.f32 %v1764_v13, %v1614_v9  ;;  %v1858_v22 = vmul.f32 %v5888_v53, %v1710_v0 }
 0x1d0   : > { %v1927_v60 = vrot.slane %v1857_v4, 1  ;;  %v3503_v32 = vor.u32 %v3502_v18, %v3499_v17  ;;  %v2108_v51 = vmul.f32 %v5892_v11, %v1709_v30  ;;  %v2109_v39 = vmul.f32 %v5892_v11, %v1710_v0  ;;  %v964_v4 = vld [vmem:[#allocation2 + $0xe4] sm:$0xff]  }
 0x1d1   : > { %v3495_v27 = vor.u32 %v3494_v8, %v3491_v21  ;;  %v1928_v33 = vrot.slane %v1858_v22, 1  ;;  %v2110_v20 = vmul.f32 %v5892_v11, %v2075_v46  ;;  %v2429_v26 = vunpack.c.l.bf16 %v2381_v16 }
 0x1d2   : > { %v2023_v55 = vadd.f32 %v1927_v60, %v1810_v12  ;;  %v2216_v36 = vrot.slane %v2108_v51, 2  ;;  %v2217_v37 = vrot.slane %v2109_v39, 2  ;;  %v2430_v38 = vunpack.c.l.bf16 %v2382_v24 }
 0x1d3   : > { %v3504_v54 = vsel %vm3266_vm2, %v3495_v27, %v3503_v32  ;;  %v1929_v40 = vsel %vm1187_vm0, %v1927_v60, %v1928_v33  ;;  %v2025_v41 = vadd.f32 %v1928_v33, %v1812_v31  ;;  %v2219_v42 = vrot.slane %v2110_v20, 2  ;;  %v1346_v60 = vld [vmem:[#allocation2 + $0xec] sm:$0x1] }
 0x1d4   : > { %4811 = vmatmul.mubr.bf16.gmra.mxu1 %v3504_v54  ;;  %v2431_v59 = vunpack.c.h.bf16 %v2382_v24  ;;  %v2024_v43 = vadd.f32 %v1929_v40, %v1811_v15  ;;  %v2218_v44 = vsel %vm1465_vm1, %v2216_v36, %v2217_v37  ;;  %v2332_v34 = vadd.f32 %v2216_v36, %v2023_v55 }
 0x1d5   : > { %v2483_v10 = vmul.f32 %v5943_v35, %v2429_v26  ;;  %v2220_v49 = vsel %vm1465_vm1, %v2217_v37, %v2219_v42  ;;  %v2484_v50 = vmul.f32 %v5943_v35, %v2430_v38  ;;  %v2578_v57 = vmul.f32 %v5949_v23, %v2430_v38 }
 0x1d6   : > { %v2485_v52 = vmul.f32 %v5943_v35, %v2431_v59  ;;  %v2333_v30 = vadd.f32 %v2218_v44, %v2024_v43  ;;  %v2334_v62 = vadd.f32 %v2220_v49, %v2025_v41  ;;  %v2579_v25 = vmul.f32 %v5949_v23, %v2431_v59 }
 0x1d7   : > { %v2531_v63 = vadd.f32 %v2483_v10, %v2332_v34  ;;  %v2648_v0 = vrot.slane %v2578_v57, 1  ;;  %v2796_v1 = vunpack.c.l.bf16 %v2780_v48  ;;  %v2829_v2 = vmul.f32 %v5953_v45, %v2430_v38  ;;  %v1684_v34 = vld [vmem:[#allocation2 + $0xf0] sm:$0x8]  ;;  %v1685_v10 = vld [vmem:[#allocation2 + $0xf4] sm:$0xff]  }
 0x1d8   : > { %v2830_v3 = vmul.f32 %v5953_v45, %v2431_v59  ;;  %v2532_v56 = vadd.f32 %v2484_v50, %v2333_v30  ;;  %v2533_v19 = vadd.f32 %v2485_v52, %v2334_v62  ;;  %v2649_v5 = vrot.slane %v2579_v25, 1 }
 0x1d9   : > { %v1011_v6 = vunpack.c.l.bf16 %v963_v61  ;;  %v2744_v7 = vadd.f32 %v2648_v0, %v2531_v63  ;;  %v2831_v9 = vmul.f32 %v5953_v45, %v2796_v1  ;;  %v2937_v13 = vrot.slane %v2829_v2, 2 }
 0x1da   : > { %v2938_v12 = vrot.slane %v2830_v3, 2  ;;  %v2650_v15 = vsel %vm1187_vm0, %v2648_v0, %v2649_v5  ;;  %v2746_v21 = vadd.f32 %v2649_v5, %v2533_v19  ;;  %v1012_v8 = vunpack.c.l.bf16 %v964_v4 }
 0x1db   : > { %v1013_v17 = vunpack.c.h.bf16 %v964_v4  ;;  %v2745_v18 = vadd.f32 %v2650_v15, %v2532_v56  ;;  %v2940_v31 = vrot.slane %v2831_v9, 2  ;;  %v3053_v22 = vadd.f32 %v2937_v13, %v2744_v7 }
 0x1dc   : > { %v2939_v16 = vsel %vm1465_vm1, %v2937_v13, %v2938_v12  ;;  %v1064_v46 = vmul.f32 %v5912_v28, %v1011_v6  ;;  %v1065_v24 = vmul.f32 %v5912_v28, %v1012_v8  ;;  %v1151_v32 = vmul.f32 %v5918_v14, %v1012_v8 }
 0x1dd   : > { %v1066_v27 = vmul.f32 %v5912_v28, %v1013_v17  ;;  %v2941_v51 = vsel %vm1465_vm1, %v2938_v12, %v2940_v31  ;;  %v3054_v39 = vadd.f32 %v2939_v16, %v2745_v18  ;;  %v3108_v33 = vadd.f32 %v5968_v29, %v3053_v22  ;;  %v2067_v16 = vld [vmem:[#allocation2 + $0xfc] sm:$0x1] }
 0x1de   : > { %v1152_v55 = vmul.f32 %v5918_v14, %v1013_v17  ;;  %v3055_v20 = vadd.f32 %v2941_v51, %v2746_v21  ;;  %v1230_v26 = vrot.slane %v1151_v32, 1  ;;  %v1362_v54 = vunpack.c.l.bf16 %v1346_v60 }
 0x1df   : > { %v1411_v36 = vmul.f32 %v5924_v58, %v1012_v8  ;;  %v3109_v37 = vadd.f32 %v5968_v29, %v3054_v39  ;;  %v3156_v38 = vmax.f32 %v3108_v33, 0.0  ;;  %v1412_v41 = vmul.f32 %v5924_v58, %v1013_v17 }
 0x1e0   : > { %v1231_v40 = vrot.slane %v1152_v55, 1  ;;  %v3110_v42 = vadd.f32 %v5968_v29, %v3055_v20  ;;  %v1326_v59 = vadd.f32 %v1230_v26, %v1064_v46  ;;  %v1413_v43 = vmul.f32 %v5924_v58, %v1362_v54  ;;  %v2405_v20 = vld [vmem:[#allocation2 + $0x100] sm:$0x8] }
 0x1e1   : > { %v1536_v44 = vrot.slane %v1411_v36, 2  ;;  %v3157_v48 = vmax.f32 %v3109_v37, 0.0  ;;  %v3204_v49 = vmin.f32 %v3156_v38, 6.0  ;;  %v1537_v30 = vrot.slane %v1412_v41, 2  ;;  %v2788_v38 = vld [vmem:[#allocation2 + $0x10c] sm:$0x1] }
 0x1e2   : > { %v1232_v50 = vsel %vm1187_vm0, %v1230_v26, %v1231_v40  ;;  %v1328_v52 = vadd.f32 %v1231_v40, %v1066_v27  ;;  %v3158_v57 = vmax.f32 %v3110_v42, 0.0  ;;  %v1539_v62 = vrot.slane %v1413_v43, 2  ;;  %v2406_v26 = vld [vmem:[#allocation2 + $0x104] sm:$0xff]  }
 0x1e3   : > { %v1327_v61 = vadd.f32 %v1232_v50, %v1065_v24  ;;  %v3205_v63 = vmin.f32 %v3157_v48, 6.0  ;;  %v1636_v25 = vadd.f32 %v1536_v44, %v1326_v59  ;;  %v1732_v0 = vunpack.c.l.bf16 %v1684_v34 }
 0x1e4   : > { %v1733_v1 = vunpack.c.l.bf16 %v1685_v10  ;;  %v3206_v2 = vmin.f32 %v3158_v57, 6.0  ;;  %v1538_v3 = vsel %vm1465_vm1, %v1536_v44, %v1537_v30  ;;  %v1540_v4 = vsel %vm1465_vm1, %v1537_v30, %v1539_v62 }
 0x1e5   : > { %v1734_v56 = vunpack.c.h.bf16 %v1685_v10  ;;  %v3246_v19 = vpack.c.bf16 %v3205_v63, %v3204_v49  ;;  %v1637_v5 = vadd.f32 %v1538_v3, %v1327_v61  ;;  %v1638_v6 = vadd.f32 %v1540_v4, %v1328_v52 }
 0x1e6   : > { %v1786_v7 = vmul.f32 %v5883_v47, %v1732_v0  ;;  %v3247_v9 = vpack.c.bf16 %v3206_v2, %v3206_v2  ;;  %v1787_v13 = vmul.f32 %v5883_v47, %v1733_v1  ;;  %v1873_v15 = vmul.f32 %v5888_v53, %v1733_v1 }
 0x1e7   : > { %v1788_v12 = vmul.f32 %v5883_v47, %v1734_v56  ;;  %v3370_v21 = vshrl.u32 %v3246_v19, 16  ;;  %v3373_v8 = vshll.u32 %v3246_v19, 16  ;;  %v1874_v18 = vmul.f32 %v5888_v53, %v1734_v56 }
 0x1e8   : > { %v1834_v17 = vadd.f32 %v1786_v7, %v1636_v25  ;;  %v3378_v31 = vshrl.u32 %v3247_v9, 16  ;;  %v3381_v22 = vshll.u32 %v3247_v9, 16  ;;  %v1835_v60 = vadd.f32 %v1787_v13, %v1637_v5  ;;  %v943_v9 = vld [vmem:[#allocation2 + $0x74] sm:$0xff]  }
 0x1e9   : > { %v1836_v46 = vadd.f32 %v1788_v12, %v1638_v6  ;;  %v3372_v24 = vrot.slane %v3370_v21, 3  ;;  %v3375_v27 = vrot.slane %v3373_v8, 4  ;;  %v1951_v32 = vrot.slane %v1873_v15, 1 }
 0x1ea   : > { %v1952_v51 = vrot.slane %v1874_v18, 1  ;;  %v3380_v39 = vrot.slane %v3378_v31, 3  ;;  %v3383_v33 = vrot.slane %v3381_v22, 4  ;;  %v2083_v55 = vunpack.c.l.bf16 %v2067_v16 }
 0x1eb   : > { %v2132_v47 = vmul.f32 %v5892_v11, %v1733_v1  ;;  %v3376_v54 = vor.u32 %v3375_v27, %v3372_v24  ;;  %v2047_v53 = vadd.f32 %v1951_v32, %v1834_v17  ;;  %v2133_v42 = vmul.f32 %v5892_v11, %v1734_v56  ;;  %v942_v1 = vld [vmem:[#allocation2 + $0x70] sm:$0x8]  ;;  %v1339_v24 = vld [vmem:[#allocation2 + $0x7c] sm:$0x1] }
 0x1ec   : > { %v1953_v36 = vsel %vm1187_vm0, %v1951_v32, %v1952_v51  ;;  %v2049_v37 = vadd.f32 %v1952_v51, %v1836_v46  ;;  %v3384_v40 = vor.u32 %v3383_v33, %v3380_v39  ;;  %v2134_v59 = vmul.f32 %v5892_v11, %v2083_v55 }
 0x1ed   : > { %v2048_v41 = vadd.f32 %v1953_v36, %v1835_v60  ;;  %v2256_v43 = vrot.slane %v2132_v47, 2  ;;  %v2453_v44 = vunpack.c.l.bf16 %v2405_v20  ;;  %v2454_v34 = vunpack.c.l.bf16 %v2406_v26 }
 0x1ee   : > { %v2455_v10 = vunpack.c.h.bf16 %v2406_v26  ;;  %v3385_v48 = vsel %vm3266_vm2, %v3376_v54, %v3384_v40  ;;  %v2257_v49 = vrot.slane %v2133_v42, 2  ;;  %v2259_v50 = vrot.slane %v2134_v59, 2 }
 0x1ef   : > { %v2804_v52 = vunpack.c.l.bf16 %v2788_v38  ;;  %4798 = vmatprep.mubr.bf16.mxu0 %v3385_v48  ;;  %v2356_v57 = vadd.f32 %v2256_v43, %v2047_v53  ;;  %v2507_v61 = vmul.f32 %v5943_v35, %v2453_v44  ;;  %v2508_v30 = vmul.f32 %v5943_v35, %v2454_v34  ;;  %v1664_v44 = vld [vmem:[#allocation2 + $0x84] sm:$0xff]  }
 0x1f0   : > { %v2509_v62 = vmul.f32 %v5943_v35, %v2455_v10  ;;  %v2258_v63 = vsel %vm1465_vm1, %v2256_v43, %v2257_v49  ;;  %v2260_v11 = vsel %vm1465_vm1, %v2257_v49, %v2259_v50  ;;  %v2594_v25 = vmul.f32 %v5949_v23, %v2454_v34 }
 0x1f1   : > { %v2595_v0 = vmul.f32 %v5949_v23, %v2455_v10  ;;  %v2357_v2 = vadd.f32 %v2258_v63, %v2048_v41  ;;  %v2358_v3 = vadd.f32 %v2260_v11, %v2049_v37  ;;  %v2555_v4 = vadd.f32 %v2507_v61, %v2356_v57 }
 0x1f2   : > { %v2853_v56 = vmul.f32 %v5953_v45, %v2454_v34  ;;  %v2672_v19 = vrot.slane %v2594_v25, 1  ;;  %v2854_v6 = vmul.f32 %v5953_v45, %v2455_v10  ;;  %v2855_v7 = vmul.f32 %v5953_v45, %v2804_v52 }
 0x1f3   : > { %v2673_v5 = vrot.slane %v2595_v0, 1  ;;  %v2556_v13 = vadd.f32 %v2508_v30, %v2357_v2  ;;  %v2557_v12 = vadd.f32 %v2509_v62, %v2358_v3  ;;  %v990_v21 = vunpack.c.l.bf16 %v942_v1 }
 0x1f4   : > { %v2977_v15 = vrot.slane %v2853_v56, 2  ;;  %v2768_v17 = vadd.f32 %v2672_v19, %v2555_v4  ;;  %v2978_v18 = vrot.slane %v2854_v6, 2  ;;  %v2980_v16 = vrot.slane %v2855_v7, 2 }
 0x1f5   : > { %v2674_v8 = vsel %vm1187_vm0, %v2672_v19, %v2673_v5  ;;  %v2770_v22 = vadd.f32 %v2673_v5, %v2557_v12  ;;  %v991_v60 = vunpack.c.l.bf16 %v943_v9  ;;  %v992_v46 = vunpack.c.h.bf16 %v943_v9  ;;  %v6091_v5 = vld [vmem:[#allocation3 + $0x4] ss:$0 sm:$0xff]  ;;  %v6095_v9 = vld [vmem:[#allocation3 + $0x5] ss:$0 sm:$0xff] }
 0x1f6   : > { %v2769_v31 = vadd.f32 %v2674_v8, %v2556_v13  ;;  %v2979_v27 = vsel %vm1465_vm1, %v2977_v15, %v2978_v18  ;;  %v2981_v32 = vsel %vm1465_vm1, %v2978_v18, %v2980_v16  ;;  %v3077_v51 = vadd.f32 %v2977_v15, %v2768_v17  ;;  %v2060_v17 = vld [vmem:[#allocation2 + $0x8c] sm:$0x1] }
 0x1f7   : > { %v1043_v39 = vmul.f32 %v5912_v28, %v990_v21  ;;  %v3079_v55 = vadd.f32 %v2981_v32, %v2770_v22  ;;  %v1044_v47 = vmul.f32 %v5912_v28, %v991_v60  ;;  %v1045_v20 = vmul.f32 %v5912_v28, %v992_v46  ;;  %v2384_v32 = vld [vmem:[#allocation2 + $0x90] sm:$0x8] }
 0x1f8   : > { %v3078_v33 = vadd.f32 %v2979_v27, %v2769_v31  ;;  %v3132_v26 = vadd.f32 %v5968_v29, %v3077_v51  ;;  %v1137_v54 = vmul.f32 %v5918_v14, %v991_v60  ;;  %v1138_v36 = vmul.f32 %v5918_v14, %v992_v46  ;;  %v1663_v14 = vld [vmem:[#allocation2 + $0x80] sm:$0x8] }
 0x1f9   : > { %v1355_v53 = vunpack.c.l.bf16 %v1339_v24  ;;  %v3134_v38 = vadd.f32 %v5968_v29, %v3079_v55  ;;  %v1390_v40 = vmul.f32 %v5924_v58, %v991_v60  ;;  %v1391_v41 = vmul.f32 %v5924_v58, %v992_v46 }
 0x1fa   : > { %v3133_v37 = vadd.f32 %v5968_v29, %v3078_v33  ;;  %v3180_v42 = vmax.f32 %v3132_v26, 0.0  ;;  %v1209_v59 = vrot.slane %v1137_v54, 1  ;;  %v1210_v43 = vrot.slane %v1138_v36, 1  ;;  %v6100_v54 = vld [vmem:[#allocation3 + $0x6] ss:$0 sm:$0xff] }
 0x1fb   : > { %v1392_v28 = vmul.f32 %v5924_v58, %v1355_v53  ;;  %v3182_v10 = vmax.f32 %v3134_v38, 0.0  ;;  %v1501_v48 = vrot.slane %v1390_v40, 2  ;;  %v1502_v49 = vrot.slane %v1391_v41, 2 }
 0x1fc   : > { %v3181_v34 = vmax.f32 %v3133_v37, 0.0  ;;  %v3228_v50 = vmin.f32 %v3180_v42, 6.0  ;;  %v1211_v52 = vsel %vm1187_vm0, %v1209_v59, %v1210_v43  ;;  %v1305_v57 = vadd.f32 %v1209_v59, %v1043_v39 }
 0x1fd   : > { %v1307_v61 = vadd.f32 %v1210_v43, %v1045_v20  ;;  %v3230_v62 = vmin.f32 %v3182_v10, 6.0  ;;  %v1306_v63 = vadd.f32 %v1211_v52, %v1044_v47  ;;  %v1503_v11 = vsel %vm1465_vm1, %v1501_v48, %v1502_v49  ;;  %v2385_v47 = vld [vmem:[#allocation2 + $0x94] sm:$0xff]  }
 0x1fe   : > { %v3229_v30 = vmin.f32 %v3181_v34, 6.0  ;;  %v1504_v25 = vrot.slane %v1392_v28, 2  ;;  %v1615_v0 = vadd.f32 %v1501_v48, %v1305_v57  ;;  %v1711_v1 = vunpack.c.l.bf16 %v1663_v14  ;;  %v2781_v57 = vld [vmem:[#allocation2 + $0x9c] sm:$0x1] }
 0x1ff   : > { %v1712_v58 = vunpack.c.l.bf16 %v1664_v44  ;;  %v3263_v3 = vpack.c.bf16 %v3230_v62, %v3230_v62  ;;  %v1616_v4 = vadd.f32 %v1503_v11, %v1306_v63  ;;  %v1713_v56 = vunpack.c.h.bf16 %v1664_v44  ;;  %v966_v11 = vld [vmem:[#allocation2 + $0xf0] sm:$0x8] }
 0x200   : > { %v3262_v2 = vpack.c.bf16 %v3229_v30, %v3228_v50  ;;  %v1505_v19 = vsel %vm1465_vm1, %v1502_v49, %v1504_v25  ;;  %v1765_v6 = vmul.f32 %v6091_v5, %v1711_v1  ;;  %v2076_v55 = vunpack.c.l.bf16 %v2060_v17 }
 0x201   : > { %v1766_v7 = vmul.f32 %v6091_v5, %v1712_v58  ;;  %v1859_v13 = vmul.f32 %v6095_v9, %v1712_v58  ;;  %v3514_v21 = vshrl.u32 %v3263_v3, 16  ;;  %v3517_v8 = vshll.u32 %v3263_v3, 16 }
 0x202   : > { %v3506_v12 = vshrl.u32 %v3262_v2, 16  ;;  %v3509_v15 = vshll.u32 %v3262_v2, 16  ;;  %v1617_v18 = vadd.f32 %v1505_v19, %v1307_v61  ;;  %v1767_v16 = vmul.f32 %v6091_v5, %v1713_v56  ;;  %v967_v19 = vld [vmem:[#allocation2 + $0xf4] sm:$0xff]  }
 0x203   : > { %v1813_v31 = vadd.f32 %v1765_v6, %v1615_v0  ;;  %v1814_v22 = vadd.f32 %v1766_v7, %v1616_v4  ;;  %v3516_v24 = vrot.slane %v3514_v21, 3  ;;  %v3519_v27 = vrot.slane %v3517_v8, 4 }
 0x204   : > { %v3508_v60 = vrot.slane %v3506_v12, 3  ;;  %v3511_v46 = vrot.slane %v3509_v15, 4  ;;  %v1815_v51 = vadd.f32 %v1767_v16, %v1617_v18  ;;  %v1860_v39 = vmul.f32 %v6095_v9, %v1713_v56 }
 0x205   : > { %v1930_v33 = vrot.slane %v1859_v13, 1  ;;  %v3520_v26 = vor.u32 %v3519_v27, %v3516_v24  ;;  %v2111_v36 = vmul.f32 %v6100_v54, %v1712_v58  ;;  %v2112_v53 = vmul.f32 %v6100_v54, %v1713_v56  ;;  %v1347_v24 = vld [vmem:[#allocation2 + $0xfc] sm:$0x1]  ;;  %v4911_v27 = vld [vmem:[#allocation3] ss:$0 sm:$0xff] }
 0x206   : > { %v3512_v20 = vor.u32 %v3511_v46, %v3508_v60  ;;  %v1931_v37 = vrot.slane %v1860_v39, 1  ;;  %v2113_v40 = vmul.f32 %v6100_v54, %v2076_v55  ;;  %v2432_v41 = vunpack.c.l.bf16 %v2384_v32 }
 0x207   : > { %v2026_v38 = vadd.f32 %v1930_v33, %v1813_v31  ;;  %v2221_v59 = vrot.slane %v2111_v36, 2  ;;  %v2222_v43 = vrot.slane %v2112_v53, 2  ;;  %v2433_v28 = vunpack.c.l.bf16 %v2385_v47 }
 0x208   : > { %v3521_v42 = vsel %vm3266_vm2, %v3512_v20, %v3520_v26  ;;  %v1932_v44 = vsel %vm1187_vm0, %v1930_v33, %v1931_v37  ;;  %v2028_v34 = vadd.f32 %v1931_v37, %v1815_v51  ;;  %v2224_v10 = vrot.slane %v2113_v40, 2  ;;  %v4912_v33 = vld [vmem:[#allocation3 + $0x1] ss:$0 sm:$0xff] }
 0x209   : > { %4814 = vmatprep.mubr.bf16.mxu1 %v3521_v42  ;;  %v2434_v48 = vunpack.c.h.bf16 %v2385_v47  ;;  %v2027_v49 = vadd.f32 %v1932_v44, %v1814_v22  ;;  %v2223_v14 = vsel %vm1465_vm1, %v2221_v59, %v2222_v43  ;;  %v2335_v50 = vadd.f32 %v2221_v59, %v2026_v38  ;;  %v4913_v38 = vld [vmem:[#allocation3 + $0x2] ss:$0 sm:$0xff] }
 0x20a   : > { %v2486_v52 = vmul.f32 %v5943_v35, %v2432_v41  ;;  %v2225_v61 = vsel %vm1465_vm1, %v2222_v43, %v2224_v10  ;;  %v2487_v30 = vmul.f32 %v5943_v35, %v2433_v28  ;;  %v2580_v63 = vmul.f32 %v5949_v23, %v2433_v28 }
 0x20b   : > { %v2488_v62 = vmul.f32 %v5943_v35, %v2434_v48  ;;  %v2336_v25 = vadd.f32 %v2223_v14, %v2027_v49  ;;  %v2337_v0 = vadd.f32 %v2225_v61, %v2028_v34  ;;  %v2581_v58 = vmul.f32 %v5949_v23, %v2434_v48  ;;  %v1688_v49 = vld [vmem:[#allocation2 + $0x104] sm:$0xff]  }
 0x20c   : > { %v2534_v1 = vadd.f32 %v2486_v52, %v2335_v50  ;;  %v2651_v2 = vrot.slane %v2580_v63, 1  ;;  %v2797_v3 = vunpack.c.l.bf16 %v2781_v57  ;;  %v2832_v4 = vmul.f32 %v5953_v45, %v2433_v28 }
 0x20d   : > { %v2833_v56 = vmul.f32 %v5953_v45, %v2434_v48  ;;  %v2535_v6 = vadd.f32 %v2487_v30, %v2336_v25  ;;  %v2536_v7 = vadd.f32 %v2488_v62, %v2337_v0  ;;  %v2652_v13 = vrot.slane %v2581_v58, 1  ;;  %v1687_v48 = vld [vmem:[#allocation2 + $0x100] sm:$0x8] }
 0x20e   : > { %v1014_v12 = vunpack.c.l.bf16 %v966_v11  ;;  %v2747_v35 = vadd.f32 %v2651_v2, %v2534_v1  ;;  %v2834_v15 = vmul.f32 %v5953_v45, %v2797_v3  ;;  %v2942_v21 = vrot.slane %v2832_v4, 2 }
 0x20f   : > { %v2943_v8 = vrot.slane %v2833_v56, 2  ;;  %v2653_v17 = vsel %vm1187_vm0, %v2651_v2, %v2652_v13  ;;  %v2749_v18 = vadd.f32 %v2652_v13, %v2536_v7  ;;  %v1015_v23 = vunpack.c.l.bf16 %v967_v19 }
 0x210   : > { %v1016_v16 = vunpack.c.h.bf16 %v967_v19  ;;  %v2748_v31 = vadd.f32 %v2653_v17, %v2535_v6  ;;  %v2945_v60 = vrot.slane %v2834_v15, 2  ;;  %v3056_v46 = vadd.f32 %v2942_v21, %v2747_v35 }
 0x211   : > { %v2944_v22 = vsel %vm1465_vm1, %v2942_v21, %v2943_v8  ;;  %v1067_v32 = vmul.f32 %v4911_v27, %v1014_v12  ;;  %v1068_v51 = vmul.f32 %v4911_v27, %v1015_v23  ;;  %v1153_v55 = vmul.f32 %v4912_v33, %v1015_v23 }
 0x212   : > { %v1069_v39 = vmul.f32 %v4911_v27, %v1016_v16  ;;  %v2946_v45 = vsel %vm1465_vm1, %v2943_v8, %v2945_v60  ;;  %v3057_v47 = vadd.f32 %v2944_v22, %v2748_v31  ;;  %v3111_v20 = vadd.f32 %v5968_v29, %v3056_v46  ;;  %v6133_v46 = vpop.f32.mrf.mxu1 }
 0x213   : > { %v1154_v26 = vmul.f32 %v4912_v33, %v1016_v16  ;;  %v3058_v36 = vadd.f32 %v2946_v45, %v2749_v18  ;;  %v1233_v53 = vrot.slane %v1153_v55, 1  ;;  %v1363_v37 = vunpack.c.l.bf16 %v1347_v24  ;;  %v2068_v18 = vld [vmem:[#allocation2 + $0x10c] sm:$0x1]  ;;  %v2408_v45 = vld [vmem:[#allocation2 + $0x110] sm:$0x8] }
 0x214   : > { %v1414_v40 = vmul.f32 %v4913_v38, %v1015_v23  ;;  %v3112_v41 = vadd.f32 %v5968_v29, %v3057_v47  ;;  %v3159_v42 = vmax.f32 %v3111_v20, 0.0  ;;  %v1415_v43 = vmul.f32 %v4913_v38, %v1016_v16  ;;  %v6131_v23 = vpop.f32.mrf.mxu0 }
 0x215   : > { %v1234_v59 = vrot.slane %v1154_v26, 1  ;;  %v3113_v28 = vadd.f32 %v5968_v29, %v3058_v36  ;;  %v1329_v44 = vadd.f32 %v1233_v53, %v1067_v32  ;;  %v1416_v34 = vmul.f32 %v4913_v38, %v1363_v37 }
 0x216   : > { %v1541_v10 = vrot.slane %v1414_v40, 2  ;;  %v3160_v14 = vmax.f32 %v3112_v41, 0.0  ;;  %v3207_v50 = vmin.f32 %v3159_v42, 6.0  ;;  %v1542_v62 = vrot.slane %v1415_v43, 2  ;;  %v6137_v37 = vpop.f32.mrf.mxu0 }
 0x217   : > { %v1235_v52 = vsel %vm1187_vm0, %v1233_v53, %v1234_v59  ;;  %v1331_v57 = vadd.f32 %v1234_v59, %v1069_v39  ;;  %v3161_v61 = vmax.f32 %v3113_v28, 0.0  ;;  %v1544_v63 = vrot.slane %v1416_v34, 2  ;;  %v2789_v53 = vld [vmem:[#allocation2 + $0x11c] sm:$0x1]  ;;  %v6141_v59 = vpop.f32.mrf.mxu1 }
 0x218   : > { %v1330_v30 = vadd.f32 %v1235_v52, %v1068_v51  ;;  %v3208_v11 = vmin.f32 %v3160_v14, 6.0  ;;  %v1639_v25 = vadd.f32 %v1541_v10, %v1329_v44  ;;  %v1735_v0 = vunpack.c.l.bf16 %v1687_v48  ;;  %v4914_v52 = vld [vmem:[#allocation3 + $0x8] ss:$0 sm:$0xff] }
 0x219   : > { %v1736_v1 = vunpack.c.l.bf16 %v1688_v49  ;;  %v3209_v58 = vmin.f32 %v3161_v61, 6.0  ;;  %v1543_v29 = vsel %vm1465_vm1, %v1541_v10, %v1542_v62  ;;  %v1545_v2 = vsel %vm1465_vm1, %v1542_v62, %v1544_v63 }
 0x21a   : > { %v1737_v3 = vunpack.c.h.bf16 %v1688_v49  ;;  %v3248_v4 = vpack.c.bf16 %v3208_v11, %v3207_v50  ;;  %v1640_v56 = vadd.f32 %v1543_v29, %v1330_v30  ;;  %v1641_v19 = vadd.f32 %v1545_v2, %v1331_v57  ;;  %v4915_v11 = vld [vmem:[#allocation3 + $0x9] ss:$0 sm:$0xff] }
 0x21b   : > { %v1789_v6 = vmul.f32 %v6091_v5, %v1735_v0  ;;  %v3249_v7 = vpack.c.bf16 %v3209_v58, %v3209_v58  ;;  %v1790_v13 = vmul.f32 %v6091_v5, %v1736_v1  ;;  %v1875_v35 = vmul.f32 %v6095_v9, %v1736_v1  ;;  %v4805_v58 = vpop.f32.mrf.mxu1 }
 0x21c   : > { %v1791_v12 = vmul.f32 %v6091_v5, %v1737_v3  ;;  %v3387_v15 = vshrl.u32 %v3248_v4, 16  ;;  %v3390_v21 = vshll.u32 %v3248_v4, 16  ;;  %v1876_v17 = vmul.f32 %v6095_v9, %v1737_v3  ;;  %v2409_v9 = vld [vmem:[#allocation2 + $0x114] sm:$0xff]   ;;  %v4916_v4 = vld [vmem:[#allocation3 + $0xa] ss:$0 sm:$0xff] }
 0x21d   : > { %v1837_v8 = vadd.f32 %v1789_v6, %v1639_v25  ;;  %v3395_v16 = vshrl.u32 %v3249_v7, 16  ;;  %v3398_v31 = vshll.u32 %v3249_v7, 16  ;;  %v1838_v22 = vadd.f32 %v1790_v13, %v1640_v56 }
 0x21e   : > { %v1839_v60 = vadd.f32 %v1791_v12, %v1641_v19  ;;  %v3389_v24 = vrot.slane %v3387_v15, 3  ;;  %v3392_v27 = vrot.slane %v3390_v21, 4  ;;  %v1954_v32 = vrot.slane %v1875_v35, 1  ;;  %v4716_v12 = vld [vmem:[%s6148_s10 + $0x8] sm:$0xff]  }
 0x21f   : > { %v1955_v5 = vrot.slane %v1876_v17, 1  ;;  %v3397_v51 = vrot.slane %v3395_v16, 3  ;;  %v3400_v39 = vrot.slane %v3398_v31, 4  ;;  %v2084_v33 = vunpack.c.l.bf16 %v2068_v18  ;;  %v4724_v17 = vld [vmem:[%s6148_s10 + $0x48] sm:$0xff]  }
 0x220   : > { %v2135_v55 = vmul.f32 %v6100_v54, %v1736_v1  ;;  %v3393_v47 = vor.u32 %v3392_v27, %v3389_v24  ;;  %v2050_v26 = vadd.f32 %v1954_v32, %v1837_v8  ;;  %v2136_v41 = vmul.f32 %v6100_v54, %v1737_v3  ;;  %v6155_v1 = vld [vmem:[%s6254_s7] ss:$0 sm:$0xff]  ;;  %v3727_v24 = vpop.f32.mrf.mxu1 }
 0x221   : > { %v1956_v20 = vsel %vm1187_vm0, %v1954_v32, %v1955_v5  ;;  %v2052_v36 = vadd.f32 %v1955_v5, %v1839_v60  ;;  %v3401_v38 = vor.u32 %v3400_v39, %v3397_v51  ;;  %v2137_v42 = vmul.f32 %v6100_v54, %v2084_v33  ;;  %v4789_v54 = vpop.f32.mrf.mxu0 }
 0x222   : > { %v2051_v40 = vadd.f32 %v1956_v20, %v1838_v22  ;;  %v2261_v43 = vrot.slane %v2135_v55, 2  ;;  %v2456_v28 = vunpack.c.l.bf16 %v2408_v45  ;;  %v2457_v44 = vunpack.c.l.bf16 %v2409_v9  ;;  %v4535_v45 = vld [vmem:[%s6148_s10] sm:$0xff]  }
 0x223   : > { %v2458_v34 = vunpack.c.h.bf16 %v2409_v9  ;;  %v3402_v10 = vsel %vm3266_vm2, %v3393_v47, %v3401_v38  ;;  %v2262_v48 = vrot.slane %v2136_v41, 2  ;;  %v2264_v49 = vrot.slane %v2137_v42, 2  ;;  %v3663_v18 = vpop.f32.mrf.mxu0 }
 0x224   : > { %v2805_v14 = vunpack.c.l.bf16 %v2789_v53  ;;  %4799 = vmatmul.mubr.bf16.gmra.mxu0 %v3402_v10  ;;  %v2359_v50 = vadd.f32 %v2261_v43, %v2050_v26  ;;  %v2510_v57 = vmul.f32 %v4914_v52, %v2456_v28  ;;  %v2511_v61 = vmul.f32 %v4914_v52, %v2457_v44  ;;  %v4917_v26 = vld [vmem:[%s6252_s5] ss:$0 sm:$0xff] }
 0x225   : > { %v2512_v30 = vmul.f32 %v4914_v52, %v2458_v34  ;;  %v2263_v62 = vsel %vm1465_vm1, %v2261_v43, %v2262_v48  ;;  %v2265_v63 = vsel %vm1465_vm1, %v2262_v48, %v2264_v49  ;;  %v2596_v25 = vmul.f32 %v4915_v11, %v2457_v44  ;;  %v4792_v20 = vpop.f32.mrf.mxu0 }
 0x226   : > { %v2597_v0 = vmul.f32 %v4915_v11, %v2458_v34  ;;  %v2360_v29 = vadd.f32 %v2263_v62, %v2051_v40  ;;  %v2361_v2 = vadd.f32 %v2265_v63, %v2052_v36  ;;  %v2558_v3 = vadd.f32 %v2510_v57, %v2359_v50  ;;  %v4723_v40 = vld [vmem:[%s6148_s10 + $0x40] sm:$0xff]  }
 0x227   : > { %v2856_v56 = vmul.f32 %v4916_v4, %v2457_v44  ;;  %v2675_v19 = vrot.slane %v2596_v25, 1  ;;  %v2857_v7 = vmul.f32 %v4916_v4, %v2458_v34  ;;  %v2858_v13 = vmul.f32 %v4916_v4, %v2805_v14  ;;  %v3676_v57 = vpop.f32.mrf.mxu0 }
 0x228   : > { %v2676_v6 = vrot.slane %v2597_v0, 1  ;;  %v2559_v35 = vadd.f32 %v2511_v61, %v2360_v29  ;;  %v2560_v15 = vadd.f32 %v2512_v30, %v2361_v2  ;;  %v3669_v8 = vadd.f32 %v6131_v23, %v6155_v1 }
 0x229   : > { %v2982_v21 = vrot.slane %v2856_v56, 2  ;;  %v2771_v31 = vadd.f32 %v2675_v19, %v2558_v3  ;;  %v2983_v22 = vrot.slane %v2857_v7, 2  ;;  %v2985_v60 = vrot.slane %v2858_v13, 2  ;;  %v4726_v13 = vld [vmem:[%s6148_s10 + $0x58] sm:$0xff]  }
 0x22a   : > { %v2677_v16 = vsel %vm1187_vm0, %v2675_v19, %v2676_v6  ;;  %v2773_v32 = vadd.f32 %v2676_v6, %v2560_v15  ;;  %v4540_v5 = vunpack.c.l.bf16 %v4716_v12  ;;  %v3733_v51 = vadd.f32 %v6133_v46, %v6155_v1  ;;  %v4808_v41 = vpop.f32.mrf.mxu1 }
 0x22b   : > { %v2772_v27 = vadd.f32 %v2677_v16, %v2559_v35  ;;  %v2984_v39 = vsel %vm1465_vm1, %v2982_v21, %v2983_v22  ;;  %v2986_v23 = vsel %vm1465_vm1, %v2983_v22, %v2985_v60  ;;  %v3080_v33 = vadd.f32 %v2982_v21, %v2771_v31  ;;  %v4717_v60 = vld [vmem:[%s6148_s10 + $0x10] sm:$0xff]  }
 0x22c   : > { %v4572_v55 = vunpack.c.l.bf16 %v4724_v17  ;;  %v3082_v47 = vadd.f32 %v2986_v23, %v2773_v32  ;;  %v3853_v53 = vadd.f32 %v4540_v5, %v3669_v8  ;;  %v3661_v46 = vadd.f32 %v6155_v1, %v6137_v37 }
 0x22d   : > { %v3081_v9 = vadd.f32 %v2984_v39, %v2772_v27  ;;  %v3135_v36 = vadd.f32 %v4917_v26, %v3080_v33  ;;  %v4536_v28 = vunpack.c.l.bf16 %v4535_v45  ;;  %v3672_v44 = vadd.f32 %v4789_v54, %v6155_v1  ;;  %v3740_v54 = vpop.f32.mrf.mxu1  ;;  %v4725_v33 = vld [vmem:[%s6148_s10 + $0x50] sm:$0xff]  }
 0x22e   : > { %v3869_v38 = vadd.f32 %v4572_v55, %v3733_v51  ;;  %v3137_v43 = vadd.f32 %v4917_v26, %v3082_v47  ;;  %v3725_v10 = vadd.f32 %v6155_v1, %v6141_v59  ;;  %v4541_v48 = vunpack.c.h.bf16 %v4716_v12  ;;  %v4793_v12 = vpop.f32.mrf.mxu0 }
 0x22f   : > { %v3136_v42 = vadd.f32 %v4917_v26, %v3081_v9  ;;  %v3183_v34 = vmax.f32 %v3135_v36, 0.0  ;;  %v3736_v49 = vadd.f32 %v4805_v58, %v6155_v1  ;;  %v4568_v52 = vunpack.c.l.bf16 %v4723_v40  ;;  %v4718_v58 = vld [vmem:[%s6148_s10 + $0x18] sm:$0xff]  }
 0x230   : > { %v3185_v50 = vmax.f32 %v3137_v43, 0.0  ;;  %v4573_v37 = vunpack.c.h.bf16 %v4724_v17  ;;  %v3854_v30 = vadd.f32 %v4541_v48, %v3672_v44  ;;  %v3664_v62 = vadd.f32 %v6155_v1, %v3663_v18  ;;  %v4809_v17 = vpop.f32.mrf.mxu1  ;;  %v3679_v55 = vpop.f32.mrf.mxu0 }
 0x231   : > { %v3184_v14 = vmax.f32 %v3136_v42, 0.0  ;;  %v3231_v61 = vmin.f32 %v3183_v34, 6.0  ;;  %v4537_v63 = vunpack.c.h.bf16 %v4535_v45  ;;  %v3728_v0 = vadd.f32 %v6155_v1, %v3727_v24 }
 0x232   : > { %v3233_v25 = vmin.f32 %v3185_v50, 6.0  ;;  %v3870_v59 = vadd.f32 %v4573_v37, %v3736_v49  ;;  %v3851_v29 = vadd.f32 %v4536_v28, %v3661_v46  ;;  %v4606_v2 = vpack.c.bf16 %v3854_v30, %v3853_v53  ;;  %v3743_v26 = vpop.f32.mrf.mxu1 }
 0x233   : > { %v3232_v11 = vmin.f32 %v3184_v14, 6.0  ;;  %v3852_v3 = vadd.f32 %v4537_v63, %v3664_v62  ;;  %v4569_v4 = vunpack.c.h.bf16 %v4723_v40  ;;  %v3867_v6 = vadd.f32 %v4568_v52, %v3725_v10 }
 0x234   : > { %v3265_v19 = vpack.c.bf16 %v3233_v25, %v3233_v25  ;;  %v4646_v7 = vpack.c.bf16 %v3870_v59, %v3869_v38  ;;  %4731 = vst [vmem:[%s6182_s25 + $0x8] sm:$0xff] %v4606_v2   ;;  %v3685_v21 = vadd.f32 %v4792_v20, %v6155_v1  ;;  %v4548_v8 = vunpack.c.l.bf16 %v4718_v58  ;;  %v4719_v59 = vld [vmem:[%s6148_s10 + $0x20] sm:$0xff]  }
 0x235   : > { %v3264_v56 = vpack.c.bf16 %v3232_v11, %v3231_v61  ;;  %v4601_v35 = vpack.c.bf16 %v3852_v3, %v3851_v29  ;;  %v3868_v15 = vadd.f32 %v4569_v4, %v3728_v0  ;;  %v3749_v27 = vadd.f32 %v4808_v41, %v6155_v1  ;;  %v4720_v11 = vld [vmem:[%s6148_s10 + $0x28] sm:$0xff]  }
 0x236   : > { %v3531_v31 = vshrl.u32 %v3265_v19, 16  ;;  %v3534_v22 = vshll.u32 %v3265_v19, 16  ;;  %4739 = vst [vmem:[%s6182_s25 + $0x48] sm:$0xff] %v4646_v7   ;;  %v4580_v32 = vunpack.c.l.bf16 %v4726_v13  ;;  %v3857_v45 = vadd.f32 %v4548_v8, %v3685_v21 }
 0x237   : > { %v3523_v18 = vshrl.u32 %v3264_v56, 16  ;;  %v3526_v16 = vshll.u32 %v3264_v56, 16  ;;  %4602 = vst [vmem:[%s6182_s25] sm:$0xff] %v4601_v35   ;;  %v4641_v24 = vpack.c.bf16 %v3868_v15, %v3867_v6  ;;  %v3677_v9 = vadd.f32 %v6155_v1, %v3676_v57 }
 0x238   : > { %v3533_v39 = vrot.slane %v3531_v31, 3  ;;  %v3536_v23 = vrot.slane %v3534_v22, 4  ;;  %v4544_v47 = vunpack.c.l.bf16 %v4717_v60  ;;  %v3688_v20 = vadd.f32 %v4793_v12, %v6155_v1  ;;  %v4727_v31 = vld [vmem:[%s6148_s10 + $0x60] sm:$0xff]  }
 0x239   : > { %v3525_v5 = vrot.slane %v3523_v18, 3  ;;  %v3528_v51 = vrot.slane %v3526_v16, 4  ;;  %4738 = vst [vmem:[%s6182_s25 + $0x40] sm:$0xff] %v4641_v24   ;;  %v4549_v38 = vunpack.c.h.bf16 %v4718_v58  ;;  %v3752_v46 = vadd.f32 %v4809_v17, %v6155_v1  ;;  %v4728_v18 = vld [vmem:[%s6148_s10 + $0x68] sm:$0xff]  }
 0x23a   : > { %v3537_v53 = vor.u32 %v3536_v23, %v3533_v39  ;;  %v3741_v40 = vadd.f32 %v6155_v1, %v3740_v54  ;;  %v4576_v41 = vunpack.c.l.bf16 %v4725_v33  ;;  %v4581_v42 = vunpack.c.h.bf16 %v4726_v13 }
 0x23b   : > { %v3529_v36 = vor.u32 %v3528_v51, %v3525_v5  ;;  %v3680_v43 = vadd.f32 %v6155_v1, %v3679_v55  ;;  %v3858_v44 = vadd.f32 %v4549_v38, %v3688_v20  ;;  %v4545_v34 = vunpack.c.h.bf16 %v4717_v60 }
 0x23c   : > { %v3744_v10 = vadd.f32 %v6155_v1, %v3743_v26  ;;  %v3873_v48 = vadd.f32 %v4580_v32, %v3749_v27  ;;  %v3874_v49 = vadd.f32 %v4581_v42, %v3752_v46  ;;  %v4577_v14 = vunpack.c.h.bf16 %v4725_v33  ;;  %v4721_v46 = vld [vmem:[%s6148_s10 + $0x30] sm:$0xff]  }
 0x23d   : > { %v3538_v28 = vsel %vm3266_vm2, %v3529_v36, %v3537_v53  ;;  %v3855_v50 = vadd.f32 %v4544_v47, %v3677_v9  ;;  %v4616_v52 = vpack.c.bf16 %v3858_v44, %v3857_v45  ;;  %v3856_v37 = vadd.f32 %v4545_v34, %v3680_v43  ;;  %v4722_v53 = vld [vmem:[%s6148_s10 + $0x38] sm:$0xff]  }
 0x23e   : > { %4815 = vmatmul.mubr.bf16.gmra.mxu1 %v3538_v28  ;;  %v3871_v57 = vadd.f32 %v4576_v41, %v3741_v40  ;;  %v4656_v61 = vpack.c.bf16 %v3874_v49, %v3873_v48  ;;  %v3872_v30 = vadd.f32 %v4577_v14, %v3744_v10  ;;  %v4556_v58 = vunpack.c.l.bf16 %v4720_v11 }
 0x23f   : > { %4733 = vst [vmem:[%s6182_s25 + $0x18] sm:$0xff] %v4616_v52   ;;  %v4611_v62 = vpack.c.bf16 %v3856_v37, %v3855_v50  ;;  %v4557_v29 = vunpack.c.h.bf16 %v4720_v11  ;;  %v4552_v4 = vunpack.c.l.bf16 %v4719_v59  ;;  %v4553_v19 = vunpack.c.h.bf16 %v4719_v59 }
 0x240   : > { %4741 = vst [vmem:[%s6182_s25 + $0x58] sm:$0xff] %v4656_v61   ;;  %v4651_v63 = vpack.c.bf16 %v3872_v30, %v3871_v57  ;;  %v4588_v60 = vunpack.c.l.bf16 %v4728_v18  ;;  %v4589_v24 = vunpack.c.h.bf16 %v4728_v18  ;;  %v4584_v5 = vunpack.c.l.bf16 %v4727_v31 }
 0x241   : > { %4732 = vst [vmem:[%s6182_s25 + $0x10] sm:$0xff] %v4611_v62   ;;  %v4585_v39 = vunpack.c.h.bf16 %v4727_v31  ;;  %v4564_v41 = vunpack.c.l.bf16 %v4722_v53  ;;  %v4565_v42 = vunpack.c.h.bf16 %v4722_v53  ;;  %v4560_v44 = vunpack.c.l.bf16 %v4721_v46  ;;  %v4730_v62 = vld [vmem:[%s6148_s10 + $0x78] sm:$0xff]  }
 0x242   : > { %4740 = vst [vmem:[%s6182_s25 + $0x50] sm:$0xff] %v4651_v63   ;;  %v4561_v10 = vunpack.c.h.bf16 %v4721_v46  ;;  %v4597_v59 = vunpack.c.h.bf16 %v4730_v62 }
 0x27a   : > { %v4796_v54 = vpop.f32.mrf.mxu0 }
 0x27b   : > { %v3701_v0 = vadd.f32 %v4796_v54, %v6155_v1  ;;  %v4729_v54 = vld [vmem:[%s6148_s10 + $0x70] sm:$0xff]  }
 0x27c   : > { %v3692_v25 = vpop.f32.mrf.mxu0 }
 0x27d   : > { %v3693_v3 = vadd.f32 %v6155_v1, %v3692_v25  ;;  %v3861_v7 = vadd.f32 %v4556_v58, %v3701_v0  ;;  %v4596_v25 = vunpack.c.l.bf16 %v4730_v62 }
 0x27e   : > { %v4797_v2 = vpop.f32.mrf.mxu0 }
 0x27f   : > { %v3704_v56 = vadd.f32 %v4797_v2, %v6155_v1  ;;  %v3859_v35 = vadd.f32 %v4552_v4, %v3693_v3  ;;  %v4593_v3 = vunpack.c.h.bf16 %v4729_v54 }
 0x280   : > { %v3695_v6 = vpop.f32.mrf.mxu0 }
 0x281   : > { %v3862_v13 = vadd.f32 %v4557_v29, %v3704_v56  ;;  %v3696_v12 = vadd.f32 %v6155_v1, %v3695_v6  ;;  %v4592_v29 = vunpack.c.l.bf16 %v4729_v54 }
 0x283   : > { %v4626_v15 = vpack.c.bf16 %v3862_v13, %v3861_v7  ;;  %v3860_v21 = vadd.f32 %v4553_v19, %v3696_v12 }
 0x285   : > { %4735 = vst [vmem:[%s6182_s25 + $0x28] sm:$0xff] %v4626_v15   ;;  %v4621_v8 = vpack.c.bf16 %v3860_v21, %v3859_v35 }
 0x287   : > { %4734 = vst [vmem:[%s6182_s25 + $0x20] sm:$0xff] %v4621_v8  }
 0x294   : > { %v4812_v17 = vpop.f32.mrf.mxu1 }
 0x295   : > { %v3765_v22 = vadd.f32 %v4812_v17, %v6155_v1 }
 0x296   : > { %v3756_v16 = vpop.f32.mrf.mxu1 }
 0x297   : > { %v3757_v32 = vadd.f32 %v6155_v1, %v3756_v16  ;;  %v3877_v33 = vadd.f32 %v4588_v60, %v3765_v22 }
 0x298   : > { %v4813_v27 = vpop.f32.mrf.mxu1 }
 0x299   : > { %v3768_v51 = vadd.f32 %v4813_v27, %v6155_v1  ;;  %v3875_v9 = vadd.f32 %v4584_v5, %v3757_v32 }
 0x29a   : > { %v3759_v23 = vpop.f32.mrf.mxu1 }
 0x29b   : > { %v3878_v55 = vadd.f32 %v4589_v24, %v3768_v51  ;;  %v3760_v45 = vadd.f32 %v6155_v1, %v3759_v23 }
 0x29d   : > { %v4666_v47 = vpack.c.bf16 %v3878_v55, %v3877_v33  ;;  %v3876_v20 = vadd.f32 %v4585_v39, %v3760_v45 }
 0x29f   : > { %4743 = vst [vmem:[%s6182_s25 + $0x68] sm:$0xff] %v4666_v47   ;;  %v4661_v26 = vpack.c.bf16 %v3876_v20, %v3875_v9 }
 0x2a1   : > { %4742 = vst [vmem:[%s6182_s25 + $0x60] sm:$0xff] %v4661_v26  }
 0x2e4   : > { %v4800_v36 = vpop.f32.mrf.mxu0 }
 0x2e5   : > { %v3717_v40 = vadd.f32 %v4800_v36, %v6155_v1 }
 0x2e6   : > { %v3708_v38 = vpop.f32.mrf.mxu0 }
 0x2e7   : > { %v3709_v28 = vadd.f32 %v6155_v1, %v3708_v38  ;;  %v3865_v49 = vadd.f32 %v4564_v41, %v3717_v40 }
 0x2e8   : > { %v4801_v43 = vpop.f32.mrf.mxu0 }
 0x2e9   : > { %v3720_v34 = vadd.f32 %v4801_v43, %v6155_v1  ;;  %v3863_v52 = vadd.f32 %v4560_v44, %v3709_v28 }
 0x2ea   : > { %v3711_v48 = vpop.f32.mrf.mxu0 }
 0x2eb   : > { %v3866_v14 = vadd.f32 %v4565_v42, %v3720_v34  ;;  %v3712_v50 = vadd.f32 %v6155_v1, %v3711_v48 }
 0x2ed   : > { %v4636_v37 = vpack.c.bf16 %v3866_v14, %v3865_v49  ;;  %v3864_v57 = vadd.f32 %v4561_v10, %v3712_v50 }
 0x2ef   : > { %4737 = vst [vmem:[%s6182_s25 + $0x38] sm:$0xff] %v4636_v37   ;;  %v4631_v61 = vpack.c.bf16 %v3864_v57, %v3863_v52 }
 0x2f1   : > { %4736 = vst [vmem:[%s6182_s25 + $0x30] sm:$0xff] %v4631_v61  }
 0x2fe   : > { %v4816_v30 = vpop.f32.mrf.mxu1 }
 0x2ff   : > { %v3781_v11 = vadd.f32 %v4816_v30, %v6155_v1 }
 0x300   : > { %v3772_v63 = vpop.f32.mrf.mxu1 }
 0x301   : > { %v3773_v58 = vadd.f32 %v6155_v1, %v3772_v63  ;;  %v3881_v56 = vadd.f32 %v4596_v25, %v3781_v11 }
 0x302   : > { %v4817_v0 = vpop.f32.mrf.mxu1 }
 0x303   : > { %v3784_v2 = vadd.f32 %v4817_v0, %v6155_v1  ;;  %v3879_v7 = vadd.f32 %v4592_v29, %v3773_v58 }
 0x304   : > { %v3775_v4 = vpop.f32.mrf.mxu1 }
 0x305   : > { %v3882_v19 = vadd.f32 %v4597_v59, %v3784_v2  ;;  %v3776_v6 = vadd.f32 %v6155_v1, %v3775_v4 }
 0x307   : > { %v4676_v13 = vpack.c.bf16 %v3882_v19, %v3881_v56  ;;  %v3880_v12 = vadd.f32 %v4593_v3, %v3776_v6 }
 0x309   : > { %4745 = vst [vmem:[%s6182_s25 + $0x78] sm:$0xff] %v4676_v13   ;;  %v4671_v35 = vpack.c.bf16 %v3880_v12, %v3879_v7 }
 0x30b   : > { %4744 = vst [vmem:[%s6182_s25 + $0x70] sm:$0xff] %v4671_v35  }
 0x30c PF: > { %s20_s29 = sadd.s32 1, %s4978_s29   ;;  %s6264_s27 = smov %s4974_s28 }
 0x30d   : > { %p17_p4 = scmp.ge.s32.totalorder %s20_s29, 4   ;;  %s6265_s28 = smov %s6267_s9 }
 0x30f   :  { %19 = sbr.rel (!%p17_p4) target bundleno = 3 (0x3), region = 108 }
 0x314   :  { %4075 = vsyncpa [#allocation6], 1 }
 0x315   :  { %4077 = vsyncpa [#allocation6 + $0x1], 1 }
 0x316   :  { %4078 = vsyncpa [#allocation8], 1 }

</bundles_post_ra>
